<compile_context>
chip_gen: v7x
topology: tpu7x:2x2x1
jax: 0.10.0
libtpu: 0.0.40
codegen_flags: <defaults>
</compile_context>

<pallas_src>
import jax
import jax.numpy as jnp
from jax import lax
from jax.experimental import pallas as pl
from jax.experimental.pallas import tpu as pltpu
import numpy as np


def _make_kernel(ch, dil, H, W, precision):
    """Builds the SSnbt forward kernel for one (1, C, H*W) image block."""
    C = 2 * ch
    HW = H * W

    def kernel(wa_ref, wb_ref, sh_ref, x_ref, o_ref):
        # wa_ref/wb_ref: (2, 2, ch, 3*ch) f32 VMEM   (branch, block, out, tap*in)
        # sh_ref:        (2, 2, ch, 1)    f32 VMEM   folded BN shift
        # x_ref/o_ref:   (1, C, H*W)      f32 VMEM

        # Boundary masks: built once per (conv axis, dilation) and reused by
        # both branches (JAX does not CSE iota/broadcast, so hoist them here).
        flat = lax.broadcasted_iota(jnp.int32, (1, HW), 1)
        col = flat % W
        mask_cache = {}

        def edge_masks(d, along_w):
            key = (along_w, d)
            if key not in mask_cache:
                if along_w:
                    mask_cache[key] = (col < d, col >= W - d)
                else:
                    mask_cache[key] = (flat < d * W, flat >= (H - d) * W)
            return mask_cache[key]

        def stacked_taps(p, d, along_w):
            # p: (ch, HW).  Returns the stacked 3-tap operand (3*ch, HW) =
            # [p[.-d]; p; p[.+d]] along the conv axis with zero padding at the
            # image border.  pltpu.roll runs in the XLU slot (off the MXU/VALU
            # path); the wrapped-around values are exactly the positions the
            # hoisted masks zero out (including W-row crossings, since the
            # spatial dims are flattened onto one lane axis).
            lo_bad, hi_bad = edge_masks(d, along_w)
            s = d if along_w else d * W
            t_lo = jnp.where(lo_bad, 0.0, pltpu.roll(p, s, axis=1))
            t_hi = jnp.where(hi_bad, 0.0, pltpu.roll(p, HW - s, axis=1))
            return jnp.concatenate([t_lo, p, t_hi], axis=0)

        def mix(w_ref, b, blk, taps):
            # (ch, 3*ch) @ (3*ch, HW) on the MXU, f32 accumulation.
            return jnp.dot(w_ref[b, blk], taps,
                           preferred_element_type=jnp.float32,
                           precision=precision)

        for b in range(2):                          # left / right branch
            p = x_ref[0, pl.ds(b * ch, ch), :]      # (ch, HW) branch input
            for blk in range(2):                    # two FactorizedConvBlocks
                d = 1 if blk == 0 else dil
                # Conv(1,3) along W (dilation d) -> ReLU.
                p = mix(wa_ref, b, blk, stacked_taps(p, d, along_w=True))
                p = jnp.maximum(p, 0.0)
                # Conv(3,1) along H (BN scale pre-folded) + BN shift.
                p = mix(wb_ref, b, blk, stacked_taps(p, d, along_w=False))
                p = p + sh_ref[b, blk]
                if blk == 0:                        # first block ends in ReLU
                    p = jnp.maximum(p, 0.0)
            # Dropout2d == identity.  Residual read deferred to the write site
            # (the input block is resident in VMEM; a cheap re-load instead of
            # holding all C planes live across the whole kernel).
            y = jnp.maximum(x_ref[0, pl.ds(b * ch, ch), :] + p, 0.0)
            y = y.astype(o_ref.dtype)
            # channel_shuffle(groups=2): cat channel b*ch+c -> out channel 2c+b
            for c in range(ch):
                o_ref[0, pl.ds(2 * c + b, 1), :] = y[c:c + 1, :]

    return kernel


def ssnbt_block(x, wA, wB, gamma, beta, run_mean, run_var, dilation, eps=1e-5):
    """SSnbtBlock forward (inference).

    x  : (N, C, H, W) float32, NCHW (C even)
    wA : (2, 2, ch, ch, 1, 3)  conv(1,3) weights, indexed (branch, block, out, in)
    wB : (2, 2, ch, ch, 3, 1)  conv(3,1) weights
    gamma/beta/run_mean/run_var : (2, 2, ch) BatchNorm params per (branch, block)
    """
    N, C, H, W = x.shape
    ch = C // 2
    HW = H * W
    assert C == 2 * ch and wA.shape == (2, 2, ch, ch, 1, 3)
    assert wB.shape == (2, 2, ch, ch, 3, 1)

    # Fold inference BatchNorm into the (3,1) conv weights + a per-channel shift.
    scale = gamma / jnp.sqrt(run_var + eps)                        # (2, 2, ch)
    shift = beta - run_mean * scale

    # Weight tiles laid out so W_mat[o, k*ch + i] = w[o, i, k], matching the
    # [tap0; tap1; tap2] stacking of the conv operand in the kernel.
    wa = (wA.reshape(2, 2, ch, ch, 3)
            .transpose(0, 1, 2, 4, 3).reshape(2, 2, ch, 3 * ch))
    wb = ((wB.reshape(2, 2, ch, ch, 3) * scale[:, :, :, None, None])
            .transpose(0, 1, 2, 4, 3).reshape(2, 2, ch, 3 * ch))
    sh = shift.reshape(2, 2, ch, 1)

    # Free NCHW reshape so the kernel sees a lane-dense (C, H*W) slab.
    x_flat = x.reshape(N, C, HW).astype(jnp.float32)

    flops = 2 * N * 2 * 2 * 2 * ch * (3 * ch) * HW                 # 8 small convs
    bytes_accessed = 2 * N * C * HW * 4 + 4 * int(wa.size + wb.size + sh.size)
    vmem_needed = (4 * C * HW * 4                                  # dbl-buffered in+out
                   + 4 * int(wa.size + wb.size + sh.size) + (2 << 20))
    # TODO(synk): if vmem_needed exceeds ~64 MiB (real LEDNet resolutions), add
    #             a halo'd row-tile grid axis instead of raising the limit.
    vmem_limit = int(min(max(vmem_needed, 16 << 20), 64 << 20))

    def run(precision):
        kernel = _make_kernel(ch, dilation, H, W, precision)
        return pl.pallas_call(
            kernel,
            out_shape=jax.ShapeDtypeStruct((N, C, HW), jnp.float32),
            grid=(N,),
            in_specs=[
                pl.BlockSpec((2, 2, ch, 3 * ch), lambda n: (0, 0, 0, 0)),
                pl.BlockSpec((2, 2, ch, 3 * ch), lambda n: (0, 0, 0, 0)),
                pl.BlockSpec((2, 2, ch, 1), lambda n: (0, 0, 0, 0)),
                pl.BlockSpec((1, C, HW), lambda n: (n, 0, 0)),
            ],
            out_specs=pl.BlockSpec((1, C, HW), lambda n: (n, 0, 0)),
            compiler_params=pltpu.CompilerParams(
                dimension_semantics=("parallel",),
                vmem_limit_bytes=vmem_limit),
            cost_estimate=pl.CostEstimate(flops=flops, transcendentals=0,
                                          bytes_accessed=bytes_accessed),
        )(wa.astype(jnp.float32), wb.astype(jnp.float32),
          sh.astype(jnp.float32), x_flat)

    try:
        out = run(lax.Precision.HIGHEST)     # exact f32 MXU accumulation
    except Exception:                        # older lowerings: default precision
        out = run(None)
    return out.reshape(N, C, H, W)


# ----------------------------- pure-JAX reference -----------------------------
def _factorized_block_ref(x, wA, wB, gamma, beta, mean, var, dil, use_relu, eps):
    dn = ("NCHW", "OIHW", "NCHW")
    hp = lax.Precision.HIGHEST
    y = lax.conv_general_dilated(x, wA, (1, 1), ((0, 0), (dil, dil)),
                                 rhs_dilation=(1, dil), dimension_numbers=dn,
                                 precision=hp)
    y = jnp.maximum(y, 0.0)
    y = lax.conv_general_dilated(y, wB, (1, 1), ((dil, dil), (0, 0)),
                                 rhs_dilation=(dil, 1), dimension_numbers=dn,
                                 precision=hp)
    y = (y - mean[None, :, None, None]) / jnp.sqrt(var[None, :, None, None] + eps)
    y = y * gamma[None, :, None, None] + beta[None, :, None, None]
    if use_relu:
        y = jnp.maximum(y, 0.0)
    return y


def _reference(x, wA, wB, gamma, beta, mean, var, dilation, eps=1e-5):
    N, C, H, W = x.shape
    ch = C // 2
    outs = []
    for b in range(2):
        h = x[:, b * ch:(b + 1) * ch]
        h = _factorized_block_ref(h, wA[b, 0], wB[b, 0], gamma[b, 0], beta[b, 0],
                                  mean[b, 0], var[b, 0], 1, True, eps)
        h = _factorized_block_ref(h, wA[b, 1], wB[b, 1], gamma[b, 1], beta[b, 1],
                                  mean[b, 1], var[b, 1], dilation, False, eps)
        outs.append(h)
    y = jnp.maximum(x + jnp.concatenate(outs, axis=1), 0.0)
    return y.reshape(N, 2, ch, H, W).transpose(0, 2, 1, 3, 4).reshape(N, C, H, W)


if __name__ == "__main__":
    # ch=8 keeps the stacked conv operand sublane-aligned (3*ch = 24 rows) and
    # exercises the MXU channel-mixing path.
    N, C, H, W = 2, 16, 16, 16
    ch = C // 2
    dilation = 2

    key = jax.random.PRNGKey(0)
    ks = jax.random.split(key, 7)
    x = jax.random.normal(ks[0], (N, C, H, W), jnp.float32)
    wA = 0.3 * jax.random.normal(ks[1], (2, 2, ch, ch, 1, 3), jnp.float32)
    wB = 0.3 * jax.random.normal(ks[2], (2, 2, ch, ch, 3, 1), jnp.float32)
    gamma = 1.0 + 0.1 * jax.random.normal(ks[3], (2, 2, ch), jnp.float32)
    beta = 0.1 * jax.random.normal(ks[4], (2, 2, ch), jnp.float32)
    run_mean = 0.1 * jax.random.normal(ks[5], (2, 2, ch), jnp.float32)
    run_var = jnp.abs(1.0 + 0.1 * jax.random.normal(ks[6], (2, 2, ch), jnp.float32))

    out = jax.block_until_ready(
        ssnbt_block(x, wA, wB, gamma, beta, run_mean, run_var, dilation))
    ref = jax.block_until_ready(
        _reference(x, wA, wB, gamma, beta, run_mean, run_var, dilation))

    np.testing.assert_allclose(np.asarray(out), np.asarray(ref),
                               rtol=1e-3, atol=1e-3)
    print("KERNEL_OK")
</pallas_src>

<mosaic_0001>
module attributes {stable_mosaic.version = 11 : i64} {
  func.func @kernel(%arg0: i32, %arg1: memref<2x2x8x24xf32, #tpu.memory_space<vmem>>, %arg2: memref<2x2x8x24xf32, #tpu.memory_space<vmem>>, %arg3: memref<2x2x8x1xf32, #tpu.memory_space<vmem>>, %arg4: memref<1x16x256xf32, #tpu.memory_space<vmem>>, %arg5: memref<1x16x256xf32, #tpu.memory_space<vmem>>) attributes {dimension_semantics = [#tpu.dimension_semantics<parallel>], iteration_bounds = array<i64: 2>, scalar_prefetch = 0 : i64, scratch_operands = 0 : i64, tpu.core_type = #tpu.core_type<tc>, window_params = [{pipeline_mode = #tpu.pipeline_mode<synchronous>, transform_indices = @transform_0, window_bounds = array<i64: 2, 2, 8, 24>}, {pipeline_mode = #tpu.pipeline_mode<synchronous>, transform_indices = @transform_1, window_bounds = array<i64: 2, 2, 8, 24>}, {pipeline_mode = #tpu.pipeline_mode<synchronous>, transform_indices = @transform_2, window_bounds = array<i64: 2, 2, 8, 1>}, {transform_indices = @transform_3, window_bounds = array<i64: 1, 16, 256>}, {transform_indices = @transform_4, window_bounds = array<i64: 1, 16, 256>}]} {
    %0 = tpu.iota {dimensions = array<i32: 1>} : vector<1x256xi32>
    %c16_i32 = arith.constant 16 : i32
    %c0_i32 = arith.constant 0 : i32
    %1 = arith.cmpi eq, %c16_i32, %c0_i32 : i32
    %c1_i32 = arith.constant 1 : i32
    %2 = arith.select %1, %c1_i32, %c16_i32 : i32
    %3 = vector.broadcast %2 : i32 to vector<1x256xi32>
    %4 = arith.remsi %0, %3 : vector<1x256xi32>
    %c0_i32_0 = arith.constant 0 : i32
    %5 = vector.broadcast %c0_i32_0 : i32 to vector<1x256xi32>
    %6 = arith.cmpi ne, %4, %5 : vector<1x256xi32>
    %c0_i32_1 = arith.constant 0 : i32
    %7 = vector.broadcast %c0_i32_1 : i32 to vector<1x256xi32>
    %8 = arith.cmpi slt, %4, %7 : vector<1x256xi32>
    %c0_i32_2 = arith.constant 0 : i32
    %9 = arith.cmpi slt, %2, %c0_i32_2 : i32
    %10 = vector.broadcast %9 : i1 to vector<1x256xi1>
    %11 = vector.broadcast %10 : vector<1x256xi1> to vector<1x256xi1>
    %12 = arith.xori %8, %11 : vector<1x256xi1>
    %13 = arith.andi %12, %6 : vector<1x256xi1>
    %14 = vector.broadcast %2 : i32 to vector<1x256xi32>
    %15 = arith.addi %4, %14 : vector<1x256xi32>
    %16 = arith.select %13, %15, %4 : vector<1x256xi1>, vector<1x256xi32>
    %c0 = arith.constant 0 : index
    %c0_3 = arith.constant 0 : index
    %c0_4 = arith.constant 0 : index
    %17 = vector.load %arg4[%c0, %c0_3, %c0_4] : memref<1x16x256xf32, #tpu.memory_space<vmem>>, vector<1x8x256xf32>
    %18 = vector.shape_cast %17 : vector<1x8x256xf32> to vector<8x256xf32>
    %c1_i32_5 = arith.constant 1 : i32
    %19 = vector.broadcast %c1_i32_5 : i32 to vector<1x256xi32>
    %20 = arith.cmpi slt, %16, %19 : vector<1x256xi32>
    %c15_i32 = arith.constant 15 : i32
    %21 = vector.broadcast %c15_i32 : i32 to vector<1x256xi32>
    %22 = arith.cmpi sge, %16, %21 : vector<1x256xi32>
    %c1_i32_6 = arith.constant 1 : i32
    %23 = tpu.dynamic_rotate %18 by %c1_i32_6 dim 1 : vector<8x256xf32>, i32 -> vector<8x256xf32>
    %cst = arith.constant 0.000000e+00 : f32
    %24 = vector.shape_cast %20 : vector<1x256xi1> to vector<1x256xi1>
    %25 = vector.broadcast %24 : vector<1x256xi1> to vector<8x256xi1>
    %26 = vector.broadcast %cst : f32 to vector<8x256xf32>
    %27 = arith.select %25, %26, %23 : vector<8x256xi1>, vector<8x256xf32>
    %c255_i32 = arith.constant 255 : i32
    %28 = tpu.dynamic_rotate %18 by %c255_i32 dim 1 : vector<8x256xf32>, i32 -> vector<8x256xf32>
    %cst_7 = arith.constant 0.000000e+00 : f32
    %29 = vector.shape_cast %22 : vector<1x256xi1> to vector<1x256xi1>
    %30 = vector.broadcast %29 : vector<1x256xi1> to vector<8x256xi1>
    %31 = vector.broadcast %cst_7 : f32 to vector<8x256xf32>
    %32 = arith.select %30, %31, %28 : vector<8x256xi1>, vector<8x256xf32>
    %33 = tpu.concatenate %27, %18, %32 in 0 : vector<8x256xf32>, vector<8x256xf32>, vector<8x256xf32> -> vector<24x256xf32>
    %c0_8 = arith.constant 0 : index
    %c0_9 = arith.constant 0 : index
    %c0_10 = arith.constant 0 : index
    %c0_11 = arith.constant 0 : index
    %34 = vector.load %arg1[%c0_8, %c0_9, %c0_10, %c0_11] : memref<2x2x8x24xf32, #tpu.memory_space<vmem>>, vector<1x1x8x24xf32>
    %35 = vector.shape_cast %34 : vector<1x1x8x24xf32> to vector<8x24xf32>
    %cst_12 = arith.constant dense<0.000000e+00> : vector<8x256xf32>
    %36 = tpu.matmul %35, %33, %cst_12 {dimension_numbers = #tpu.dot_dimension_numbers<[1], [0], [0], [1], [0, 0, 1, 1], [], []>, precision = #tpu.contract_precision<fp32>} : vector<8x24xf32>, vector<24x256xf32>, vector<8x256xf32> -> vector<8x256xf32>
    %cst_13 = arith.constant 0.000000e+00 : f32
    %37 = vector.broadcast %cst_13 : f32 to vector<8x256xf32>
    %38 = arith.maximumf %36, %37 : vector<8x256xf32>
    %c16_i32_14 = arith.constant 16 : i32
    %39 = vector.broadcast %c16_i32_14 : i32 to vector<1x256xi32>
    %40 = arith.cmpi slt, %0, %39 : vector<1x256xi32>
    %c240_i32 = arith.constant 240 : i32
    %41 = vector.broadcast %c240_i32 : i32 to vector<1x256xi32>
    %42 = arith.cmpi sge, %0, %41 : vector<1x256xi32>
    %c16_i32_15 = arith.constant 16 : i32
    %43 = tpu.dynamic_rotate %38 by %c16_i32_15 dim 1 : vector<8x256xf32>, i32 -> vector<8x256xf32>
    %cst_16 = arith.constant 0.000000e+00 : f32
    %44 = vector.shape_cast %40 : vector<1x256xi1> to vector<1x256xi1>
    %45 = vector.broadcast %44 : vector<1x256xi1> to vector<8x256xi1>
    %46 = vector.broadcast %cst_16 : f32 to vector<8x256xf32>
    %47 = arith.select %45, %46, %43 : vector<8x256xi1>, vector<8x256xf32>
    %c240_i32_17 = arith.constant 240 : i32
    %48 = tpu.dynamic_rotate %38 by %c240_i32_17 dim 1 : vector<8x256xf32>, i32 -> vector<8x256xf32>
    %cst_18 = arith.constant 0.000000e+00 : f32
    %49 = vector.shape_cast %42 : vector<1x256xi1> to vector<1x256xi1>
    %50 = vector.broadcast %49 : vector<1x256xi1> to vector<8x256xi1>
    %51 = vector.broadcast %cst_18 : f32 to vector<8x256xf32>
    %52 = arith.select %50, %51, %48 : vector<8x256xi1>, vector<8x256xf32>
    %53 = tpu.concatenate %47, %38, %52 in 0 : vector<8x256xf32>, vector<8x256xf32>, vector<8x256xf32> -> vector<24x256xf32>
    %c0_19 = arith.constant 0 : index
    %c0_20 = arith.constant 0 : index
    %c0_21 = arith.constant 0 : index
    %c0_22 = arith.constant 0 : index
    %54 = vector.load %arg2[%c0_19, %c0_20, %c0_21, %c0_22] : memref<2x2x8x24xf32, #tpu.memory_space<vmem>>, vector<1x1x8x24xf32>
    %55 = vector.shape_cast %54 : vector<1x1x8x24xf32> to vector<8x24xf32>
    %cst_23 = arith.constant dense<0.000000e+00> : vector<8x256xf32>
    %56 = tpu.matmul %55, %53, %cst_23 {dimension_numbers = #tpu.dot_dimension_numbers<[1], [0], [0], [1], [0, 0, 1, 1], [], []>, precision = #tpu.contract_precision<fp32>} : vector<8x24xf32>, vector<24x256xf32>, vector<8x256xf32> -> vector<8x256xf32>
    %c0_24 = arith.constant 0 : index
    %c0_25 = arith.constant 0 : index
    %c0_26 = arith.constant 0 : index
    %c0_27 = arith.constant 0 : index
    %57 = vector.load %arg3[%c0_24, %c0_25, %c0_26, %c0_27] : memref<2x2x8x1xf32, #tpu.memory_space<vmem>>, vector<1x1x8x1xf32>
    %58 = vector.shape_cast %57 : vector<1x1x8x1xf32> to vector<8x1xf32>
    %59 = vector.broadcast %58 : vector<8x1xf32> to vector<8x256xf32>
    %60 = arith.addf %56, %59 : vector<8x256xf32>
    %cst_28 = arith.constant 0.000000e+00 : f32
    %61 = vector.broadcast %cst_28 : f32 to vector<8x256xf32>
    %62 = arith.maximumf %60, %61 : vector<8x256xf32>
    %c2_i32 = arith.constant 2 : i32
    %63 = vector.broadcast %c2_i32 : i32 to vector<1x256xi32>
    %64 = arith.cmpi slt, %16, %63 : vector<1x256xi32>
    %c14_i32 = arith.constant 14 : i32
    %65 = vector.broadcast %c14_i32 : i32 to vector<1x256xi32>
    %66 = arith.cmpi sge, %16, %65 : vector<1x256xi32>
    %c2_i32_29 = arith.constant 2 : i32
    %67 = tpu.dynamic_rotate %62 by %c2_i32_29 dim 1 : vector<8x256xf32>, i32 -> vector<8x256xf32>
    %cst_30 = arith.constant 0.000000e+00 : f32
    %68 = vector.shape_cast %64 : vector<1x256xi1> to vector<1x256xi1>
    %69 = vector.broadcast %68 : vector<1x256xi1> to vector<8x256xi1>
    %70 = vector.broadcast %cst_30 : f32 to vector<8x256xf32>
    %71 = arith.select %69, %70, %67 : vector<8x256xi1>, vector<8x256xf32>
    %c254_i32 = arith.constant 254 : i32
    %72 = tpu.dynamic_rotate %62 by %c254_i32 dim 1 : vector<8x256xf32>, i32 -> vector<8x256xf32>
    %cst_31 = arith.constant 0.000000e+00 : f32
    %73 = vector.shape_cast %66 : vector<1x256xi1> to vector<1x256xi1>
    %74 = vector.broadcast %73 : vector<1x256xi1> to vector<8x256xi1>
    %75 = vector.broadcast %cst_31 : f32 to vector<8x256xf32>
    %76 = arith.select %74, %75, %72 : vector<8x256xi1>, vector<8x256xf32>
    %77 = tpu.concatenate %71, %62, %76 in 0 : vector<8x256xf32>, vector<8x256xf32>, vector<8x256xf32> -> vector<24x256xf32>
    %c0_32 = arith.constant 0 : index
    %c1 = arith.constant 1 : index
    %c0_33 = arith.constant 0 : index
    %c0_34 = arith.constant 0 : index
    %78 = vector.load %arg1[%c0_32, %c1, %c0_33, %c0_34] : memref<2x2x8x24xf32, #tpu.memory_space<vmem>>, vector<1x1x8x24xf32>
    %79 = vector.shape_cast %78 : vector<1x1x8x24xf32> to vector<8x24xf32>
    %cst_35 = arith.constant dense<0.000000e+00> : vector<8x256xf32>
    %80 = tpu.matmul %79, %77, %cst_35 {dimension_numbers = #tpu.dot_dimension_numbers<[1], [0], [0], [1], [0, 0, 1, 1], [], []>, precision = #tpu.contract_precision<fp32>} : vector<8x24xf32>, vector<24x256xf32>, vector<8x256xf32> -> vector<8x256xf32>
    %cst_36 = arith.constant 0.000000e+00 : f32
    %81 = vector.broadcast %cst_36 : f32 to vector<8x256xf32>
    %82 = arith.maximumf %80, %81 : vector<8x256xf32>
    %c32_i32 = arith.constant 32 : i32
    %83 = vector.broadcast %c32_i32 : i32 to vector<1x256xi32>
    %84 = arith.cmpi slt, %0, %83 : vector<1x256xi32>
    %c224_i32 = arith.constant 224 : i32
    %85 = vector.broadcast %c224_i32 : i32 to vector<1x256xi32>
    %86 = arith.cmpi sge, %0, %85 : vector<1x256xi32>
    %c32_i32_37 = arith.constant 32 : i32
    %87 = tpu.dynamic_rotate %82 by %c32_i32_37 dim 1 : vector<8x256xf32>, i32 -> vector<8x256xf32>
    %cst_38 = arith.constant 0.000000e+00 : f32
    %88 = vector.shape_cast %84 : vector<1x256xi1> to vector<1x256xi1>
    %89 = vector.broadcast %88 : vector<1x256xi1> to vector<8x256xi1>
    %90 = vector.broadcast %cst_38 : f32 to vector<8x256xf32>
    %91 = arith.select %89, %90, %87 : vector<8x256xi1>, vector<8x256xf32>
    %c224_i32_39 = arith.constant 224 : i32
    %92 = tpu.dynamic_rotate %82 by %c224_i32_39 dim 1 : vector<8x256xf32>, i32 -> vector<8x256xf32>
    %cst_40 = arith.constant 0.000000e+00 : f32
    %93 = vector.shape_cast %86 : vector<1x256xi1> to vector<1x256xi1>
    %94 = vector.broadcast %93 : vector<1x256xi1> to vector<8x256xi1>
    %95 = vector.broadcast %cst_40 : f32 to vector<8x256xf32>
    %96 = arith.select %94, %95, %92 : vector<8x256xi1>, vector<8x256xf32>
    %97 = tpu.concatenate %91, %82, %96 in 0 : vector<8x256xf32>, vector<8x256xf32>, vector<8x256xf32> -> vector<24x256xf32>
    %c0_41 = arith.constant 0 : index
    %c1_42 = arith.constant 1 : index
    %c0_43 = arith.constant 0 : index
    %c0_44 = arith.constant 0 : index
    %98 = vector.load %arg2[%c0_41, %c1_42, %c0_43, %c0_44] : memref<2x2x8x24xf32, #tpu.memory_space<vmem>>, vector<1x1x8x24xf32>
    %99 = vector.shape_cast %98 : vector<1x1x8x24xf32> to vector<8x24xf32>
    %cst_45 = arith.constant dense<0.000000e+00> : vector<8x256xf32>
    %100 = tpu.matmul %99, %97, %cst_45 {dimension_numbers = #tpu.dot_dimension_numbers<[1], [0], [0], [1], [0, 0, 1, 1], [], []>, precision = #tpu.contract_precision<fp32>} : vector<8x24xf32>, vector<24x256xf32>, vector<8x256xf32> -> vector<8x256xf32>
    %c0_46 = arith.constant 0 : index
    %c1_47 = arith.constant 1 : index
    %c0_48 = arith.constant 0 : index
    %c0_49 = arith.constant 0 : index
    %101 = vector.load %arg3[%c0_46, %c1_47, %c0_48, %c0_49] : memref<2x2x8x1xf32, #tpu.memory_space<vmem>>, vector<1x1x8x1xf32>
    %102 = vector.shape_cast %101 : vector<1x1x8x1xf32> to vector<8x1xf32>
    %103 = vector.broadcast %102 : vector<8x1xf32> to vector<8x256xf32>
    %104 = arith.addf %100, %103 : vector<8x256xf32>
    %c0_50 = arith.constant 0 : index
    %c0_51 = arith.constant 0 : index
    %c0_52 = arith.constant 0 : index
    %105 = vector.load %arg4[%c0_50, %c0_51, %c0_52] : memref<1x16x256xf32, #tpu.memory_space<vmem>>, vector<1x8x256xf32>
    %106 = vector.shape_cast %105 : vector<1x8x256xf32> to vector<8x256xf32>
    %107 = arith.addf %106, %104 : vector<8x256xf32>
    %cst_53 = arith.constant 0.000000e+00 : f32
    %108 = vector.broadcast %cst_53 : f32 to vector<8x256xf32>
    %109 = arith.maximumf %107, %108 : vector<8x256xf32>
    %110 = vector.extract_strided_slice %109 {offsets = [0, 0], sizes = [1, 256], strides = [1, 1]} : vector<8x256xf32> to vector<1x256xf32>
    %c0_54 = arith.constant 0 : index
    %c0_55 = arith.constant 0 : index
    %c0_56 = arith.constant 0 : index
    %111 = vector.load %arg5[%c0_54, %c0_55, %c0_56] : memref<1x16x256xf32, #tpu.memory_space<vmem>>, vector<1x1x256xf32>
    %112 = vector.shape_cast %111 : vector<1x1x256xf32> to vector<1x256xf32>
    %113 = vector.shape_cast %110 : vector<1x256xf32> to vector<1x1x256xf32>
    tpu.vector_store %arg5[%c0_54, %c0_55, %c0_56], %113 {strides = array<i32>} : memref<1x16x256xf32, #tpu.memory_space<vmem>>, vector<1x1x256xf32>,
    %114 = vector.extract_strided_slice %109 {offsets = [1, 0], sizes = [1, 256], strides = [1, 1]} : vector<8x256xf32> to vector<1x256xf32>
    %c0_57 = arith.constant 0 : index
    %c2 = arith.constant 2 : index
    %c0_58 = arith.constant 0 : index
    %115 = vector.load %arg5[%c0_57, %c2, %c0_58] : memref<1x16x256xf32, #tpu.memory_space<vmem>>, vector<1x1x256xf32>
    %116 = vector.shape_cast %115 : vector<1x1x256xf32> to vector<1x256xf32>
    %117 = vector.shape_cast %114 : vector<1x256xf32> to vector<1x1x256xf32>
    tpu.vector_store %arg5[%c0_57, %c2, %c0_58], %117 {strides = array<i32>} : memref<1x16x256xf32, #tpu.memory_space<vmem>>, vector<1x1x256xf32>,
    %118 = vector.extract_strided_slice %109 {offsets = [2, 0], sizes = [1, 256], strides = [1, 1]} : vector<8x256xf32> to vector<1x256xf32>
    %c0_59 = arith.constant 0 : index
    %c4 = arith.constant 4 : index
    %c0_60 = arith.constant 0 : index
    %119 = vector.load %arg5[%c0_59, %c4, %c0_60] : memref<1x16x256xf32, #tpu.memory_space<vmem>>, vector<1x1x256xf32>
    %120 = vector.shape_cast %119 : vector<1x1x256xf32> to vector<1x256xf32>
    %121 = vector.shape_cast %118 : vector<1x256xf32> to vector<1x1x256xf32>
    tpu.vector_store %arg5[%c0_59, %c4, %c0_60], %121 {strides = array<i32>} : memref<1x16x256xf32, #tpu.memory_space<vmem>>, vector<1x1x256xf32>,
    %122 = vector.extract_strided_slice %109 {offsets = [3, 0], sizes = [1, 256], strides = [1, 1]} : vector<8x256xf32> to vector<1x256xf32>
    %c0_61 = arith.constant 0 : index
    %c6 = arith.constant 6 : index
    %c0_62 = arith.constant 0 : index
    %123 = vector.load %arg5[%c0_61, %c6, %c0_62] : memref<1x16x256xf32, #tpu.memory_space<vmem>>, vector<1x1x256xf32>
    %124 = vector.shape_cast %123 : vector<1x1x256xf32> to vector<1x256xf32>
    %125 = vector.shape_cast %122 : vector<1x256xf32> to vector<1x1x256xf32>
    tpu.vector_store %arg5[%c0_61, %c6, %c0_62], %125 {strides = array<i32>} : memref<1x16x256xf32, #tpu.memory_space<vmem>>, vector<1x1x256xf32>,
    %126 = vector.extract_strided_slice %109 {offsets = [4, 0], sizes = [1, 256], strides = [1, 1]} : vector<8x256xf32> to vector<1x256xf32>
    %c0_63 = arith.constant 0 : index
    %c8 = arith.constant 8 : index
    %c0_64 = arith.constant 0 : index
    %127 = vector.load %arg5[%c0_63, %c8, %c0_64] : memref<1x16x256xf32, #tpu.memory_space<vmem>>, vector<1x1x256xf32>
    %128 = vector.shape_cast %127 : vector<1x1x256xf32> to vector<1x256xf32>
    %129 = vector.shape_cast %126 : vector<1x256xf32> to vector<1x1x256xf32>
    tpu.vector_store %arg5[%c0_63, %c8, %c0_64], %129 {strides = array<i32>} : memref<1x16x256xf32, #tpu.memory_space<vmem>>, vector<1x1x256xf32>,
    %130 = vector.extract_strided_slice %109 {offsets = [5, 0], sizes = [1, 256], strides = [1, 1]} : vector<8x256xf32> to vector<1x256xf32>
    %c0_65 = arith.constant 0 : index
    %c10 = arith.constant 10 : index
    %c0_66 = arith.constant 0 : index
    %131 = vector.load %arg5[%c0_65, %c10, %c0_66] : memref<1x16x256xf32, #tpu.memory_space<vmem>>, vector<1x1x256xf32>
    %132 = vector.shape_cast %131 : vector<1x1x256xf32> to vector<1x256xf32>
    %133 = vector.shape_cast %130 : vector<1x256xf32> to vector<1x1x256xf32>
    tpu.vector_store %arg5[%c0_65, %c10, %c0_66], %133 {strides = array<i32>} : memref<1x16x256xf32, #tpu.memory_space<vmem>>, vector<1x1x256xf32>,
    %134 = vector.extract_strided_slice %109 {offsets = [6, 0], sizes = [1, 256], strides = [1, 1]} : vector<8x256xf32> to vector<1x256xf32>
    %c0_67 = arith.constant 0 : index
    %c12 = arith.constant 12 : index
    %c0_68 = arith.constant 0 : index
    %135 = vector.load %arg5[%c0_67, %c12, %c0_68] : memref<1x16x256xf32, #tpu.memory_space<vmem>>, vector<1x1x256xf32>
    %136 = vector.shape_cast %135 : vector<1x1x256xf32> to vector<1x256xf32>
    %137 = vector.shape_cast %134 : vector<1x256xf32> to vector<1x1x256xf32>
    tpu.vector_store %arg5[%c0_67, %c12, %c0_68], %137 {strides = array<i32>} : memref<1x16x256xf32, #tpu.memory_space<vmem>>, vector<1x1x256xf32>,
    %138 = vector.extract_strided_slice %109 {offsets = [7, 0], sizes = [1, 256], strides = [1, 1]} : vector<8x256xf32> to vector<1x256xf32>
    %c0_69 = arith.constant 0 : index
    %c14 = arith.constant 14 : index
    %c0_70 = arith.constant 0 : index
    %139 = vector.load %arg5[%c0_69, %c14, %c0_70] : memref<1x16x256xf32, #tpu.memory_space<vmem>>, vector<1x1x256xf32>
    %140 = vector.shape_cast %139 : vector<1x1x256xf32> to vector<1x256xf32>
    %141 = vector.shape_cast %138 : vector<1x256xf32> to vector<1x1x256xf32>
    tpu.vector_store %arg5[%c0_69, %c14, %c0_70], %141 {strides = array<i32>} : memref<1x16x256xf32, #tpu.memory_space<vmem>>, vector<1x1x256xf32>,
    %c0_71 = arith.constant 0 : index
    %c8_72 = arith.constant 8 : index
    %c0_73 = arith.constant 0 : index
    %142 = vector.load %arg4[%c0_71, %c8_72, %c0_73] : memref<1x16x256xf32, #tpu.memory_space<vmem>>, vector<1x8x256xf32>
    %143 = vector.shape_cast %142 : vector<1x8x256xf32> to vector<8x256xf32>
    %c1_i32_74 = arith.constant 1 : i32
    %144 = tpu.dynamic_rotate %143 by %c1_i32_74 dim 1 : vector<8x256xf32>, i32 -> vector<8x256xf32>
    %cst_75 = arith.constant 0.000000e+00 : f32
    %145 = vector.shape_cast %20 : vector<1x256xi1> to vector<1x256xi1>
    %146 = vector.broadcast %145 : vector<1x256xi1> to vector<8x256xi1>
    %147 = vector.broadcast %cst_75 : f32 to vector<8x256xf32>
    %148 = arith.select %146, %147, %144 : vector<8x256xi1>, vector<8x256xf32>
    %c255_i32_76 = arith.constant 255 : i32
    %149 = tpu.dynamic_rotate %143 by %c255_i32_76 dim 1 : vector<8x256xf32>, i32 -> vector<8x256xf32>
    %cst_77 = arith.constant 0.000000e+00 : f32
    %150 = vector.shape_cast %22 : vector<1x256xi1> to vector<1x256xi1>
    %151 = vector.broadcast %150 : vector<1x256xi1> to vector<8x256xi1>
    %152 = vector.broadcast %cst_77 : f32 to vector<8x256xf32>
    %153 = arith.select %151, %152, %149 : vector<8x256xi1>, vector<8x256xf32>
    %154 = tpu.concatenate %148, %143, %153 in 0 : vector<8x256xf32>, vector<8x256xf32>, vector<8x256xf32> -> vector<24x256xf32>
    %c1_78 = arith.constant 1 : index
    %c0_79 = arith.constant 0 : index
    %c0_80 = arith.constant 0 : index
    %c0_81 = arith.constant 0 : index
    %155 = vector.load %arg1[%c1_78, %c0_79, %c0_80, %c0_81] : memref<2x2x8x24xf32, #tpu.memory_space<vmem>>, vector<1x1x8x24xf32>
    %156 = vector.shape_cast %155 : vector<1x1x8x24xf32> to vector<8x24xf32>
    %cst_82 = arith.constant dense<0.000000e+00> : vector<8x256xf32>
    %157 = tpu.matmul %156, %154, %cst_82 {dimension_numbers = #tpu.dot_dimension_numbers<[1], [0], [0], [1], [0, 0, 1, 1], [], []>, precision = #tpu.contract_precision<fp32>} : vector<8x24xf32>, vector<24x256xf32>, vector<8x256xf32> -> vector<8x256xf32>
    %cst_83 = arith.constant 0.000000e+00 : f32
    %158 = vector.broadcast %cst_83 : f32 to vector<8x256xf32>
    %159 = arith.maximumf %157, %158 : vector<8x256xf32>
    %c16_i32_84 = arith.constant 16 : i32
    %160 = tpu.dynamic_rotate %159 by %c16_i32_84 dim 1 : vector<8x256xf32>, i32 -> vector<8x256xf32>
    %cst_85 = arith.constant 0.000000e+00 : f32
    %161 = vector.shape_cast %40 : vector<1x256xi1> to vector<1x256xi1>
    %162 = vector.broadcast %161 : vector<1x256xi1> to vector<8x256xi1>
    %163 = vector.broadcast %cst_85 : f32 to vector<8x256xf32>
    %164 = arith.select %162, %163, %160 : vector<8x256xi1>, vector<8x256xf32>
    %c240_i32_86 = arith.constant 240 : i32
    %165 = tpu.dynamic_rotate %159 by %c240_i32_86 dim 1 : vector<8x256xf32>, i32 -> vector<8x256xf32>
    %cst_87 = arith.constant 0.000000e+00 : f32
    %166 = vector.shape_cast %42 : vector<1x256xi1> to vector<1x256xi1>
    %167 = vector.broadcast %166 : vector<1x256xi1> to vector<8x256xi1>
    %168 = vector.broadcast %cst_87 : f32 to vector<8x256xf32>
    %169 = arith.select %167, %168, %165 : vector<8x256xi1>, vector<8x256xf32>
    %170 = tpu.concatenate %164, %159, %169 in 0 : vector<8x256xf32>, vector<8x256xf32>, vector<8x256xf32> -> vector<24x256xf32>
    %c1_88 = arith.constant 1 : index
    %c0_89 = arith.constant 0 : index
    %c0_90 = arith.constant 0 : index
    %c0_91 = arith.constant 0 : index
    %171 = vector.load %arg2[%c1_88, %c0_89, %c0_90, %c0_91] : memref<2x2x8x24xf32, #tpu.memory_space<vmem>>, vector<1x1x8x24xf32>
    %172 = vector.shape_cast %171 : vector<1x1x8x24xf32> to vector<8x24xf32>
    %cst_92 = arith.constant dense<0.000000e+00> : vector<8x256xf32>
    %173 = tpu.matmul %172, %170, %cst_92 {dimension_numbers = #tpu.dot_dimension_numbers<[1], [0], [0], [1], [0, 0, 1, 1], [], []>, precision = #tpu.contract_precision<fp32>} : vector<8x24xf32>, vector<24x256xf32>, vector<8x256xf32> -> vector<8x256xf32>
    %c1_93 = arith.constant 1 : index
    %c0_94 = arith.constant 0 : index
    %c0_95 = arith.constant 0 : index
    %c0_96 = arith.constant 0 : index
    %174 = vector.load %arg3[%c1_93, %c0_94, %c0_95, %c0_96] : memref<2x2x8x1xf32, #tpu.memory_space<vmem>>, vector<1x1x8x1xf32>
    %175 = vector.shape_cast %174 : vector<1x1x8x1xf32> to vector<8x1xf32>
    %176 = vector.broadcast %175 : vector<8x1xf32> to vector<8x256xf32>
    %177 = arith.addf %173, %176 : vector<8x256xf32>
    %cst_97 = arith.constant 0.000000e+00 : f32
    %178 = vector.broadcast %cst_97 : f32 to vector<8x256xf32>
    %179 = arith.maximumf %177, %178 : vector<8x256xf32>
    %c2_i32_98 = arith.constant 2 : i32
    %180 = tpu.dynamic_rotate %179 by %c2_i32_98 dim 1 : vector<8x256xf32>, i32 -> vector<8x256xf32>
    %cst_99 = arith.constant 0.000000e+00 : f32
    %181 = vector.shape_cast %64 : vector<1x256xi1> to vector<1x256xi1>
    %182 = vector.broadcast %181 : vector<1x256xi1> to vector<8x256xi1>
    %183 = vector.broadcast %cst_99 : f32 to vector<8x256xf32>
    %184 = arith.select %182, %183, %180 : vector<8x256xi1>, vector<8x256xf32>
    %c254_i32_100 = arith.constant 254 : i32
    %185 = tpu.dynamic_rotate %179 by %c254_i32_100 dim 1 : vector<8x256xf32>, i32 -> vector<8x256xf32>
    %cst_101 = arith.constant 0.000000e+00 : f32
    %186 = vector.shape_cast %66 : vector<1x256xi1> to vector<1x256xi1>
    %187 = vector.broadcast %186 : vector<1x256xi1> to vector<8x256xi1>
    %188 = vector.broadcast %cst_101 : f32 to vector<8x256xf32>
    %189 = arith.select %187, %188, %185 : vector<8x256xi1>, vector<8x256xf32>
    %190 = tpu.concatenate %184, %179, %189 in 0 : vector<8x256xf32>, vector<8x256xf32>, vector<8x256xf32> -> vector<24x256xf32>
    %c1_102 = arith.constant 1 : index
    %c1_103 = arith.constant 1 : index
    %c0_104 = arith.constant 0 : index
    %c0_105 = arith.constant 0 : index
    %191 = vector.load %arg1[%c1_102, %c1_103, %c0_104, %c0_105] : memref<2x2x8x24xf32, #tpu.memory_space<vmem>>, vector<1x1x8x24xf32>
    %192 = vector.shape_cast %191 : vector<1x1x8x24xf32> to vector<8x24xf32>
    %cst_106 = arith.constant dense<0.000000e+00> : vector<8x256xf32>
    %193 = tpu.matmul %192, %190, %cst_106 {dimension_numbers = #tpu.dot_dimension_numbers<[1], [0], [0], [1], [0, 0, 1, 1], [], []>, precision = #tpu.contract_precision<fp32>} : vector<8x24xf32>, vector<24x256xf32>, vector<8x256xf32> -> vector<8x256xf32>
    %cst_107 = arith.constant 0.000000e+00 : f32
    %194 = vector.broadcast %cst_107 : f32 to vector<8x256xf32>
    %195 = arith.maximumf %193, %194 : vector<8x256xf32>
    %c32_i32_108 = arith.constant 32 : i32
    %196 = tpu.dynamic_rotate %195 by %c32_i32_108 dim 1 : vector<8x256xf32>, i32 -> vector<8x256xf32>
    %cst_109 = arith.constant 0.000000e+00 : f32
    %197 = vector.shape_cast %84 : vector<1x256xi1> to vector<1x256xi1>
    %198 = vector.broadcast %197 : vector<1x256xi1> to vector<8x256xi1>
    %199 = vector.broadcast %cst_109 : f32 to vector<8x256xf32>
    %200 = arith.select %198, %199, %196 : vector<8x256xi1>, vector<8x256xf32>
    %c224_i32_110 = arith.constant 224 : i32
    %201 = tpu.dynamic_rotate %195 by %c224_i32_110 dim 1 : vector<8x256xf32>, i32 -> vector<8x256xf32>
    %cst_111 = arith.constant 0.000000e+00 : f32
    %202 = vector.shape_cast %86 : vector<1x256xi1> to vector<1x256xi1>
    %203 = vector.broadcast %202 : vector<1x256xi1> to vector<8x256xi1>
    %204 = vector.broadcast %cst_111 : f32 to vector<8x256xf32>
    %205 = arith.select %203, %204, %201 : vector<8x256xi1>, vector<8x256xf32>
    %206 = tpu.concatenate %200, %195, %205 in 0 : vector<8x256xf32>, vector<8x256xf32>, vector<8x256xf32> -> vector<24x256xf32>
    %c1_112 = arith.constant 1 : index
    %c1_113 = arith.constant 1 : index
    %c0_114 = arith.constant 0 : index
    %c0_115 = arith.constant 0 : index
    %207 = vector.load %arg2[%c1_112, %c1_113, %c0_114, %c0_115] : memref<2x2x8x24xf32, #tpu.memory_space<vmem>>, vector<1x1x8x24xf32>
    %208 = vector.shape_cast %207 : vector<1x1x8x24xf32> to vector<8x24xf32>
    %cst_116 = arith.constant dense<0.000000e+00> : vector<8x256xf32>
    %209 = tpu.matmul %208, %206, %cst_116 {dimension_numbers = #tpu.dot_dimension_numbers<[1], [0], [0], [1], [0, 0, 1, 1], [], []>, precision = #tpu.contract_precision<fp32>} : vector<8x24xf32>, vector<24x256xf32>, vector<8x256xf32> -> vector<8x256xf32>
    %c1_117 = arith.constant 1 : index
    %c1_118 = arith.constant 1 : index
    %c0_119 = arith.constant 0 : index
    %c0_120 = arith.constant 0 : index
    %210 = vector.load %arg3[%c1_117, %c1_118, %c0_119, %c0_120] : memref<2x2x8x1xf32, #tpu.memory_space<vmem>>, vector<1x1x8x1xf32>
    %211 = vector.shape_cast %210 : vector<1x1x8x1xf32> to vector<8x1xf32>
    %212 = vector.broadcast %211 : vector<8x1xf32> to vector<8x256xf32>
    %213 = arith.addf %209, %212 : vector<8x256xf32>
    %c0_121 = arith.constant 0 : index
    %c8_122 = arith.constant 8 : index
    %c0_123 = arith.constant 0 : index
    %214 = vector.load %arg4[%c0_121, %c8_122, %c0_123] : memref<1x16x256xf32, #tpu.memory_space<vmem>>, vector<1x8x256xf32>
    %215 = vector.shape_cast %214 : vector<1x8x256xf32> to vector<8x256xf32>
    %216 = arith.addf %215, %213 : vector<8x256xf32>
    %cst_124 = arith.constant 0.000000e+00 : f32
    %217 = vector.broadcast %cst_124 : f32 to vector<8x256xf32>
    %218 = arith.maximumf %216, %217 : vector<8x256xf32>
    %219 = vector.extract_strided_slice %218 {offsets = [0, 0], sizes = [1, 256], strides = [1, 1]} : vector<8x256xf32> to vector<1x256xf32>
    %c0_125 = arith.constant 0 : index
    %c1_126 = arith.constant 1 : index
    %c0_127 = arith.constant 0 : index
    %220 = vector.load %arg5[%c0_125, %c1_126, %c0_127] : memref<1x16x256xf32, #tpu.memory_space<vmem>>, vector<1x1x256xf32>
    %221 = vector.shape_cast %220 : vector<1x1x256xf32> to vector<1x256xf32>
    %222 = vector.shape_cast %219 : vector<1x256xf32> to vector<1x1x256xf32>
    tpu.vector_store %arg5[%c0_125, %c1_126, %c0_127], %222 {strides = array<i32>} : memref<1x16x256xf32, #tpu.memory_space<vmem>>, vector<1x1x256xf32>,
    %223 = vector.extract_strided_slice %218 {offsets = [1, 0], sizes = [1, 256], strides = [1, 1]} : vector<8x256xf32> to vector<1x256xf32>
    %c0_128 = arith.constant 0 : index
    %c3 = arith.constant 3 : index
    %c0_129 = arith.constant 0 : index
    %224 = vector.load %arg5[%c0_128, %c3, %c0_129] : memref<1x16x256xf32, #tpu.memory_space<vmem>>, vector<1x1x256xf32>
    %225 = vector.shape_cast %224 : vector<1x1x256xf32> to vector<1x256xf32>
    %226 = vector.shape_cast %223 : vector<1x256xf32> to vector<1x1x256xf32>
    tpu.vector_store %arg5[%c0_128, %c3, %c0_129], %226 {strides = array<i32>} : memref<1x16x256xf32, #tpu.memory_space<vmem>>, vector<1x1x256xf32>,
    %227 = vector.extract_strided_slice %218 {offsets = [2, 0], sizes = [1, 256], strides = [1, 1]} : vector<8x256xf32> to vector<1x256xf32>
    %c0_130 = arith.constant 0 : index
    %c5 = arith.constant 5 : index
    %c0_131 = arith.constant 0 : index
    %228 = vector.load %arg5[%c0_130, %c5, %c0_131] : memref<1x16x256xf32, #tpu.memory_space<vmem>>, vector<1x1x256xf32>
    %229 = vector.shape_cast %228 : vector<1x1x256xf32> to vector<1x256xf32>
    %230 = vector.shape_cast %227 : vector<1x256xf32> to vector<1x1x256xf32>
    tpu.vector_store %arg5[%c0_130, %c5, %c0_131], %230 {strides = array<i32>} : memref<1x16x256xf32, #tpu.memory_space<vmem>>, vector<1x1x256xf32>,
    %231 = vector.extract_strided_slice %218 {offsets = [3, 0], sizes = [1, 256], strides = [1, 1]} : vector<8x256xf32> to vector<1x256xf32>
    %c0_132 = arith.constant 0 : index
    %c7 = arith.constant 7 : index
    %c0_133 = arith.constant 0 : index
    %232 = vector.load %arg5[%c0_132, %c7, %c0_133] : memref<1x16x256xf32, #tpu.memory_space<vmem>>, vector<1x1x256xf32>
    %233 = vector.shape_cast %232 : vector<1x1x256xf32> to vector<1x256xf32>
    %234 = vector.shape_cast %231 : vector<1x256xf32> to vector<1x1x256xf32>
    tpu.vector_store %arg5[%c0_132, %c7, %c0_133], %234 {strides = array<i32>} : memref<1x16x256xf32, #tpu.memory_space<vmem>>, vector<1x1x256xf32>,
    %235 = vector.extract_strided_slice %218 {offsets = [4, 0], sizes = [1, 256], strides = [1, 1]} : vector<8x256xf32> to vector<1x256xf32>
    %c0_134 = arith.constant 0 : index
    %c9 = arith.constant 9 : index
    %c0_135 = arith.constant 0 : index
    %236 = vector.load %arg5[%c0_134, %c9, %c0_135] : memref<1x16x256xf32, #tpu.memory_space<vmem>>, vector<1x1x256xf32>
    %237 = vector.shape_cast %236 : vector<1x1x256xf32> to vector<1x256xf32>
    %238 = vector.shape_cast %235 : vector<1x256xf32> to vector<1x1x256xf32>
    tpu.vector_store %arg5[%c0_134, %c9, %c0_135], %238 {strides = array<i32>} : memref<1x16x256xf32, #tpu.memory_space<vmem>>, vector<1x1x256xf32>,
    %239 = vector.extract_strided_slice %218 {offsets = [5, 0], sizes = [1, 256], strides = [1, 1]} : vector<8x256xf32> to vector<1x256xf32>
    %c0_136 = arith.constant 0 : index
    %c11 = arith.constant 11 : index
    %c0_137 = arith.constant 0 : index
    %240 = vector.load %arg5[%c0_136, %c11, %c0_137] : memref<1x16x256xf32, #tpu.memory_space<vmem>>, vector<1x1x256xf32>
    %241 = vector.shape_cast %240 : vector<1x1x256xf32> to vector<1x256xf32>
    %242 = vector.shape_cast %239 : vector<1x256xf32> to vector<1x1x256xf32>
    tpu.vector_store %arg5[%c0_136, %c11, %c0_137], %242 {strides = array<i32>} : memref<1x16x256xf32, #tpu.memory_space<vmem>>, vector<1x1x256xf32>,
    %243 = vector.extract_strided_slice %218 {offsets = [6, 0], sizes = [1, 256], strides = [1, 1]} : vector<8x256xf32> to vector<1x256xf32>
    %c0_138 = arith.constant 0 : index
    %c13 = arith.constant 13 : index
    %c0_139 = arith.constant 0 : index
    %244 = vector.load %arg5[%c0_138, %c13, %c0_139] : memref<1x16x256xf32, #tpu.memory_space<vmem>>, vector<1x1x256xf32>
    %245 = vector.shape_cast %244 : vector<1x1x256xf32> to vector<1x256xf32>
    %246 = vector.shape_cast %243 : vector<1x256xf32> to vector<1x1x256xf32>
    tpu.vector_store %arg5[%c0_138, %c13, %c0_139], %246 {strides = array<i32>} : memref<1x16x256xf32, #tpu.memory_space<vmem>>, vector<1x1x256xf32>,
    %247 = vector.extract_strided_slice %218 {offsets = [7, 0], sizes = [1, 256], strides = [1, 1]} : vector<8x256xf32> to vector<1x256xf32>
    %c0_140 = arith.constant 0 : index
    %c15 = arith.constant 15 : index
    %c0_141 = arith.constant 0 : index
    %248 = vector.load %arg5[%c0_140, %c15, %c0_141] : memref<1x16x256xf32, #tpu.memory_space<vmem>>, vector<1x1x256xf32>
    %249 = vector.shape_cast %248 : vector<1x1x256xf32> to vector<1x256xf32>
    %250 = vector.shape_cast %247 : vector<1x256xf32> to vector<1x1x256xf32>
    tpu.vector_store %arg5[%c0_140, %c15, %c0_141], %250 {strides = array<i32>} : memref<1x16x256xf32, #tpu.memory_space<vmem>>, vector<1x1x256xf32>,
    return
  }
  func.func @transform_0(%arg0: i32) -> (i32, i32, i32, i32) {
    %c0_i32 = arith.constant 0 : i32
    %c0_i32_0 = arith.constant 0 : i32
    %c0_i32_1 = arith.constant 0 : i32
    %c0_i32_2 = arith.constant 0 : i32
    %c0_i32_3 = arith.constant 0 : i32
    return %c0_i32, %c0_i32_0, %c0_i32_1, %c0_i32_2 : i32, i32, i32, i32
  }
  func.func @transform_1(%arg0: i32) -> (i32, i32, i32, i32) {
    %c0_i32 = arith.constant 0 : i32
    %c0_i32_0 = arith.constant 0 : i32
    %c0_i32_1 = arith.constant 0 : i32
    %c0_i32_2 = arith.constant 0 : i32
    %c0_i32_3 = arith.constant 0 : i32
    return %c0_i32, %c0_i32_0, %c0_i32_1, %c0_i32_2 : i32, i32, i32, i32
  }
  func.func @transform_2(%arg0: i32) -> (i32, i32, i32, i32) {
    %c0_i32 = arith.constant 0 : i32
    %c0_i32_0 = arith.constant 0 : i32
    %c0_i32_1 = arith.constant 0 : i32
    %c0_i32_2 = arith.constant 0 : i32
    %c0_i32_3 = arith.constant 0 : i32
    return %c0_i32, %c0_i32_0, %c0_i32_1, %c0_i32_2 : i32, i32, i32, i32
  }
  func.func @transform_3(%arg0: i32) -> (i32, i32, i32) {
    %c0_i32 = arith.constant 0 : i32
    %c0_i32_0 = arith.constant 0 : i32
    %c0_i32_1 = arith.constant 0 : i32
    return %arg0, %c0_i32, %c0_i32_0 : i32, i32, i32
  }
  func.func @transform_4(%arg0: i32) -> (i32, i32, i32) {
    %c0_i32 = arith.constant 0 : i32
    %c0_i32_0 = arith.constant 0 : i32
    %c0_i32_1 = arith.constant 0 : i32
    return %arg0, %c0_i32, %c0_i32_0 : i32, i32, i32
  }
}

module attributes {stable_mosaic.version = 11 : i64} {
  func.func @kernel(%arg0: i32, %arg1: memref<2x2x8x24xf32, #tpu.memory_space<vmem>>, %arg2: memref<2x2x8x24xf32, #tpu.memory_space<vmem>>, %arg3: memref<2x2x8x1xf32, #tpu.memory_space<vmem>>, %arg4: memref<1x16x256xf32, #tpu.memory_space<vmem>>, %arg5: memref<1x16x256xf32, #tpu.memory_space<vmem>>) attributes {dimension_semantics = [#tpu.dimension_semantics<parallel>], iteration_bounds = array<i64: 2>, scalar_prefetch = 0 : i64, scratch_operands = 0 : i64, tpu.core_type = #tpu.core_type<tc>, window_params = [{pipeline_mode = #tpu.pipeline_mode<synchronous>, transform_indices = @transform_0, window_bounds = array<i64: 2, 2, 8, 24>}, {pipeline_mode = #tpu.pipeline_mode<synchronous>, transform_indices = @transform_1, window_bounds = array<i64: 2, 2, 8, 24>}, {pipeline_mode = #tpu.pipeline_mode<synchronous>, transform_indices = @transform_2, window_bounds = array<i64: 2, 2, 8, 1>}, {transform_indices = @transform_3, window_bounds = array<i64: 1, 16, 256>}, {transform_indices = @transform_4, window_bounds = array<i64: 1, 16, 256>}]} {
    %0 = tpu.iota {dimensions = array<i32: 1>} : vector<1x256xi32>
    %c16_i32 = arith.constant 16 : i32
    %c0_i32 = arith.constant 0 : i32
    %1 = arith.cmpi eq, %c16_i32, %c0_i32 : i32
    %c1_i32 = arith.constant 1 : i32
    %2 = arith.select %1, %c1_i32, %c16_i32 : i32
    %3 = vector.broadcast %2 : i32 to vector<1x256xi32>
    %4 = arith.remsi %0, %3 : vector<1x256xi32>
    %c0_i32_0 = arith.constant 0 : i32
    %5 = vector.broadcast %c0_i32_0 : i32 to vector<1x256xi32>
    %6 = arith.cmpi ne, %4, %5 : vector<1x256xi32>
    %c0_i32_1 = arith.constant 0 : i32
    %7 = vector.broadcast %c0_i32_1 : i32 to vector<1x256xi32>
    %8 = arith.cmpi slt, %4, %7 : vector<1x256xi32>
    %c0_i32_2 = arith.constant 0 : i32
    %9 = arith.cmpi slt, %2, %c0_i32_2 : i32
    %10 = vector.broadcast %9 : i1 to vector<1x256xi1>
    %11 = vector.broadcast %10 : vector<1x256xi1> to vector<1x256xi1>
    %12 = arith.xori %8, %11 : vector<1x256xi1>
    %13 = arith.andi %12, %6 : vector<1x256xi1>
    %14 = vector.broadcast %2 : i32 to vector<1x256xi32>
    %15 = arith.addi %4, %14 : vector<1x256xi32>
    %16 = arith.select %13, %15, %4 : vector<1x256xi1>, vector<1x256xi32>
    %c0 = arith.constant 0 : index
    %c0_3 = arith.constant 0 : index
    %c0_4 = arith.constant 0 : index
    %17 = vector.load %arg4[%c0, %c0_3, %c0_4] : memref<1x16x256xf32, #tpu.memory_space<vmem>>, vector<1x8x256xf32>
    %18 = vector.shape_cast %17 : vector<1x8x256xf32> to vector<8x256xf32>
    %c1_i32_5 = arith.constant 1 : i32
    %19 = vector.broadcast %c1_i32_5 : i32 to vector<1x256xi32>
    %20 = arith.cmpi slt, %16, %19 : vector<1x256xi32>
    %c15_i32 = arith.constant 15 : i32
    %21 = vector.broadcast %c15_i32 : i32 to vector<1x256xi32>
    %22 = arith.cmpi sge, %16, %21 : vector<1x256xi32>
    %c1_i32_6 = arith.constant 1 : i32
    %23 = tpu.dynamic_rotate %18 by %c1_i32_6 dim 1 : vector<8x256xf32>, i32 -> vector<8x256xf32>
    %cst = arith.constant 0.000000e+00 : f32
    %24 = vector.shape_cast %20 : vector<1x256xi1> to vector<1x256xi1>
    %25 = vector.broadcast %24 : vector<1x256xi1> to vector<8x256xi1>
    %26 = vector.broadcast %cst : f32 to vector<8x256xf32>
    %27 = arith.select %25, %26, %23 : vector<8x256xi1>, vector<8x256xf32>
    %c255_i32 = arith.constant 255 : i32
    %28 = tpu.dynamic_rotate %18 by %c255_i32 dim 1 : vector<8x256xf32>, i32 -> vector<8x256xf32>
    %cst_7 = arith.constant 0.000000e+00 : f32
    %29 = vector.shape_cast %22 : vector<1x256xi1> to vector<1x256xi1>
    %30 = vector.broadcast %29 : vector<1x256xi1> to vector<8x256xi1>
    %31 = vector.broadcast %cst_7 : f32 to vector<8x256xf32>
    %32 = arith.select %30, %31, %28 : vector<8x256xi1>, vector<8x256xf32>
    %33 = tpu.concatenate %27, %18, %32 in 0 : vector<8x256xf32>, vector<8x256xf32>, vector<8x256xf32> -> vector<24x256xf32>
    %c0_8 = arith.constant 0 : index
    %c0_9 = arith.constant 0 : index
    %c0_10 = arith.constant 0 : index
    %c0_11 = arith.constant 0 : index
    %34 = vector.load %arg1[%c0_8, %c0_9, %c0_10, %c0_11] : memref<2x2x8x24xf32, #tpu.memory_space<vmem>>, vector<1x1x8x24xf32>
    %35 = vector.shape_cast %34 : vector<1x1x8x24xf32> to vector<8x24xf32>
    %cst_12 = arith.constant dense<0.000000e+00> : vector<8x256xf32>
    %36 = tpu.matmul %35, %33, %cst_12 {dimension_numbers = #tpu.dot_dimension_numbers<[1], [0], [0], [1], [0, 0, 1, 1], [], []>} : vector<8x24xf32>, vector<24x256xf32>, vector<8x256xf32> -> vector<8x256xf32>
    %cst_13 = arith.constant 0.000000e+00 : f32
    %37 = vector.broadcast %cst_13 : f32 to vector<8x256xf32>
    %38 = arith.maximumf %36, %37 : vector<8x256xf32>
    %c16_i32_14 = arith.constant 16 : i32
    %39 = vector.broadcast %c16_i32_14 : i32 to vector<1x256xi32>
    %40 = arith.cmpi slt, %0, %39 : vector<1x256xi32>
    %c240_i32 = arith.constant 240 : i32
    %41 = vector.broadcast %c240_i32 : i32 to vector<1x256xi32>
    %42 = arith.cmpi sge, %0, %41 : vector<1x256xi32>
    %c16_i32_15 = arith.constant 16 : i32
    %43 = tpu.dynamic_rotate %38 by %c16_i32_15 dim 1 : vector<8x256xf32>, i32 -> vector<8x256xf32>
    %cst_16 = arith.constant 0.000000e+00 : f32
    %44 = vector.shape_cast %40 : vector<1x256xi1> to vector<1x256xi1>
    %45 = vector.broadcast %44 : vector<1x256xi1> to vector<8x256xi1>
    %46 = vector.broadcast %cst_16 : f32 to vector<8x256xf32>
    %47 = arith.select %45, %46, %43 : vector<8x256xi1>, vector<8x256xf32>
    %c240_i32_17 = arith.constant 240 : i32
    %48 = tpu.dynamic_rotate %38 by %c240_i32_17 dim 1 : vector<8x256xf32>, i32 -> vector<8x256xf32>
    %cst_18 = arith.constant 0.000000e+00 : f32
    %49 = vector.shape_cast %42 : vector<1x256xi1> to vector<1x256xi1>
    %50 = vector.broadcast %49 : vector<1x256xi1> to vector<8x256xi1>
    %51 = vector.broadcast %cst_18 : f32 to vector<8x256xf32>
    %52 = arith.select %50, %51, %48 : vector<8x256xi1>, vector<8x256xf32>
    %53 = tpu.concatenate %47, %38, %52 in 0 : vector<8x256xf32>, vector<8x256xf32>, vector<8x256xf32> -> vector<24x256xf32>
    %c0_19 = arith.constant 0 : index
    %c0_20 = arith.constant 0 : index
    %c0_21 = arith.constant 0 : index
    %c0_22 = arith.constant 0 : index
    %54 = vector.load %arg2[%c0_19, %c0_20, %c0_21, %c0_22] : memref<2x2x8x24xf32, #tpu.memory_space<vmem>>, vector<1x1x8x24xf32>
    %55 = vector.shape_cast %54 : vector<1x1x8x24xf32> to vector<8x24xf32>
    %cst_23 = arith.constant dense<0.000000e+00> : vector<8x256xf32>
    %56 = tpu.matmul %55, %53, %cst_23 {dimension_numbers = #tpu.dot_dimension_numbers<[1], [0], [0], [1], [0, 0, 1, 1], [], []>} : vector<8x24xf32>, vector<24x256xf32>, vector<8x256xf32> -> vector<8x256xf32>
    %c0_24 = arith.constant 0 : index
    %c0_25 = arith.constant 0 : index
    %c0_26 = arith.constant 0 : index
    %c0_27 = arith.constant 0 : index
    %57 = vector.load %arg3[%c0_24, %c0_25, %c0_26, %c0_27] : memref<2x2x8x1xf32, #tpu.memory_space<vmem>>, vector<1x1x8x1xf32>
    %58 = vector.shape_cast %57 : vector<1x1x8x1xf32> to vector<8x1xf32>
    %59 = vector.broadcast %58 : vector<8x1xf32> to vector<8x256xf32>
    %60 = arith.addf %56, %59 : vector<8x256xf32>
    %cst_28 = arith.constant 0.000000e+00 : f32
    %61 = vector.broadcast %cst_28 : f32 to vector<8x256xf32>
    %62 = arith.maximumf %60, %61 : vector<8x256xf32>
    %c2_i32 = arith.constant 2 : i32
    %63 = vector.broadcast %c2_i32 : i32 to vector<1x256xi32>
    %64 = arith.cmpi slt, %16, %63 : vector<1x256xi32>
    %c14_i32 = arith.constant 14 : i32
    %65 = vector.broadcast %c14_i32 : i32 to vector<1x256xi32>
    %66 = arith.cmpi sge, %16, %65 : vector<1x256xi32>
    %c2_i32_29 = arith.constant 2 : i32
    %67 = tpu.dynamic_rotate %62 by %c2_i32_29 dim 1 : vector<8x256xf32>, i32 -> vector<8x256xf32>
    %cst_30 = arith.constant 0.000000e+00 : f32
    %68 = vector.shape_cast %64 : vector<1x256xi1> to vector<1x256xi1>
    %69 = vector.broadcast %68 : vector<1x256xi1> to vector<8x256xi1>
    %70 = vector.broadcast %cst_30 : f32 to vector<8x256xf32>
    %71 = arith.select %69, %70, %67 : vector<8x256xi1>, vector<8x256xf32>
    %c254_i32 = arith.constant 254 : i32
    %72 = tpu.dynamic_rotate %62 by %c254_i32 dim 1 : vector<8x256xf32>, i32 -> vector<8x256xf32>
    %cst_31 = arith.constant 0.000000e+00 : f32
    %73 = vector.shape_cast %66 : vector<1x256xi1> to vector<1x256xi1>
    %74 = vector.broadcast %73 : vector<1x256xi1> to vector<8x256xi1>
    %75 = vector.broadcast %cst_31 : f32 to vector<8x256xf32>
    %76 = arith.select %74, %75, %72 : vector<8x256xi1>, vector<8x256xf32>
    %77 = tpu.concatenate %71, %62, %76 in 0 : vector<8x256xf32>, vector<8x256xf32>, vector<8x256xf32> -> vector<24x256xf32>
    %c0_32 = arith.constant 0 : index
    %c1 = arith.constant 1 : index
    %c0_33 = arith.constant 0 : index
    %c0_34 = arith.constant 0 : index
    %78 = vector.load %arg1[%c0_32, %c1, %c0_33, %c0_34] : memref<2x2x8x24xf32, #tpu.memory_space<vmem>>, vector<1x1x8x24xf32>
    %79 = vector.shape_cast %78 : vector<1x1x8x24xf32> to vector<8x24xf32>
    %cst_35 = arith.constant dense<0.000000e+00> : vector<8x256xf32>
    %80 = tpu.matmul %79, %77, %cst_35 {dimension_numbers = #tpu.dot_dimension_numbers<[1], [0], [0], [1], [0, 0, 1, 1], [], []>} : vector<8x24xf32>, vector<24x256xf32>, vector<8x256xf32> -> vector<8x256xf32>
    %cst_36 = arith.constant 0.000000e+00 : f32
    %81 = vector.broadcast %cst_36 : f32 to vector<8x256xf32>
    %82 = arith.maximumf %80, %81 : vector<8x256xf32>
    %c32_i32 = arith.constant 32 : i32
    %83 = vector.broadcast %c32_i32 : i32 to vector<1x256xi32>
    %84 = arith.cmpi slt, %0, %83 : vector<1x256xi32>
    %c224_i32 = arith.constant 224 : i32
    %85 = vector.broadcast %c224_i32 : i32 to vector<1x256xi32>
    %86 = arith.cmpi sge, %0, %85 : vector<1x256xi32>
    %c32_i32_37 = arith.constant 32 : i32
    %87 = tpu.dynamic_rotate %82 by %c32_i32_37 dim 1 : vector<8x256xf32>, i32 -> vector<8x256xf32>
    %cst_38 = arith.constant 0.000000e+00 : f32
    %88 = vector.shape_cast %84 : vector<1x256xi1> to vector<1x256xi1>
    %89 = vector.broadcast %88 : vector<1x256xi1> to vector<8x256xi1>
    %90 = vector.broadcast %cst_38 : f32 to vector<8x256xf32>
    %91 = arith.select %89, %90, %87 : vector<8x256xi1>, vector<8x256xf32>
    %c224_i32_39 = arith.constant 224 : i32
    %92 = tpu.dynamic_rotate %82 by %c224_i32_39 dim 1 : vector<8x256xf32>, i32 -> vector<8x256xf32>
    %cst_40 = arith.constant 0.000000e+00 : f32
    %93 = vector.shape_cast %86 : vector<1x256xi1> to vector<1x256xi1>
    %94 = vector.broadcast %93 : vector<1x256xi1> to vector<8x256xi1>
    %95 = vector.broadcast %cst_40 : f32 to vector<8x256xf32>
    %96 = arith.select %94, %95, %92 : vector<8x256xi1>, vector<8x256xf32>
    %97 = tpu.concatenate %91, %82, %96 in 0 : vector<8x256xf32>, vector<8x256xf32>, vector<8x256xf32> -> vector<24x256xf32>
    %c0_41 = arith.constant 0 : index
    %c1_42 = arith.constant 1 : index
    %c0_43 = arith.constant 0 : index
    %c0_44 = arith.constant 0 : index
    %98 = vector.load %arg2[%c0_41, %c1_42, %c0_43, %c0_44] : memref<2x2x8x24xf32, #tpu.memory_space<vmem>>, vector<1x1x8x24xf32>
    %99 = vector.shape_cast %98 : vector<1x1x8x24xf32> to vector<8x24xf32>
    %cst_45 = arith.constant dense<0.000000e+00> : vector<8x256xf32>
    %100 = tpu.matmul %99, %97, %cst_45 {dimension_numbers = #tpu.dot_dimension_numbers<[1], [0], [0], [1], [0, 0, 1, 1], [], []>} : vector<8x24xf32>, vector<24x256xf32>, vector<8x256xf32> -> vector<8x256xf32>
    %c0_46 = arith.constant 0 : index
    %c1_47 = arith.constant 1 : index
    %c0_48 = arith.constant 0 : index
    %c0_49 = arith.constant 0 : index
    %101 = vector.load %arg3[%c0_46, %c1_47, %c0_48, %c0_49] : memref<2x2x8x1xf32, #tpu.memory_space<vmem>>, vector<1x1x8x1xf32>
    %102 = vector.shape_cast %101 : vector<1x1x8x1xf32> to vector<8x1xf32>
    %103 = vector.broadcast %102 : vector<8x1xf32> to vector<8x256xf32>
    %104 = arith.addf %100, %103 : vector<8x256xf32>
    %c0_50 = arith.constant 0 : index
    %c0_51 = arith.constant 0 : index
    %c0_52 = arith.constant 0 : index
    %105 = vector.load %arg4[%c0_50, %c0_51, %c0_52] : memref<1x16x256xf32, #tpu.memory_space<vmem>>, vector<1x8x256xf32>
    %106 = vector.shape_cast %105 : vector<1x8x256xf32> to vector<8x256xf32>
    %107 = arith.addf %106, %104 : vector<8x256xf32>
    %cst_53 = arith.constant 0.000000e+00 : f32
    %108 = vector.broadcast %cst_53 : f32 to vector<8x256xf32>
    %109 = arith.maximumf %107, %108 : vector<8x256xf32>
    %110 = vector.extract_strided_slice %109 {offsets = [0, 0], sizes = [1, 256], strides = [1, 1]} : vector<8x256xf32> to vector<1x256xf32>
    %c0_54 = arith.constant 0 : index
    %c0_55 = arith.constant 0 : index
    %c0_56 = arith.constant 0 : index
    %111 = vector.load %arg5[%c0_54, %c0_55, %c0_56] : memref<1x16x256xf32, #tpu.memory_space<vmem>>, vector<1x1x256xf32>
    %112 = vector.shape_cast %111 : vector<1x1x256xf32> to vector<1x256xf32>
    %113 = vector.shape_cast %110 : vector<1x256xf32> to vector<1x1x256xf32>
    tpu.vector_store %arg5[%c0_54, %c0_55, %c0_56], %113 {strides = array<i32>} : memref<1x16x256xf32, #tpu.memory_space<vmem>>, vector<1x1x256xf32>,
    %114 = vector.extract_strided_slice %109 {offsets = [1, 0], sizes = [1, 256], strides = [1, 1]} : vector<8x256xf32> to vector<1x256xf32>
    %c0_57 = arith.constant 0 : index
    %c2 = arith.constant 2 : index
    %c0_58 = arith.constant 0 : index
    %115 = vector.load %arg5[%c0_57, %c2, %c0_58] : memref<1x16x256xf32, #tpu.memory_space<vmem>>, vector<1x1x256xf32>
    %116 = vector.shape_cast %115 : vector<1x1x256xf32> to vector<1x256xf32>
    %117 = vector.shape_cast %114 : vector<1x256xf32> to vector<1x1x256xf32>
    tpu.vector_store %arg5[%c0_57, %c2, %c0_58], %117 {strides = array<i32>} : memref<1x16x256xf32, #tpu.memory_space<vmem>>, vector<1x1x256xf32>,
    %118 = vector.extract_strided_slice %109 {offsets = [2, 0], sizes = [1, 256], strides = [1, 1]} : vector<8x256xf32> to vector<1x256xf32>
    %c0_59 = arith.constant 0 : index
    %c4 = arith.constant 4 : index
    %c0_60 = arith.constant 0 : index
    %119 = vector.load %arg5[%c0_59, %c4, %c0_60] : memref<1x16x256xf32, #tpu.memory_space<vmem>>, vector<1x1x256xf32>
    %120 = vector.shape_cast %119 : vector<1x1x256xf32> to vector<1x256xf32>
    %121 = vector.shape_cast %118 : vector<1x256xf32> to vector<1x1x256xf32>
    tpu.vector_store %arg5[%c0_59, %c4, %c0_60], %121 {strides = array<i32>} : memref<1x16x256xf32, #tpu.memory_space<vmem>>, vector<1x1x256xf32>,
    %122 = vector.extract_strided_slice %109 {offsets = [3, 0], sizes = [1, 256], strides = [1, 1]} : vector<8x256xf32> to vector<1x256xf32>
    %c0_61 = arith.constant 0 : index
    %c6 = arith.constant 6 : index
    %c0_62 = arith.constant 0 : index
    %123 = vector.load %arg5[%c0_61, %c6, %c0_62] : memref<1x16x256xf32, #tpu.memory_space<vmem>>, vector<1x1x256xf32>
    %124 = vector.shape_cast %123 : vector<1x1x256xf32> to vector<1x256xf32>
    %125 = vector.shape_cast %122 : vector<1x256xf32> to vector<1x1x256xf32>
    tpu.vector_store %arg5[%c0_61, %c6, %c0_62], %125 {strides = array<i32>} : memref<1x16x256xf32, #tpu.memory_space<vmem>>, vector<1x1x256xf32>,
    %126 = vector.extract_strided_slice %109 {offsets = [4, 0], sizes = [1, 256], strides = [1, 1]} : vector<8x256xf32> to vector<1x256xf32>
    %c0_63 = arith.constant 0 : index
    %c8 = arith.constant 8 : index
    %c0_64 = arith.constant 0 : index
    %127 = vector.load %arg5[%c0_63, %c8, %c0_64] : memref<1x16x256xf32, #tpu.memory_space<vmem>>, vector<1x1x256xf32>
    %128 = vector.shape_cast %127 : vector<1x1x256xf32> to vector<1x256xf32>
    %129 = vector.shape_cast %126 : vector<1x256xf32> to vector<1x1x256xf32>
    tpu.vector_store %arg5[%c0_63, %c8, %c0_64], %129 {strides = array<i32>} : memref<1x16x256xf32, #tpu.memory_space<vmem>>, vector<1x1x256xf32>,
    %130 = vector.extract_strided_slice %109 {offsets = [5, 0], sizes = [1, 256], strides = [1, 1]} : vector<8x256xf32> to vector<1x256xf32>
    %c0_65 = arith.constant 0 : index
    %c10 = arith.constant 10 : index
    %c0_66 = arith.constant 0 : index
    %131 = vector.load %arg5[%c0_65, %c10, %c0_66] : memref<1x16x256xf32, #tpu.memory_space<vmem>>, vector<1x1x256xf32>
    %132 = vector.shape_cast %131 : vector<1x1x256xf32> to vector<1x256xf32>
    %133 = vector.shape_cast %130 : vector<1x256xf32> to vector<1x1x256xf32>
    tpu.vector_store %arg5[%c0_65, %c10, %c0_66], %133 {strides = array<i32>} : memref<1x16x256xf32, #tpu.memory_space<vmem>>, vector<1x1x256xf32>,
    %134 = vector.extract_strided_slice %109 {offsets = [6, 0], sizes = [1, 256], strides = [1, 1]} : vector<8x256xf32> to vector<1x256xf32>
    %c0_67 = arith.constant 0 : index
    %c12 = arith.constant 12 : index
    %c0_68 = arith.constant 0 : index
    %135 = vector.load %arg5[%c0_67, %c12, %c0_68] : memref<1x16x256xf32, #tpu.memory_space<vmem>>, vector<1x1x256xf32>
    %136 = vector.shape_cast %135 : vector<1x1x256xf32> to vector<1x256xf32>
    %137 = vector.shape_cast %134 : vector<1x256xf32> to vector<1x1x256xf32>
    tpu.vector_store %arg5[%c0_67, %c12, %c0_68], %137 {strides = array<i32>} : memref<1x16x256xf32, #tpu.memory_space<vmem>>, vector<1x1x256xf32>,
    %138 = vector.extract_strided_slice %109 {offsets = [7, 0], sizes = [1, 256], strides = [1, 1]} : vector<8x256xf32> to vector<1x256xf32>
    %c0_69 = arith.constant 0 : index
    %c14 = arith.constant 14 : index
    %c0_70 = arith.constant 0 : index
    %139 = vector.load %arg5[%c0_69, %c14, %c0_70] : memref<1x16x256xf32, #tpu.memory_space<vmem>>, vector<1x1x256xf32>
    %140 = vector.shape_cast %139 : vector<1x1x256xf32> to vector<1x256xf32>
    %141 = vector.shape_cast %138 : vector<1x256xf32> to vector<1x1x256xf32>
    tpu.vector_store %arg5[%c0_69, %c14, %c0_70], %141 {strides = array<i32>} : memref<1x16x256xf32, #tpu.memory_space<vmem>>, vector<1x1x256xf32>,
    %c0_71 = arith.constant 0 : index
    %c8_72 = arith.constant 8 : index
    %c0_73 = arith.constant 0 : index
    %142 = vector.load %arg4[%c0_71, %c8_72, %c0_73] : memref<1x16x256xf32, #tpu.memory_space<vmem>>, vector<1x8x256xf32>
    %143 = vector.shape_cast %142 : vector<1x8x256xf32> to vector<8x256xf32>
    %c1_i32_74 = arith.constant 1 : i32
    %144 = tpu.dynamic_rotate %143 by %c1_i32_74 dim 1 : vector<8x256xf32>, i32 -> vector<8x256xf32>
    %cst_75 = arith.constant 0.000000e+00 : f32
    %145 = vector.shape_cast %20 : vector<1x256xi1> to vector<1x256xi1>
    %146 = vector.broadcast %145 : vector<1x256xi1> to vector<8x256xi1>
    %147 = vector.broadcast %cst_75 : f32 to vector<8x256xf32>
    %148 = arith.select %146, %147, %144 : vector<8x256xi1>, vector<8x256xf32>
    %c255_i32_76 = arith.constant 255 : i32
    %149 = tpu.dynamic_rotate %143 by %c255_i32_76 dim 1 : vector<8x256xf32>, i32 -> vector<8x256xf32>
    %cst_77 = arith.constant 0.000000e+00 : f32
    %150 = vector.shape_cast %22 : vector<1x256xi1> to vector<1x256xi1>
    %151 = vector.broadcast %150 : vector<1x256xi1> to vector<8x256xi1>
    %152 = vector.broadcast %cst_77 : f32 to vector<8x256xf32>
    %153 = arith.select %151, %152, %149 : vector<8x256xi1>, vector<8x256xf32>
    %154 = tpu.concatenate %148, %143, %153 in 0 : vector<8x256xf32>, vector<8x256xf32>, vector<8x256xf32> -> vector<24x256xf32>
    %c1_78 = arith.constant 1 : index
    %c0_79 = arith.constant 0 : index
    %c0_80 = arith.constant 0 : index
    %c0_81 = arith.constant 0 : index
    %155 = vector.load %arg1[%c1_78, %c0_79, %c0_80, %c0_81] : memref<2x2x8x24xf32, #tpu.memory_space<vmem>>, vector<1x1x8x24xf32>
    %156 = vector.shape_cast %155 : vector<1x1x8x24xf32> to vector<8x24xf32>
    %cst_82 = arith.constant dense<0.000000e+00> : vector<8x256xf32>
    %157 = tpu.matmul %156, %154, %cst_82 {dimension_numbers = #tpu.dot_dimension_numbers<[1], [0], [0], [1], [0, 0, 1, 1], [], []>} : vector<8x24xf32>, vector<24x256xf32>, vector<8x256xf32> -> vector<8x256xf32>
    %cst_83 = arith.constant 0.000000e+00 : f32
    %158 = vector.broadcast %cst_83 : f32 to vector<8x256xf32>
    %159 = arith.maximumf %157, %158 : vector<8x256xf32>
    %c16_i32_84 = arith.constant 16 : i32
    %160 = tpu.dynamic_rotate %159 by %c16_i32_84 dim 1 : vector<8x256xf32>, i32 -> vector<8x256xf32>
    %cst_85 = arith.constant 0.000000e+00 : f32
    %161 = vector.shape_cast %40 : vector<1x256xi1> to vector<1x256xi1>
    %162 = vector.broadcast %161 : vector<1x256xi1> to vector<8x256xi1>
    %163 = vector.broadcast %cst_85 : f32 to vector<8x256xf32>
    %164 = arith.select %162, %163, %160 : vector<8x256xi1>, vector<8x256xf32>
    %c240_i32_86 = arith.constant 240 : i32
    %165 = tpu.dynamic_rotate %159 by %c240_i32_86 dim 1 : vector<8x256xf32>, i32 -> vector<8x256xf32>
    %cst_87 = arith.constant 0.000000e+00 : f32
    %166 = vector.shape_cast %42 : vector<1x256xi1> to vector<1x256xi1>
    %167 = vector.broadcast %166 : vector<1x256xi1> to vector<8x256xi1>
    %168 = vector.broadcast %cst_87 : f32 to vector<8x256xf32>
    %169 = arith.select %167, %168, %165 : vector<8x256xi1>, vector<8x256xf32>
    %170 = tpu.concatenate %164, %159, %169 in 0 : vector<8x256xf32>, vector<8x256xf32>, vector<8x256xf32> -> vector<24x256xf32>
    %c1_88 = arith.constant 1 : index
    %c0_89 = arith.constant 0 : index
    %c0_90 = arith.constant 0 : index
    %c0_91 = arith.constant 0 : index
    %171 = vector.load %arg2[%c1_88, %c0_89, %c0_90, %c0_91] : memref<2x2x8x24xf32, #tpu.memory_space<vmem>>, vector<1x1x8x24xf32>
    %172 = vector.shape_cast %171 : vector<1x1x8x24xf32> to vector<8x24xf32>
    %cst_92 = arith.constant dense<0.000000e+00> : vector<8x256xf32>
    %173 = tpu.matmul %172, %170, %cst_92 {dimension_numbers = #tpu.dot_dimension_numbers<[1], [0], [0], [1], [0, 0, 1, 1], [], []>} : vector<8x24xf32>, vector<24x256xf32>, vector<8x256xf32> -> vector<8x256xf32>
    %c1_93 = arith.constant 1 : index
    %c0_94 = arith.constant 0 : index
    %c0_95 = arith.constant 0 : index
    %c0_96 = arith.constant 0 : index
    %174 = vector.load %arg3[%c1_93, %c0_94, %c0_95, %c0_96] : memref<2x2x8x1xf32, #tpu.memory_space<vmem>>, vector<1x1x8x1xf32>
    %175 = vector.shape_cast %174 : vector<1x1x8x1xf32> to vector<8x1xf32>
    %176 = vector.broadcast %175 : vector<8x1xf32> to vector<8x256xf32>
    %177 = arith.addf %173, %176 : vector<8x256xf32>
    %cst_97 = arith.constant 0.000000e+00 : f32
    %178 = vector.broadcast %cst_97 : f32 to vector<8x256xf32>
    %179 = arith.maximumf %177, %178 : vector<8x256xf32>
    %c2_i32_98 = arith.constant 2 : i32
    %180 = tpu.dynamic_rotate %179 by %c2_i32_98 dim 1 : vector<8x256xf32>, i32 -> vector<8x256xf32>
    %cst_99 = arith.constant 0.000000e+00 : f32
    %181 = vector.shape_cast %64 : vector<1x256xi1> to vector<1x256xi1>
    %182 = vector.broadcast %181 : vector<1x256xi1> to vector<8x256xi1>
    %183 = vector.broadcast %cst_99 : f32 to vector<8x256xf32>
    %184 = arith.select %182, %183, %180 : vector<8x256xi1>, vector<8x256xf32>
    %c254_i32_100 = arith.constant 254 : i32
    %185 = tpu.dynamic_rotate %179 by %c254_i32_100 dim 1 : vector<8x256xf32>, i32 -> vector<8x256xf32>
    %cst_101 = arith.constant 0.000000e+00 : f32
    %186 = vector.shape_cast %66 : vector<1x256xi1> to vector<1x256xi1>
    %187 = vector.broadcast %186 : vector<1x256xi1> to vector<8x256xi1>
    %188 = vector.broadcast %cst_101 : f32 to vector<8x256xf32>
    %189 = arith.select %187, %188, %185 : vector<8x256xi1>, vector<8x256xf32>
    %190 = tpu.concatenate %184, %179, %189 in 0 : vector<8x256xf32>, vector<8x256xf32>, vector<8x256xf32> -> vector<24x256xf32>
    %c1_102 = arith.constant 1 : index
    %c1_103 = arith.constant 1 : index
    %c0_104 = arith.constant 0 : index
    %c0_105 = arith.constant 0 : index
    %191 = vector.load %arg1[%c1_102, %c1_103, %c0_104, %c0_105] : memref<2x2x8x24xf32, #tpu.memory_space<vmem>>, vector<1x1x8x24xf32>
    %192 = vector.shape_cast %191 : vector<1x1x8x24xf32> to vector<8x24xf32>
    %cst_106 = arith.constant dense<0.000000e+00> : vector<8x256xf32>
    %193 = tpu.matmul %192, %190, %cst_106 {dimension_numbers = #tpu.dot_dimension_numbers<[1], [0], [0], [1], [0, 0, 1, 1], [], []>} : vector<8x24xf32>, vector<24x256xf32>, vector<8x256xf32> -> vector<8x256xf32>
    %cst_107 = arith.constant 0.000000e+00 : f32
    %194 = vector.broadcast %cst_107 : f32 to vector<8x256xf32>
    %195 = arith.maximumf %193, %194 : vector<8x256xf32>
    %c32_i32_108 = arith.constant 32 : i32
    %196 = tpu.dynamic_rotate %195 by %c32_i32_108 dim 1 : vector<8x256xf32>, i32 -> vector<8x256xf32>
    %cst_109 = arith.constant 0.000000e+00 : f32
    %197 = vector.shape_cast %84 : vector<1x256xi1> to vector<1x256xi1>
    %198 = vector.broadcast %197 : vector<1x256xi1> to vector<8x256xi1>
    %199 = vector.broadcast %cst_109 : f32 to vector<8x256xf32>
    %200 = arith.select %198, %199, %196 : vector<8x256xi1>, vector<8x256xf32>
    %c224_i32_110 = arith.constant 224 : i32
    %201 = tpu.dynamic_rotate %195 by %c224_i32_110 dim 1 : vector<8x256xf32>, i32 -> vector<8x256xf32>
    %cst_111 = arith.constant 0.000000e+00 : f32
    %202 = vector.shape_cast %86 : vector<1x256xi1> to vector<1x256xi1>
    %203 = vector.broadcast %202 : vector<1x256xi1> to vector<8x256xi1>
    %204 = vector.broadcast %cst_111 : f32 to vector<8x256xf32>
    %205 = arith.select %203, %204, %201 : vector<8x256xi1>, vector<8x256xf32>
    %206 = tpu.concatenate %200, %195, %205 in 0 : vector<8x256xf32>, vector<8x256xf32>, vector<8x256xf32> -> vector<24x256xf32>
    %c1_112 = arith.constant 1 : index
    %c1_113 = arith.constant 1 : index
    %c0_114 = arith.constant 0 : index
    %c0_115 = arith.constant 0 : index
    %207 = vector.load %arg2[%c1_112, %c1_113, %c0_114, %c0_115] : memref<2x2x8x24xf32, #tpu.memory_space<vmem>>, vector<1x1x8x24xf32>
    %208 = vector.shape_cast %207 : vector<1x1x8x24xf32> to vector<8x24xf32>
    %cst_116 = arith.constant dense<0.000000e+00> : vector<8x256xf32>
    %209 = tpu.matmul %208, %206, %cst_116 {dimension_numbers = #tpu.dot_dimension_numbers<[1], [0], [0], [1], [0, 0, 1, 1], [], []>} : vector<8x24xf32>, vector<24x256xf32>, vector<8x256xf32> -> vector<8x256xf32>
    %c1_117 = arith.constant 1 : index
    %c1_118 = arith.constant 1 : index
    %c0_119 = arith.constant 0 : index
    %c0_120 = arith.constant 0 : index
    %210 = vector.load %arg3[%c1_117, %c1_118, %c0_119, %c0_120] : memref<2x2x8x1xf32, #tpu.memory_space<vmem>>, vector<1x1x8x1xf32>
    %211 = vector.shape_cast %210 : vector<1x1x8x1xf32> to vector<8x1xf32>
    %212 = vector.broadcast %211 : vector<8x1xf32> to vector<8x256xf32>
    %213 = arith.addf %209, %212 : vector<8x256xf32>
    %c0_121 = arith.constant 0 : index
    %c8_122 = arith.constant 8 : index
    %c0_123 = arith.constant 0 : index
    %214 = vector.load %arg4[%c0_121, %c8_122, %c0_123] : memref<1x16x256xf32, #tpu.memory_space<vmem>>, vector<1x8x256xf32>
    %215 = vector.shape_cast %214 : vector<1x8x256xf32> to vector<8x256xf32>
    %216 = arith.addf %215, %213 : vector<8x256xf32>
    %cst_124 = arith.constant 0.000000e+00 : f32
    %217 = vector.broadcast %cst_124 : f32 to vector<8x256xf32>
    %218 = arith.maximumf %216, %217 : vector<8x256xf32>
    %219 = vector.extract_strided_slice %218 {offsets = [0, 0], sizes = [1, 256], strides = [1, 1]} : vector<8x256xf32> to vector<1x256xf32>
    %c0_125 = arith.constant 0 : index
    %c1_126 = arith.constant 1 : index
    %c0_127 = arith.constant 0 : index
    %220 = vector.load %arg5[%c0_125, %c1_126, %c0_127] : memref<1x16x256xf32, #tpu.memory_space<vmem>>, vector<1x1x256xf32>
    %221 = vector.shape_cast %220 : vector<1x1x256xf32> to vector<1x256xf32>
    %222 = vector.shape_cast %219 : vector<1x256xf32> to vector<1x1x256xf32>
    tpu.vector_store %arg5[%c0_125, %c1_126, %c0_127], %222 {strides = array<i32>} : memref<1x16x256xf32, #tpu.memory_space<vmem>>, vector<1x1x256xf32>,
    %223 = vector.extract_strided_slice %218 {offsets = [1, 0], sizes = [1, 256], strides = [1, 1]} : vector<8x256xf32> to vector<1x256xf32>
    %c0_128 = arith.constant 0 : index
    %c3 = arith.constant 3 : index
    %c0_129 = arith.constant 0 : index
    %224 = vector.load %arg5[%c0_128, %c3, %c0_129] : memref<1x16x256xf32, #tpu.memory_space<vmem>>, vector<1x1x256xf32>
    %225 = vector.shape_cast %224 : vector<1x1x256xf32> to vector<1x256xf32>
    %226 = vector.shape_cast %223 : vector<1x256xf32> to vector<1x1x256xf32>
    tpu.vector_store %arg5[%c0_128, %c3, %c0_129], %226 {strides = array<i32>} : memref<1x16x256xf32, #tpu.memory_space<vmem>>, vector<1x1x256xf32>,
    %227 = vector.extract_strided_slice %218 {offsets = [2, 0], sizes = [1, 256], strides = [1, 1]} : vector<8x256xf32> to vector<1x256xf32>
    %c0_130 = arith.constant 0 : index
    %c5 = arith.constant 5 : index
    %c0_131 = arith.constant 0 : index
    %228 = vector.load %arg5[%c0_130, %c5, %c0_131] : memref<1x16x256xf32, #tpu.memory_space<vmem>>, vector<1x1x256xf32>
    %229 = vector.shape_cast %228 : vector<1x1x256xf32> to vector<1x256xf32>
    %230 = vector.shape_cast %227 : vector<1x256xf32> to vector<1x1x256xf32>
    tpu.vector_store %arg5[%c0_130, %c5, %c0_131], %230 {strides = array<i32>} : memref<1x16x256xf32, #tpu.memory_space<vmem>>, vector<1x1x256xf32>,
    %231 = vector.extract_strided_slice %218 {offsets = [3, 0], sizes = [1, 256], strides = [1, 1]} : vector<8x256xf32> to vector<1x256xf32>
    %c0_132 = arith.constant 0 : index
    %c7 = arith.constant 7 : index
    %c0_133 = arith.constant 0 : index
    %232 = vector.load %arg5[%c0_132, %c7, %c0_133] : memref<1x16x256xf32, #tpu.memory_space<vmem>>, vector<1x1x256xf32>
    %233 = vector.shape_cast %232 : vector<1x1x256xf32> to vector<1x256xf32>
    %234 = vector.shape_cast %231 : vector<1x256xf32> to vector<1x1x256xf32>
    tpu.vector_store %arg5[%c0_132, %c7, %c0_133], %234 {strides = array<i32>} : memref<1x16x256xf32, #tpu.memory_space<vmem>>, vector<1x1x256xf32>,
    %235 = vector.extract_strided_slice %218 {offsets = [4, 0], sizes = [1, 256], strides = [1, 1]} : vector<8x256xf32> to vector<1x256xf32>
    %c0_134 = arith.constant 0 : index
    %c9 = arith.constant 9 : index
    %c0_135 = arith.constant 0 : index
    %236 = vector.load %arg5[%c0_134, %c9, %c0_135] : memref<1x16x256xf32, #tpu.memory_space<vmem>>, vector<1x1x256xf32>
    %237 = vector.shape_cast %236 : vector<1x1x256xf32> to vector<1x256xf32>
    %238 = vector.shape_cast %235 : vector<1x256xf32> to vector<1x1x256xf32>
    tpu.vector_store %arg5[%c0_134, %c9, %c0_135], %238 {strides = array<i32>} : memref<1x16x256xf32, #tpu.memory_space<vmem>>, vector<1x1x256xf32>,
    %239 = vector.extract_strided_slice %218 {offsets = [5, 0], sizes = [1, 256], strides = [1, 1]} : vector<8x256xf32> to vector<1x256xf32>
    %c0_136 = arith.constant 0 : index
    %c11 = arith.constant 11 : index
    %c0_137 = arith.constant 0 : index
    %240 = vector.load %arg5[%c0_136, %c11, %c0_137] : memref<1x16x256xf32, #tpu.memory_space<vmem>>, vector<1x1x256xf32>
    %241 = vector.shape_cast %240 : vector<1x1x256xf32> to vector<1x256xf32>
    %242 = vector.shape_cast %239 : vector<1x256xf32> to vector<1x1x256xf32>
    tpu.vector_store %arg5[%c0_136, %c11, %c0_137], %242 {strides = array<i32>} : memref<1x16x256xf32, #tpu.memory_space<vmem>>, vector<1x1x256xf32>,
    %243 = vector.extract_strided_slice %218 {offsets = [6, 0], sizes = [1, 256], strides = [1, 1]} : vector<8x256xf32> to vector<1x256xf32>
    %c0_138 = arith.constant 0 : index
    %c13 = arith.constant 13 : index
    %c0_139 = arith.constant 0 : index
    %244 = vector.load %arg5[%c0_138, %c13, %c0_139] : memref<1x16x256xf32, #tpu.memory_space<vmem>>, vector<1x1x256xf32>
    %245 = vector.shape_cast %244 : vector<1x1x256xf32> to vector<1x256xf32>
    %246 = vector.shape_cast %243 : vector<1x256xf32> to vector<1x1x256xf32>
    tpu.vector_store %arg5[%c0_138, %c13, %c0_139], %246 {strides = array<i32>} : memref<1x16x256xf32, #tpu.memory_space<vmem>>, vector<1x1x256xf32>,
    %247 = vector.extract_strided_slice %218 {offsets = [7, 0], sizes = [1, 256], strides = [1, 1]} : vector<8x256xf32> to vector<1x256xf32>
    %c0_140 = arith.constant 0 : index
    %c15 = arith.constant 15 : index
    %c0_141 = arith.constant 0 : index
    %248 = vector.load %arg5[%c0_140, %c15, %c0_141] : memref<1x16x256xf32, #tpu.memory_space<vmem>>, vector<1x1x256xf32>
    %249 = vector.shape_cast %248 : vector<1x1x256xf32> to vector<1x256xf32>
    %250 = vector.shape_cast %247 : vector<1x256xf32> to vector<1x1x256xf32>
    tpu.vector_store %arg5[%c0_140, %c15, %c0_141], %250 {strides = array<i32>} : memref<1x16x256xf32, #tpu.memory_space<vmem>>, vector<1x1x256xf32>,
    return
  }
  func.func @transform_0(%arg0: i32) -> (i32, i32, i32, i32) {
    %c0_i32 = arith.constant 0 : i32
    %c0_i32_0 = arith.constant 0 : i32
    %c0_i32_1 = arith.constant 0 : i32
    %c0_i32_2 = arith.constant 0 : i32
    %c0_i32_3 = arith.constant 0 : i32
    return %c0_i32, %c0_i32_0, %c0_i32_1, %c0_i32_2 : i32, i32, i32, i32
  }
  func.func @transform_1(%arg0: i32) -> (i32, i32, i32, i32) {
    %c0_i32 = arith.constant 0 : i32
    %c0_i32_0 = arith.constant 0 : i32
    %c0_i32_1 = arith.constant 0 : i32
    %c0_i32_2 = arith.constant 0 : i32
    %c0_i32_3 = arith.constant 0 : i32
    return %c0_i32, %c0_i32_0, %c0_i32_1, %c0_i32_2 : i32, i32, i32, i32
  }
  func.func @transform_2(%arg0: i32) -> (i32, i32, i32, i32) {
    %c0_i32 = arith.constant 0 : i32
    %c0_i32_0 = arith.constant 0 : i32
    %c0_i32_1 = arith.constant 0 : i32
    %c0_i32_2 = arith.constant 0 : i32
    %c0_i32_3 = arith.constant 0 : i32
    return %c0_i32, %c0_i32_0, %c0_i32_1, %c0_i32_2 : i32, i32, i32, i32
  }
  func.func @transform_3(%arg0: i32) -> (i32, i32, i32) {
    %c0_i32 = arith.constant 0 : i32
    %c0_i32_0 = arith.constant 0 : i32
    %c0_i32_1 = arith.constant 0 : i32
    return %arg0, %c0_i32, %c0_i32_0 : i32, i32, i32
  }
  func.func @transform_4(%arg0: i32) -> (i32, i32, i32) {
    %c0_i32 = arith.constant 0 : i32
    %c0_i32_0 = arith.constant 0 : i32
    %c0_i32_1 = arith.constant 0 : i32
    return %arg0, %c0_i32, %c0_i32_0 : i32, i32, i32
  }
}

</mosaic_0001>

<bundles_post_ra>
// kernel: tpu_custom_call.1
= control target key start
LH: loop header
LB: loop body
LE: loop exit
PB: predicated region body
PF: predicated region fallthrough
CT: control target
= control target key end

     0   :  { %9 = vsyncpa [#allocation3], 0  ;;  %s6469_s0 = inlined_call_operand.vmem [shape: f32[2,2,8,24], index: 0, kind: input, shape index: {}]   ;;  %s6470_s1 = inlined_call_operand.hbm [shape: f32[2,2,8,24], index: 1, kind: input, shape index: {}]   ;;  %s6471_s2 = inlined_call_operand.vmem [shape: f32[2,2,8,1], index: 2, kind: input, shape index: {}]   ;;  %s6472_s3 = inlined_call_operand.hbm [shape: f32[2,16,256], index: 3, kind: input, shape index: {}]   ;;  %s6473_s4 = inlined_call_operand.hbm [shape: f32[2,16,256], index: 4, kind: output, shape index: {}]  }
   0x1   :  { %10 = vsyncpa [#allocation6], 0 }
   0x2   :  { %12 = vsyncpa [#allocation6 + $0x1], 0 }
   0x3   :  { %13 = vsyncpa [#allocation4], 0 }
   0x4   :  { %15 = vsyncpa [#allocation4 + $0x1], 0  ;;  %s5508_s15 = smov 0   ;;  %s5510_s16 = smov 0  }
   0x5   :  { %s5512_s17 = smov 0   ;;  %s5514_s18 = smov 0  }
   0x6 LB: > { %s5529_s19 = sadd.s32 4294967295, %s5462_s18   ;;  %s4936_s20 = sadd.s32 4294967294, %s5462_s18   ;;  %s5462_s18 = sphi %s5514_s18, %s6495_s18   ;;  %s5458_s17 = sphi %s5512_s17, %s6494_s17   ;;  %s5454_s16 = sphi %s5510_s16, %s6493_s16   ;;  %s5450_s15 = sphi %s5508_s15, %s6492_s15  }
   0x7   : > { %p104_p0 = scmp.ne.s32.totalorder %s5454_s16, %s5450_s15  ;;  %p6474_p1 = scmp.eq.s32.totalorder %s5529_s19, 0 }
   0x8   : > { %p134_p3 = scmp.eq.s32.totalorder %s4936_s20, 1  ;;  %p4937_p5 = scmp.ge.s32.totalorder %s5462_s18, 1 }
   0x9   : > { %p5538_p4 = por %p6474_p1, %p104_p0  ;;  %p141_p7 = scmp.lt.s32.totalorder %s5462_s18, 3 }
   0xa   : > { %p5543_p6 = por %p134_p3, %p104_p0  ;;  %s5464_s24 = smov [#allocation2]  }
   0xb   : > { %s6477_s21 = scalar_select %p5538_p4, 1, 0 }
   0xc   : > { %s6478_s22 = scalar_select %p5543_p6, 1, 0 }
   0xd   : > { %p5548_p8 = pnand %p4937_p5, %p141_p7  ;;  %s156_s25 = sshll.u32 %s5464_s24, 4  ;;  %s5552_s25 = int_to_ptr.vmem [resolvable:$true] %s156_s25 }
   0xe   : > { %s5564_s27 = sadd.s32 1, %s5462_s18   ;;  %s91_s28 = sadd.s32 1, %s5458_s17 }
   0xf   : > { %s6479_s23 = scalar_select %p5548_p8, 1, 0 }
  0x10   : > { %p5263_p9 = pneg %p5548_p8  ;;  %s88_s29 = ssub.s32 %s5462_s18, %s5564_s27 }
  0x11   : > { %s5334_s6 = scalar_lea.hbm %s6470_s1, 512 }
  0x12   : > { %p5559_p11 = pnand %p5263_p9, %p6474_p1  ;;  %p5335_p12 = scmp.ne.s32.totalorder %s6470_s1, %s5334_s6 }
  0x13   : > { %p5341_p5 = scmp.lt.u32.totalorder %s5334_s6, %s6470_s1 }
  0x14   : > { %p5336_p13 = pneg %p5559_p11 }
  0x16   : > { %p5337_p0 = pnand %p5336_p13, %p5335_p12 }
  0x18   : > { %p5338_p3 = pneg %p5337_p0 }
  0x1a   : > { %p5343_p7 = pnand %p5341_p5, %p5338_p3 }
  0x1c   : > { %5346 = shalt.err (!%p5343_p7)
}
  0x1d   : > { %s5347_s11 = scalar_lea.vmem %s5552_s25, 512  ;;  %p5355_p2 = scmp.lt.s32.totalorder %s5552_s25, %s5552_s25 }
  0x1e   : > { %p5348_p9 = scmp.ne.s32.totalorder %s5552_s25, %s5347_s11  ;;  %p5356_p6 = scmp.lt.s32.totalorder %s5347_s11, %s5347_s11 }
  0x20   : > { %p5350_p10 = pnand %p5348_p9, %p5336_p13  ;;  %p5357_p4 = por %p5356_p6, %p5355_p2 }
  0x22   : > { %p5351_p1 = pneg %p5350_p10 }
  0x24   : > { %p5358_p8 = pnand %p5357_p4, %p5351_p1 }
  0x26   : > { %5361 = shalt.err (!%p5358_p8)
}
  0x27   : > { %s5465_s12 = smov 128   ;;  %s5466_s13 = smov 8  }
  0x28   : > { %5266 = dma.hbm_to_vmem [thread:$0]  (!%p5559_p11), %s6470_s1, 512, %s5552_s25, [#allocation3], %s5465_s12, %s5465_s12, %s5466_s13  }
  0x29   : > { %p89_p2 = scmp.eq.s32.totalorder %s88_s29, 0  ;;  %p98_p1 = scmp.ne.s32.totalorder %s5458_s17, %s5454_s16 }
  0x2a   : > { %p99_p4 = scmp.eq.s32.totalorder %s5462_s18, 0  ;;  %p5276_p6 = scmp.lt.s32.totalorder %s5462_s18, 2 }
  0x2b   : > { %s5595_s24 = scalar_select %p89_p2, %s5458_s17, %s91_s28  }
  0x2c   : > { %p100_p8 = por %p99_p4, %p98_p1  ;;  %p6481_p10 = scmp.eq.s32.totalorder %s5529_s19, 1 }
  0x2d   : > { %s173_s5 = sand.u32 1, %s5458_s17   ;;  %s4973_s6 = sshll.u32 %s5462_s18, 9 }
  0x2e   : > { %p5599_p12 = por %p6481_p10, %p98_p1  ;;  %s4940_s7 = sshll.u32 %s173_s5, 5 }
  0x2f   : > { %s5608_s9 = scalar_lea.hbm %s6472_s3, %s4973_s6  ;;  %s177_s25 = scalar_lea.vmem [#allocation5], %s4940_s7 }
  0x30   : > { %s184_s28 = sshll.u32 %s177_s25, 4  ;;  %p5610_p11 = pnand %p5276_p6, %p100_p8  ;;  %s5614_s28 = int_to_ptr.vmem [resolvable:$true] %s184_s28 }
  0x31   : > { %s5616_s10 = scalar_lea.sflag [#allocation6], %s173_s5  ;;  %s5362_s11 = scalar_lea.hbm %s5608_s9, 512 }
  0x32   : > { %p5363_p13 = scmp.ne.s32.totalorder %s5608_s9, %s5362_s11  ;;  %p5364_p0 = pneg %p5610_p11 }
  0x33   : > { %s5367_s14 = scalar_lea.hbm %s6472_s3, 1024  ;;  %p5368_p7 = scmp.lt.u32.totalorder %s5608_s9, %s6472_s3 }
  0x34   : > { %p5365_p3 = pnand %p5364_p0, %p5363_p13  ;;  %p5369_p9 = scmp.lt.u32.totalorder %s5367_s14, %s5362_s11 }
  0x35   : > { %p5371_p1 = scmp.lt.u32.totalorder %s5362_s11, %s5608_s9 }
  0x36   : > { %p5366_p5 = pneg %p5365_p3  ;;  %p5370_p2 = por %p5369_p9, %p5368_p7 }
  0x38   : > { %p5372_p4 = por %p5371_p1, %p5370_p2 }
  0x3a   : > { %p5373_p6 = pnand %p5372_p4, %p5366_p5 }
  0x3c   : > { %5376 = shalt.err (!%p5373_p6)
}
  0x3d   : > { %s5377_s5 = scalar_lea.vmem %s5614_s28, 512  ;;  %s5467_s7 = smov [#allocation5]  }
  0x3e   : > { %p5378_p8 = scmp.ne.s32.totalorder %s5614_s28, %s5377_s5  ;;  %s5382_s26 = sshll.u32 %s5467_s7, 4  ;;  %s5383_s26 = int_to_ptr.vmem [resolvable:$false] %s5382_s26 }
  0x3f   : > { %s5384_s8 = scalar_lea.vmem %s5383_s26, 1024  ;;  %p5385_p3 = scmp.lt.s32.totalorder %s5614_s28, %s5383_s26 }
  0x40   : > { %p5380_p10 = pnand %p5378_p8, %p5364_p0  ;;  %p5386_p7 = scmp.lt.s32.totalorder %s5384_s8, %s5377_s5 }
  0x42   : > { %p5381_p13 = pneg %p5380_p10  ;;  %p5387_p9 = por %p5386_p7, %p5385_p3 }
  0x44   : > { %p5388_p2 = pnand %p5387_p9, %p5381_p13 }
  0x46   : > { %5391 = shalt.err (!%p5388_p2)
}
  0x47   : > { %s5468_s25 = smov 256   ;;  %s5469_s11 = smov 16  }
  0x48   : > { %5270 = dma.hbm_to_vmem [thread:$0]  (!%p5610_p11), %s5608_s9, 512, %s5614_s28, %s5616_s10, %s5468_s25, %s5468_s25, %s5469_s11  }
  0x49   : > { %p6484_p0 = scmp.ne.s32.totalorder %s6479_s23, 0 }
  0x4a   : > { %p6485_p5 = scmp.eq.s32.totalorder (!%p6484_p0), %s5529_s19, 0 }
  0x4b   : > { %196 = sbr.rel (%p6484_p0) target bundleno = 2466 (0x9a2), region = 36 }
  0x52   : > { %5437 = dma.done.wait (%p6485_p5), [#allocation3], 512   ;;  %p6486_p1 = pmov %p6485_p5 }
  0x53   : > { %s5651_s12 = sand.u32 1, %s5454_s16   ;;  %p6487_p11 = scmp.ne.s32.totalorder %s6477_s21, 0 }
  0x54   : > { %5439 = vsyncadd (%p6486_p1), [#allocation3], 4294966784  ;;  %s4945_s13 = sshll.u32 %s5651_s12, 5  ;;  %s203_s14 = scalar_lea.sflag [#allocation6], %s5651_s12 }
  0x55   : > { %s5657_s9 = scalar_lea.vmem [#allocation5], %s4945_s13 }
  0x56   : > { %5441 = dma.done.wait (%p6487_p11), %s203_s14, 512  }
  0x57   : > { %5443 = vsyncadd (%p6487_p11), %s203_s14, 4294966784  ;;  %v258_v0 = vld [vmem:[%s5657_s9] sm:$0xff]  ;;  %s5470_s23 = smov 127   ;;  %s5471_s28 = smov 1   ;;  %v259_v1 = vld [vmem:[%s5657_s9 + $0x8] sm:$0xff]  ;;  %v5472_v2 = vmov 0.0   ;;  %v231_v3 = vlaneseq }
  0x58   : > { %277 = vrot.lane.b32.xlu1 %v258_v0, %s5470_s23  ;;  %264 = vrot.lane.b32.xlu0 %v258_v0, %s5471_s28  ;;  %v290_v4 = vld [vmem:[%s6469_s0] sm:$0xff]  ;;  %vm291_vm0 = vcmask 195584   ;;  %v299_v8 = vand.u32 4294901760, %v259_v1  ;;  %v301_v9 = vand.u32 4294901760, %v258_v0  ;;  %s5473_s10 = smov 16   ;;  %s5474_s20 = smov 112  }
  0x59   : > { %365 = vmatprep.mubr.f32.mxu0 %v5472_v2  ;;  %923 = vmatprep.mubr.f32.mxu1 %v5472_v2  ;;  %v5675_v5 = vand.u32 127, %v231_v3  ;;  %v293_v6 = vsel %vm291_vm0, %v290_v4, 0  ;;  %s5476_s7 = smov 126   ;;  %s5477_s26 = smov 2  }
  0x5a   : > { %v5681_v10 = vand.u32 4294901760, %v293_v6  ;;  %v5689_v15 = vsub.f32 %v259_v1, %v299_v8  ;;  %v5691_v16 = vsub.f32 %v258_v0, %v301_v9  ;;  %s6338_s25 = scalar_lea.vmem [#allocation7], %s4945_s13  ;;  %s4974_s13 = sshll.u32 %s5529_s19, 9 }
  0x5b   : > { %v5679_v7 = vadd.s32 128, %v5675_v5  ;;  %v5684_v11 = vand.u32 15, %v5675_v5  ;;  %vm281_vm1 = vcmp.lt.s32.totalorder %v5675_v5, 127  ;;  %vm268_vm2 = vcmp.lt.s32.totalorder %v5675_v5, 1  ;;  %s6404_s19 = scalar_lea.hbm %s6473_s4, %s4974_s13  ;;  %s5481_s21 = smov [#allocation7]  }
  0x5c   : > { %279 = vrot.lane.b32.xlu1 %v259_v1, %s5470_s23  ;;  %266 = vrot.lane.b32.xlu0 %v259_v1, %s5471_s28  ;;  %v5694_v17 = vsub.f32 %v293_v6, %v5681_v10  ;;  %v391_v21 = vand.u32 4294901760, %v5689_v15  ;;  %v397_v22 = vand.u32 4294901760, %v5691_v16  ;;  %vm814_vm7 = vcmp.lt.s32.totalorder %v5675_v5, 16  ;;  %s5396_s29 = sshll.u32 %s5481_s21, 4  ;;  %s5397_s29 = int_to_ptr.vmem [resolvable:$false] %s5396_s29 }
  0x5d   : > { %v5687_v12 = vand.u32 15, %v5679_v7  ;;  %vm262_vm3 = vcmp.ge.s32.totalorder %v5684_v11, 15  ;;  %vm260_vm5 = vcmp.lt.s32.totalorder %v5684_v11, 1  ;;  %vm834_vm8 = vcmp.lt.s32.totalorder %v5675_v5, 112 }
  0x5e   : > { %v368_v20 = vand.u32 4294901760, %v5694_v17  ;;  %v392_v35 = vsub.f32 %v5689_v15, %v391_v21  ;;  %v398_v39 = vsub.f32 %v5691_v16, %v397_v22  ;;  %vm817_vm9 = vcmp.ge.s32.totalorder %v5679_v7, 240 }
  0x5f   : > { %vm263_vm4 = vcmp.ge.s32.totalorder %v5687_v12, 15  ;;  %vm261_vm6 = vcmp.lt.s32.totalorder %v5687_v12, 1  ;;  %vm1380_vm10 = vcmp.lt.s32.totalorder %v5675_v5, 2  ;;  %vm1372_vm11 = vcmp.lt.s32.totalorder %v5684_v11, 2 }
  0x60   : > { %v369_v43 = vsub.f32 %v5694_v17, %v368_v20  ;;  %v393_v49 = vand.u32 4294901760, %v392_v35  ;;  %v399_v50 = vand.u32 4294901760, %v398_v39  ;;  %vm1373_vm12 = vcmp.lt.s32.totalorder %v5687_v12, 2 }
  0x61   : > { %vm1393_vm13 = vcmp.lt.s32.totalorder %v5675_v5, 126  ;;  %vm1374_vm14 = vcmp.ge.s32.totalorder %v5684_v11, 14  ;;  %vm1375_vm15 = vcmp.ge.s32.totalorder %v5687_v12, 14 }
  0x62   : > { %v370_v52 = vand.u32 4294901760, %v369_v43 }
  0xca   : > { %v278_v13 = vpop.permute.xlu1 %277  ;;  %v265_v14 = vpop.permute.xlu0 %264 }
  0xce   : > { %v280_v18 = vpop.permute.xlu1 %279  ;;  %v267_v19 = vpop.permute.xlu0 %266 }
  0xcf   : > { %v282_v23 = vsel %vm281_vm1, %v278_v13, %v280_v18  ;;  %v283_v24 = vsel %vm281_vm1, %v280_v18, %v278_v13  ;;  %v269_v25 = vsel %vm268_vm2, %v265_v14, %v267_v19  ;;  %v270_v26 = vsel %vm268_vm2, %v267_v19, %v265_v14  ;;  %v843_v13 = vld [vmem:[#allocation2] sm:$0xff] }
  0xd0   : > { %v288_v27 = vsel %vm262_vm3, 0.0, %v282_v23  ;;  %v289_v28 = vsel %vm263_vm4, 0.0, %v283_v24  ;;  %v275_v29 = vsel %vm260_vm5, 0.0, %v270_v26  ;;  %v276_v30 = vsel %vm261_vm6, 0.0, %v269_v25 }
  0xd1   : > { %v5721_v31 = vand.u32 4294901760, %v289_v28  ;;  %v5723_v32 = vand.u32 4294901760, %v288_v27  ;;  %v295_v33 = vand.u32 4294901760, %v276_v30  ;;  %v297_v34 = vand.u32 4294901760, %v275_v29 }
  0xd2   : > { %v851_v14 = vsel %vm291_vm0, %v843_v13, 0 }
  0xd3   : > { %v402_v36 = vsub.f32 %v289_v28, %v5721_v31  ;;  %v378_v37 = vsub.f32 %v276_v30, %v295_v33  ;;  %v384_v38 = vsub.f32 %v275_v29, %v297_v34  ;;  %v408_v40 = vsub.f32 %v288_v27, %v5723_v32 }
  0xd4   : > { %v4975_v41 = vpack.c.bf16 %v299_v8, %v295_v33  ;;  %v4977_v42 = vpack.c.bf16 %v301_v9, %v297_v34  ;;  %v844_v9 = vld [vmem:[%s6471_s2] sm:$0xff] }
  0xd5   : > { %v379_v44 = vand.u32 4294901760, %v378_v37  ;;  %v385_v45 = vand.u32 4294901760, %v384_v38  ;;  %v403_v46 = vand.u32 4294901760, %v402_v36  ;;  %v409_v51 = vand.u32 4294901760, %v408_v40 }
  0xd6   : > { %4976 = vmatprep.subr.bf16.mxu0 %v4975_v41  ;;  %v4983_v61 = vpack.c.bf16 %v5689_v15, %v378_v37  ;;  %v4985_v62 = vpack.c.bf16 %v5691_v16, %v384_v38  ;;  %v5768_v15 = vand.u32 4294901760, %v851_v14 }
  0xd7   : > { %v386_v47 = vsub.f32 %v384_v38, %v385_v45  ;;  %4978 = vmatpush1.bf16.msra.mxu0 %v4977_v42  ;;  %v380_v48 = vsub.f32 %v378_v37, %v379_v44  ;;  %v404_v55 = vsub.f32 %v402_v36, %v403_v46  ;;  %v410_v58 = vsub.f32 %v408_v40, %v409_v51 }
  0xd8   : > { %304 = vmatprep.subr.mxu0 %v5721_v31  ;;  %v4991_v63 = vpack.c.bf16 %v391_v21, %v379_v44  ;;  %v4993_v0 = vpack.c.bf16 %v397_v22, %v385_v45  ;;  %v5771_v18 = vsub.f32 %v851_v14, %v5768_v15 }
  0xd9   : > { %v387_v53 = vand.u32 4294901760, %v386_v47  ;;  %v381_v54 = vand.u32 4294901760, %v380_v48  ;;  %v405_v59 = vand.u32 4294901760, %v404_v55  ;;  %v411_v60 = vand.u32 4294901760, %v410_v58 }
  0xda   : > { %v926_v23 = vand.u32 4294901760, %v5771_v18 }
  0xdb   : > { %306 = vmatpush1.msra.mxu0 %v5723_v32  ;;  %v4979_v56 = vpack.c.bf16 %v393_v49, %v381_v54  ;;  %v4981_v57 = vpack.c.bf16 %v399_v50, %v387_v53 }
  0xdc   : > { %371 = vmatmul.mubr.f32.vlgmr.msra.gmra.mrb[0].mxu0 %v370_v52  ;;  %v927_v35 = vsub.f32 %v5771_v18, %v926_v23 }
  0xdd   : > { %4980 = vmatprep.subr.bf16.mxu0 %v4979_v56  ;;  %471 = vmatprep.mubr.f32.mxu0 %v5472_v2 }
  0xde   : > { %4982 = vmatpush1.bf16.msra.mxu0 %v4981_v57  ;;  %v928_v48 = vand.u32 4294901760, %v927_v35 }
  0xdf   : > { %406 = vmatprep.subr.mxu0 %v405_v59 }
  0xe2   : > { %412 = vmatpush1.msra.mxu0 %v411_v60 }
  0xe3   : > { %4984 = vmatprep.subr.bf16.mxu0 %v4983_v61 }
  0xe4   : > { %473 = vmatmul.mubr.f32.vlgmr.msra.gmra.mrb[0].mxu0 %v5681_v10 }
  0xe5   : > { %4986 = vmatpush1.bf16.msra.mxu0 %v4985_v62  ;;  %555 = vmatprep.mubr.f32.mxu0 %v5472_v2 }
  0xe6   : > { %493 = vmatprep.subr.mxu0 %v402_v36 }
  0xe9   : > { %496 = vmatpush1.msra.mxu0 %v408_v40 }
  0xea   : > { %4988 = vmatprep.subr.bf16.mxu0 %v4975_v41 }
  0xec   : > { %558 = vmatmul.mubr.f32.vlgmr.msra.gmra.mrb[0].mxu0 %v5694_v17 }
  0xed   : > { %4990 = vmatpush1.bf16.msra.mxu0 %v4977_v42  ;;  %634 = vmatprep.mubr.f32.mxu0 %v5472_v2 }
  0xee   : > { %573 = vmatprep.subr.mxu0 %v5721_v31 }
  0xf1   : > { %575 = vmatpush1.msra.mxu0 %v5723_v32 }
  0xf2   : > { %4992 = vmatprep.subr.bf16.mxu0 %v4991_v63 }
  0xf4   : > { %638 = vmatmul.mubr.f32.vlgmr.msra.gmra.mrb[0].mxu0 %v368_v20 }
  0xf5   : > { %4994 = vmatpush1.bf16.msra.mxu0 %v4993_v0  ;;  %726 = vmatprep.mubr.f32.mxu0 %v5472_v2 }
  0xf6   : > { %663 = vmatprep.subr.mxu0 %v403_v46 }
  0xf9   : > { %667 = vmatpush1.msra.mxu0 %v409_v51 }
  0xfa   : > { %4996 = vmatprep.subr.bf16.mxu0 %v4975_v41 }
  0xfc   : > { %728 = vmatmul.mubr.f32.vlgmr.msra.gmra.mrb[0].mxu0 %v5681_v10 }
  0xfd   : > { %4998 = vmatpush1.bf16.msra.mxu0 %v4977_v42  ;;  %804 = vmatprep.mubr.f32.mxu0 %v5472_v2 }
  0xfe   : > { %743 = vmatprep.subr.mxu0 %v5721_v31 }
 0x101   : > { %745 = vmatpush1.msra.mxu0 %v5723_v32 }
 0x104   : > { %806 = vmatmul.mubr.f32.vlgmr.msra.gmra.mrb[0].mxu0 %v5681_v10  ;;  %v5475_v10 = vmov 0  }
 0x105   : > { %1477 = vmatprep.mubr.f32.mxu0 %v5472_v2  ;;  %5328 = vset.pattern.permute.xlu0 %v5475_v10 }
 0x106   : > { %5329 = vset.pattern.permute.xlu1 %v5475_v10 }
 0x1d7   : > { %v807_v1 = vpop.f32.mrb[0].mxu0 }
 0x1d8   : > { %v812_v4 = vmax.f32 %v807_v1, 0.0  ;;  %v809_v6 = vpop.f32.mrb[1].mxu0 }
 0x1d9   : > { %v813_v8 = vmax.f32 %v809_v6, 0.0 }
 0x1da   : > { %818 = vrot.lane.b32.xlu0 %v812_v4, %s5473_s10  ;;  %v859_v17 = vand.u32 4294901760, %v812_v4 }
 0x1db   : > { %820 = vrot.lane.b32.xlu1 %v813_v8, %s5473_s10  ;;  %v857_v16 = vand.u32 4294901760, %v813_v8 }
 0x1dc   : > { %v5776_v21 = vsub.f32 %v812_v4, %v859_v17 }
 0x1dd   : > { %v5774_v19 = vsub.f32 %v813_v8, %v857_v16 }
 0x1de   : > { %830 = vrot.lane.b32.xlu0 %v812_v4, %s5474_s20  ;;  %v955_v31 = vand.u32 4294901760, %v5776_v21 }
 0x1df   : > { %832 = vrot.lane.b32.xlu1 %v813_v8, %s5474_s20  ;;  %v949_v28 = vand.u32 4294901760, %v5774_v19 }
 0x1e0   : > { %v956_v46 = vsub.f32 %v5776_v21, %v955_v31 }
 0x1e1   : > { %v950_v43 = vsub.f32 %v5774_v19, %v949_v28 }
 0x1e2   : > { %847 = vperm.xlu0 %5328, %v844_v9   ;;  %v957_v56 = vand.u32 4294901760, %v956_v46 }
 0x1e3   : > { %v951_v54 = vand.u32 4294901760, %v950_v43 }
 0x24c   : > { %v819_v20 = vpop.permute.xlu0 %818 }
 0x24d   : > { %v821_v22 = vpop.permute.xlu1 %820 }
 0x24e   : > { %v822_v24 = vsel %vm814_vm7, %v819_v20, %v821_v22  ;;  %v823_v25 = vsel %vm814_vm7, %v821_v22, %v819_v20 }
 0x24f   : > { %v828_v26 = vsel %vm814_vm7, 0.0, %v823_v25  ;;  %v853_v27 = vand.u32 4294901760, %v822_v24 }
 0x250   : > { %v855_v29 = vand.u32 4294901760, %v828_v26  ;;  %v831_v30 = vpop.permute.xlu0 %830 }
 0x251   : > { %v936_v32 = vsub.f32 %v822_v24, %v853_v27  ;;  %v833_v33 = vpop.permute.xlu1 %832  ;;  %v4999_v34 = vpack.c.bf16 %v857_v16, %v853_v27 }
 0x252   : > { %v942_v36 = vsub.f32 %v828_v26, %v855_v29  ;;  %v835_v37 = vsel %vm834_vm8, %v831_v30, %v833_v33  ;;  %v836_v38 = vsel %vm834_vm8, %v833_v33, %v831_v30  ;;  %v5001_v39 = vpack.c.bf16 %v859_v17, %v855_v29  ;;  %v5817_v17 = vld [vmem:[%s5657_s9 + $0x10] sm:$0xff] }
 0x253   : > { %v937_v40 = vand.u32 4294901760, %v936_v32  ;;  %v842_v41 = vsel %vm817_vm9, 0.0, %v836_v38  ;;  %v863_v42 = vand.u32 4294901760, %v835_v37  ;;  %5000 = vmatprep.subr.bf16.mxu1 %v4999_v34  ;;  %v5007_v0 = vpack.c.bf16 %v5774_v19, %v936_v32  ;;  %v4947_v19 = vld [vmem:[%s6469_s0 + $0x8] sm:$0xff] }
 0x254   : > { %v943_v44 = vand.u32 4294901760, %v942_v36  ;;  %v861_v45 = vand.u32 4294901760, %v842_v41  ;;  %5002 = vmatpush1.bf16.msra.mxu1 %v5001_v39  ;;  %v5009_v1 = vpack.c.bf16 %v5776_v21, %v942_v36  ;;  %v1405_v20 = vsel %vm291_vm0, %v4947_v19, 0 }
 0x255   : > { %v966_v47 = vsub.f32 %v835_v37, %v863_v42  ;;  %v938_v49 = vsub.f32 %v936_v32, %v937_v40  ;;  %v5015_v4 = vpack.c.bf16 %v949_v28, %v937_v40  ;;  %v5836_v22 = vand.u32 4294901760, %v1405_v20 }
 0x256   : > { %v944_v50 = vsub.f32 %v942_v36, %v943_v44  ;;  %v960_v51 = vsub.f32 %v842_v41, %v861_v45  ;;  %862 = vmatprep.subr.mxu1 %v861_v45  ;;  %v5017_v6 = vpack.c.bf16 %v955_v31, %v943_v44 }
 0x257   : > { %v967_v52 = vand.u32 4294901760, %v966_v47  ;;  %v939_v53 = vand.u32 4294901760, %v938_v49  ;;  %v5841_v26 = vsub.f32 %v1405_v20, %v5836_v22 }
 0x258   : > { %v945_v55 = vand.u32 4294901760, %v944_v50  ;;  %864 = vmatpush1.msra.mxu1 %v863_v42  ;;  %v961_v57 = vand.u32 4294901760, %v960_v51 }
 0x259   : > { %929 = vmatmul.mubr.f32.vlgmr.msra.gmra.mrb[0].mxu1 %v928_v48  ;;  %v5003_v58 = vpack.c.bf16 %v951_v54, %v939_v53  ;;  %v968_v59 = vsub.f32 %v966_v47, %v967_v52  ;;  %v1480_v29 = vand.u32 4294901760, %v5841_v26 }
 0x25a   : > { %v5005_v60 = vpack.c.bf16 %v957_v56, %v945_v55  ;;  %v962_v61 = vsub.f32 %v960_v51, %v961_v57  ;;  %1029 = vmatprep.mubr.f32.mxu1 %v5472_v2 }
 0x25b   : > { %5004 = vmatprep.subr.bf16.mxu1 %v5003_v58  ;;  %v969_v63 = vand.u32 4294901760, %v968_v59  ;;  %v1481_v40 = vsub.f32 %v5841_v26, %v1480_v29 }
 0x25c   : > { %5006 = vmatpush1.bf16.msra.mxu1 %v5005_v60  ;;  %v963_v62 = vand.u32 4294901760, %v962_v61 }
 0x25d   : > { %v1482_v59 = vand.u32 4294901760, %v1481_v40 }
 0x25e   : > { %964 = vmatprep.subr.mxu1 %v963_v62 }
 0x260   : > { %970 = vmatpush1.msra.mxu1 %v969_v63 }
 0x261   : > { %1031 = vmatmul.mubr.f32.vlgmr.msra.gmra.mrb[0].mxu1 %v5768_v15  ;;  %5008 = vmatprep.subr.bf16.mxu1 %v5007_v0  ;;  %v848_v8 = vpop.permute.xlu0 %847 }
 0x262   : > { %5010 = vmatpush1.bf16.msra.mxu1 %v5009_v1  ;;  %1113 = vmatprep.mubr.f32.mxu1 %v5472_v2 }
 0x263   : > { %1051 = vmatprep.subr.mxu1 %v960_v51 }
 0x266   : > { %1054 = vmatpush1.msra.mxu1 %v966_v47 }
 0x267   : > { %5012 = vmatprep.subr.bf16.mxu1 %v4999_v34 }
 0x269   : > { %1116 = vmatmul.mubr.f32.vlgmr.msra.gmra.mrb[0].mxu1 %v5771_v18 }
 0x26a   : > { %5014 = vmatpush1.bf16.msra.mxu1 %v5001_v39  ;;  %1192 = vmatprep.mubr.f32.mxu1 %v5472_v2 }
 0x26b   : > { %1131 = vmatprep.subr.mxu1 %v861_v45 }
 0x26e   : > { %1133 = vmatpush1.msra.mxu1 %v863_v42 }
 0x26f   : > { %5016 = vmatprep.subr.bf16.mxu1 %v5015_v4 }
 0x271   : > { %1196 = vmatmul.mubr.f32.vlgmr.msra.gmra.mrb[0].mxu1 %v926_v23 }
 0x272   : > { %5018 = vmatpush1.bf16.msra.mxu1 %v5017_v6  ;;  %1284 = vmatprep.mubr.f32.mxu1 %v5472_v2 }
 0x273   : > { %1221 = vmatprep.subr.mxu1 %v961_v57 }
 0x276   : > { %1225 = vmatpush1.msra.mxu1 %v967_v52 }
 0x277   : > { %5020 = vmatprep.subr.bf16.mxu1 %v4999_v34 }
 0x279   : > { %1286 = vmatmul.mubr.f32.vlgmr.msra.gmra.mrb[0].mxu1 %v5768_v15 }
 0x27a   : > { %5022 = vmatpush1.bf16.msra.mxu1 %v5001_v39  ;;  %1362 = vmatprep.mubr.f32.mxu1 %v5472_v2 }
 0x27b   : > { %1301 = vmatprep.subr.mxu1 %v861_v45 }
 0x27e   : > { %1303 = vmatpush1.msra.mxu1 %v863_v42 }
 0x281   : > { %1364 = vmatmul.mubr.f32.vlgmr.msra.gmra.mrb[0].mxu1 %v5768_v15  ;;  %v5826_v15 = vld [vmem:[%s5657_s9 + $0x18] sm:$0xff] }
 0x282   : > { %2037 = vmatprep.mubr.f32.mxu1 %v5472_v2 }
 0x354   : > { %v1365_v9 = vpop.f32.mrb[0].mxu1 }
 0x355   : > { %v5167_v10 = vadd.f32 %v1365_v9, %v848_v8  ;;  %v1367_v13 = vpop.f32.mrb[1].mxu1 }
 0x356   : > { %v5168_v16 = vadd.f32 %v1367_v13, %v848_v8 }
 0x357   : > { %v1370_v14 = vmax.f32 %v5167_v10, 0.0 }
 0x358   : > { %v1371_v18 = vmax.f32 %v5168_v16, 0.0 }
 0x359   : > { %1389 = vrot.lane.b32.xlu0 %v1370_v14, %s5476_s7  ;;  %1376 = vrot.lane.b32.xlu1 %v1370_v14, %s5477_s26  ;;  %v1413_v21 = vand.u32 4294901760, %v1370_v14 }
 0x35a   : > { %v1411_v23 = vand.u32 4294901760, %v1371_v18 }
 0x35b   : > { %v5838_v25 = vsub.f32 %v1370_v14, %v1413_v21 }
 0x35c   : > { %v5844_v27 = vsub.f32 %v1371_v18, %v1411_v23 }
 0x35d   : > { %1378 = vrot.lane.b32.xlu1 %v1371_v18, %s5477_s26  ;;  %2577 = vrot.lane.b32.xlu0 %v5817_v17, %s5471_s28  ;;  %v1509_v30 = vand.u32 4294901760, %v5838_v25 }
 0x35e   : > { %v1503_v35 = vand.u32 4294901760, %v5844_v27 }
 0x35f   : > { %v1510_v41 = vsub.f32 %v5838_v25, %v1509_v30 }
 0x360   : > { %v1504_v49 = vsub.f32 %v5844_v27, %v1503_v35 }
 0x361   : > { %1391 = vrot.lane.b32.xlu1 %v1371_v18, %s5476_s7  ;;  %2585 = vrot.lane.b32.xlu0 %v5817_v17, %s5470_s23  ;;  %v1511_v60 = vand.u32 4294901760, %v1510_v41 }
 0x362   : > { %v1505_v0 = vand.u32 4294901760, %v1504_v49 }
 0x365   : > { %2579 = vrot.lane.b32.xlu1 %v5826_v15, %s5471_s28  ;;  %s5479_s28 = smov 96  }
 0x369   : > { %2587 = vrot.lane.b32.xlu1 %v5826_v15, %s5470_s23  ;;  %s5478_s23 = smov 32  }
 0x3cb   : > { %v1377_v24 = vpop.permute.xlu1 %1376  ;;  %v1390_v38 = vpop.permute.xlu0 %1389 }
 0x3cf   : > { %v1379_v28 = vpop.permute.xlu1 %1378  ;;  %v2578_v18 = vpop.permute.xlu0 %2577 }
 0x3d0   : > { %v1381_v31 = vsel %vm1380_vm10, %v1377_v24, %v1379_v28  ;;  %v1382_v32 = vsel %vm1380_vm10, %v1379_v28, %v1377_v24 }
 0x3d1   : > { %v1387_v33 = vsel %vm1372_vm11, 0.0, %v1382_v32  ;;  %v1388_v34 = vsel %vm1373_vm12, 0.0, %v1381_v31  ;;  %v4956_v31 = vld [vmem:[%s6469_s0 + $0x10] sm:$0xff] }
 0x3d2   : > { %v1407_v36 = vand.u32 4294901760, %v1388_v34  ;;  %v1409_v37 = vand.u32 4294901760, %v1387_v33 }
 0x3d3   : > { %v1392_v39 = vpop.permute.xlu1 %1391 }
 0x3d4   : > { %v5868_v42 = vpack.c.bf16 %v1413_v21, %v1409_v37  ;;  %v1490_v43 = vsub.f32 %v1388_v34, %v1407_v36  ;;  %v5870_v44 = vsub.f32 %v1387_v33, %v1409_v37  ;;  %v1394_v45 = vsel %vm1393_vm13, %v1390_v38, %v1392_v39 }
 0x3d5   : > { %v1395_v46 = vsel %vm1393_vm13, %v1392_v39, %v1390_v38  ;;  %v1400_v47 = vsel %vm1374_vm14, 0.0, %v1394_v45  ;;  %v5878_v48 = vpack.c.bf16 %v1411_v23, %v1407_v36  ;;  %v2586_v23 = vpop.permute.xlu0 %2585  ;;  %v2602_v37 = vand.u32 4294901760, %v5826_v15 }
 0x3d6   : > { %v1491_v50 = vand.u32 4294901760, %v1490_v43  ;;  %v1497_v51 = vand.u32 4294901760, %v5870_v44  ;;  %v1401_v52 = vsel %vm1375_vm15, 0.0, %v1395_v46  ;;  %v5886_v53 = vand.u32 4294901760, %v1400_v47 }
 0x3d7   : > { %v5888_v54 = vand.u32 4294901760, %v1401_v52  ;;  %5024 = vmatprep.subr.bf16.mxu0 %v5878_v48  ;;  %v5031_v14 = vpack.c.bf16 %v5844_v27, %v1490_v43  ;;  %v5033_v16 = vpack.c.bf16 %v5838_v25, %v5870_v44  ;;  %v2580_v19 = vpop.permute.xlu1 %2579  ;;  %v2604_v38 = vand.u32 4294901760, %v5817_v17 }
 0x3d8   : > { %v1498_v55 = vsub.f32 %v5870_v44, %v1497_v51  ;;  %v5893_v56 = vsub.f32 %v1400_v47, %v5886_v53  ;;  %5026 = vmatpush1.bf16.msra.mxu0 %v5868_v42  ;;  %v1492_v57 = vsub.f32 %v1490_v43, %v1491_v50  ;;  %v2581_v20 = vsel %vm268_vm2, %v2578_v18, %v2580_v19 }
 0x3d9   : > { %v1514_v58 = vsub.f32 %v1401_v52, %v5888_v54  ;;  %1416 = vmatprep.subr.mxu0 %v5888_v54  ;;  %v2582_v21 = vsel %vm268_vm2, %v2580_v19, %v2578_v18  ;;  %v5039_v28 = vpack.c.bf16 %v1503_v35, %v1491_v50  ;;  %v2584_v32 = vsel %vm261_vm6, 0.0, %v2581_v20 }
 0x3da   : > { %v1499_v61 = vand.u32 4294901760, %v1498_v55  ;;  %v1521_v62 = vand.u32 4294901760, %v5893_v56  ;;  %v1493_v63 = vand.u32 4294901760, %v1492_v57  ;;  %v2583_v33 = vsel %vm260_vm5, 0.0, %v2582_v21 }
 0x3db   : > { %v1515_v1 = vand.u32 4294901760, %v1514_v58  ;;  %v2588_v24 = vpop.permute.xlu1 %2587  ;;  %v5041_v27 = vpack.c.bf16 %v1509_v30, %v1497_v51  ;;  %v2596_v35 = vsel %vm291_vm0, %v4956_v31, 0  ;;  %v2598_v36 = vand.u32 4294901760, %v2584_v32 }
 0x3dc   : > { %1418 = vmatpush1.msra.mxu0 %v5886_v53  ;;  %v5027_v4 = vpack.c.bf16 %v1505_v0, %v1493_v63  ;;  %v5029_v6 = vpack.c.bf16 %v1511_v60, %v1499_v61  ;;  %v1522_v9 = vsub.f32 %v5893_v56, %v1521_v62  ;;  %v2590_v34 = vsel %vm281_vm1, %v2588_v24, %v2586_v23 }
 0x3dd   : > { %1483 = vmatmul.mubr.f32.vlgmr.msra.gmra.mrb[2].mxu0 %v1482_v59  ;;  %v1516_v8 = vsub.f32 %v1514_v58, %v1515_v1  ;;  %v2600_v39 = vand.u32 4294901760, %v2583_v33  ;;  %v2592_v40 = vsel %vm263_vm4, 0.0, %v2590_v34  ;;  %v5939_v25 = vand.u32 4294901760, %v2596_v35  ;;  %v1956_v34 = vld [vmem:[#allocation2 + $0x8] sm:$0xff] }
 0x3de   : > { %5028 = vmatprep.subr.bf16.mxu0 %v5027_v4  ;;  %1583 = vmatprep.mubr.f32.mxu0 %v5472_v2  ;;  %v1523_v13 = vand.u32 4294901760, %v1522_v9  ;;  %v2589_v30 = vsel %vm281_vm1, %v2586_v23, %v2588_v24  ;;  %v5948_v41 = vsub.f32 %v5826_v15, %v2602_v37  ;;  %v5951_v43 = vsub.f32 %v5817_v17, %v2604_v38 }
 0x3df   : > { %5030 = vmatpush1.bf16.msra.mxu0 %v5029_v6  ;;  %v1517_v10 = vand.u32 4294901760, %v1516_v8  ;;  %v5953_v44 = vsub.f32 %v2583_v33, %v2600_v39  ;;  %v2591_v45 = vsel %vm262_vm3, 0.0, %v2589_v30  ;;  %v5959_v46 = vsub.f32 %v2596_v35, %v5939_v25  ;;  %v4957_v33 = vld [vmem:[%s6471_s2 + $0x10] sm:$0xff] }
 0x3e0   : > { %v2694_v17 = vand.u32 4294901760, %v5948_v41  ;;  %v2700_v50 = vand.u32 4294901760, %v5951_v43  ;;  %v5071_v51 = vpack.c.bf16 %v2602_v37, %v2598_v36  ;;  %vm1926_vm1 = vcmp.lt.s32.totalorder %v5675_v5, 32 }
 0x3e1   : > { %1518 = vmatprep.subr.mxu0 %v1517_v10  ;;  %v2688_v49 = vand.u32 4294901760, %v5953_v44  ;;  %v2671_v52 = vand.u32 4294901760, %v5959_v46  ;;  %vm1946_vm2 = vcmp.lt.s32.totalorder %v5675_v5, 96  ;;  %vm1929_vm3 = vcmp.ge.s32.totalorder %v5679_v7, 224 }
 0x3e2   : > { %v2701_v60 = vsub.f32 %v5951_v43, %v2700_v50 }
 0x3e3   : > { %1524 = vmatpush1.msra.mxu0 %v1523_v13  ;;  %v5089_v18 = vpack.c.bf16 %v2700_v50, %v2688_v49 }
 0x3e4   : > { %5032 = vmatprep.subr.bf16.mxu0 %v5031_v14  ;;  %v2702_v4 = vand.u32 4294901760, %v2701_v60  ;;  %v5081_v14 = vpack.c.bf16 %v5951_v43, %v5953_v44 }
 0x3e5   : > { %1585 = vmatmul.mubr.f32.vlgmr.msra.gmra.mrb[2].mxu0 %v5836_v22 }
 0x3e6   : > { %5034 = vmatpush1.bf16.msra.mxu0 %v5033_v16  ;;  %1667 = vmatprep.mubr.f32.mxu0 %v5472_v2 }
 0x3e7   : > { %1605 = vmatprep.subr.mxu0 %v1514_v58  ;;  %v5073_v58 = vpack.c.bf16 %v2604_v38, %v2600_v39 }
 0x3ea   : > { %1608 = vmatpush1.msra.mxu0 %v5893_v56  ;;  %v2695_v56 = vsub.f32 %v5948_v41, %v2694_v17 }
 0x3eb   : > { %5036 = vmatprep.subr.bf16.mxu0 %v5878_v48 }
 0x3ed   : > { %1670 = vmatmul.mubr.f32.vlgmr.msra.gmra.mrb[2].mxu0 %v5841_v26  ;;  %v5943_v26 = vsub.f32 %v2584_v32, %v2598_v36 }
 0x3ee   : > { %5038 = vmatpush1.bf16.msra.mxu0 %v5868_v42  ;;  %1746 = vmatprep.mubr.f32.mxu0 %v5472_v2 }
 0x3ef   : > { %1685 = vmatprep.subr.mxu0 %v5888_v54  ;;  %v2682_v47 = vand.u32 4294901760, %v5943_v26  ;;  %v5079_v13 = vpack.c.bf16 %v5948_v41, %v5943_v26 }
 0x3f1   : > { %v2683_v55 = vsub.f32 %v5943_v26, %v2682_v47  ;;  %v5087_v16 = vpack.c.bf16 %v2694_v17, %v2682_v47 }
 0x3f2   : > { %1687 = vmatpush1.msra.mxu0 %v5886_v53 }
 0x3f3   : > { %5040 = vmatprep.subr.bf16.mxu0 %v5039_v28  ;;  %v2684_v61 = vand.u32 4294901760, %v2683_v55 }
 0x3f5   : > { %1750 = vmatmul.mubr.f32.vlgmr.msra.gmra.mrb[2].mxu0 %v1480_v29  ;;  %v5945_v29 = vand.u32 4294901760, %v2592_v40 }
 0x3f6   : > { %5042 = vmatpush1.bf16.msra.mxu0 %v5041_v27  ;;  %1838 = vmatprep.mubr.f32.mxu0 %v5472_v2  ;;  %v1965_v27 = vsel %vm291_vm0, %v1956_v34, 0 }
 0x3f7   : > { %1775 = vmatprep.subr.mxu0 %v1515_v1  ;;  %v5964_v15 = vsub.f32 %v2592_v40, %v5945_v29  ;;  %v6027_v35 = vand.u32 4294901760, %v1965_v27 }
 0x3f9   : > { %v2706_v57 = vand.u32 4294901760, %v5964_v15  ;;  %v6030_v38 = vsub.f32 %v1965_v27, %v6027_v35 }
 0x3fa   : > { %1779 = vmatpush1.msra.mxu0 %v1521_v62  ;;  %v2696_v62 = vand.u32 4294901760, %v2695_v56 }
 0x3fb   : > { %5044 = vmatprep.subr.bf16.mxu0 %v5878_v48  ;;  %v5969_v48 = vand.u32 4294901760, %v2591_v45  ;;  %v2707_v63 = vsub.f32 %v5964_v15, %v2706_v57  ;;  %v2040_v26 = vand.u32 4294901760, %v6030_v38 }
 0x3fc   : > { %v5075_v6 = vpack.c.bf16 %v2696_v62, %v2684_v61 }
 0x3fd   : > { %1840 = vmatmul.mubr.f32.vlgmr.msra.gmra.mrb[2].mxu0 %v5836_v22  ;;  %v2711_v59 = vsub.f32 %v2591_v45, %v5969_v48  ;;  %v2708_v8 = vand.u32 4294901760, %v2707_v63  ;;  %v2041_v50 = vsub.f32 %v6030_v38, %v2040_v26 }
 0x3fe   : > { %5046 = vmatpush1.bf16.msra.mxu0 %v5868_v42  ;;  %1916 = vmatprep.mubr.f32.mxu0 %v5472_v2  ;;  %v2689_v42 = vsub.f32 %v5953_v44, %v2688_v49 }
 0x3ff   : > { %1855 = vmatprep.subr.mxu0 %v5888_v54  ;;  %v2672_v54 = vsub.f32 %v5959_v46, %v2671_v52  ;;  %v2712_v1 = vand.u32 4294901760, %v2711_v59  ;;  %v2042_v63 = vand.u32 4294901760, %v2041_v50 }
 0x400   : > { %v2690_v0 = vand.u32 4294901760, %v2689_v42 }
 0x401   : > { %v2713_v10 = vsub.f32 %v2711_v59, %v2712_v1 }
 0x402   : > { %1857 = vmatpush1.msra.mxu0 %v5886_v53  ;;  %v2673_v53 = vand.u32 4294901760, %v2672_v54  ;;  %v5077_v9 = vpack.c.bf16 %v2702_v4, %v2690_v0 }
 0x403   : > { %5072 = vmatprep.subr.bf16.mxu0 %v5071_v51 }
 0x405   : > { %1918 = vmatmul.mubr.f32.vlgmr.msra.gmra.mrb[2].mxu0 %v5836_v22  ;;  %v2714_v22 = vand.u32 4294901760, %v2713_v10 }
 0x406   : > { %5074 = vmatpush1.bf16.msra.mxu0 %v5073_v58  ;;  %2668 = vmatprep.mubr.f32.mxu0 %v5472_v2 }
 0x407   : > { %2607 = vmatprep.subr.mxu0 %v5945_v29 }
 0x40a   : > { %2609 = vmatpush1.msra.mxu0 %v5969_v48 }
 0x40b   : > { %2674 = vmatmul.mubr.f32.vlgmr.msra.gmra.mrb[4].mxu0 %v2673_v53  ;;  %5076 = vmatprep.subr.bf16.mxu0 %v5075_v6 }
 0x40c   : > { %5078 = vmatpush1.bf16.msra.mxu0 %v5077_v9  ;;  %2774 = vmatprep.mubr.f32.mxu0 %v5472_v2 }
 0x40d   : > { %2709 = vmatprep.subr.mxu0 %v2708_v8 }
 0x410   : > { %2715 = vmatpush1.msra.mxu0 %v2714_v22 }
 0x411   : > { %5080 = vmatprep.subr.bf16.mxu0 %v5079_v13 }
 0x413   : > { %2776 = vmatmul.mubr.f32.vlgmr.msra.gmra.mrb[4].mxu0 %v5939_v25 }
 0x414   : > { %5082 = vmatpush1.bf16.msra.mxu0 %v5081_v14  ;;  %2858 = vmatprep.mubr.f32.mxu0 %v5472_v2 }
 0x415   : > { %2796 = vmatprep.subr.mxu0 %v5964_v15 }
 0x418   : > { %2799 = vmatpush1.msra.mxu0 %v2711_v59 }
 0x419   : > { %5084 = vmatprep.subr.bf16.mxu0 %v5071_v51 }
 0x41b   : > { %2861 = vmatmul.mubr.f32.vlgmr.msra.gmra.mrb[4].mxu0 %v5959_v46 }
 0x41c   : > { %5086 = vmatpush1.bf16.msra.mxu0 %v5073_v58  ;;  %2937 = vmatprep.mubr.f32.mxu0 %v5472_v2 }
 0x41d   : > { %2876 = vmatprep.subr.mxu0 %v5945_v29 }
 0x420   : > { %2878 = vmatpush1.msra.mxu0 %v5969_v48 }
 0x421   : > { %5088 = vmatprep.subr.bf16.mxu0 %v5087_v16 }
 0x423   : > { %2941 = vmatmul.mubr.f32.vlgmr.msra.gmra.mrb[4].mxu0 %v2671_v52 }
 0x424   : > { %5090 = vmatpush1.bf16.msra.mxu0 %v5089_v18  ;;  %3029 = vmatprep.mubr.f32.mxu0 %v5472_v2 }
 0x425   : > { %2966 = vmatprep.subr.mxu0 %v2706_v57 }
 0x428   : > { %2970 = vmatpush1.msra.mxu0 %v2712_v1 }
 0x429   : > { %5092 = vmatprep.subr.bf16.mxu0 %v5071_v51 }
 0x42b   : > { %3031 = vmatmul.mubr.f32.vlgmr.msra.gmra.mrb[4].mxu0 %v5939_v25 }
 0x42c   : > { %5094 = vmatpush1.bf16.msra.mxu0 %v5073_v58  ;;  %3107 = vmatprep.mubr.f32.mxu0 %v5472_v2 }
 0x42d   : > { %3046 = vmatprep.subr.mxu0 %v5945_v29 }
 0x430   : > { %3048 = vmatpush1.msra.mxu0 %v5969_v48 }
 0x433   : > { %3109 = vmatmul.mubr.f32.vlgmr.msra.gmra.mrb[4].mxu0 %v5939_v25 }
 0x434   : > { %3755 = vmatprep.mubr.f32.mxu0 %v5472_v2 }
 0x4d8   : > { %v1919_v19 = vpop.f32.mrb[2].mxu0 }
 0x4d9   : > { %v1924_v20 = vmax.f32 %v1919_v19, 0.0  ;;  %v1921_v21 = vpop.f32.mrb[3].mxu0 }
 0x4da   : > { %v1925_v23 = vmax.f32 %v1921_v21, 0.0 }
 0x4db   : > { %1930 = vrot.lane.b32.xlu0 %v1924_v20, %s5478_s23  ;;  %v1973_v37 = vand.u32 4294901760, %v1924_v20 }
 0x4dc   : > { %1932 = vrot.lane.b32.xlu1 %v1925_v23, %s5478_s23  ;;  %v1971_v36 = vand.u32 4294901760, %v1925_v23 }
 0x4dd   : > { %v6035_v25 = vsub.f32 %v1924_v20, %v1973_v37 }
 0x4de   : > { %v6033_v39 = vsub.f32 %v1925_v23, %v1971_v36 }
 0x4df   : > { %1942 = vrot.lane.b32.xlu0 %v1924_v20, %s5479_s28  ;;  %v2069_v15 = vand.u32 4294901760, %v6035_v25 }
 0x4e0   : > { %1944 = vrot.lane.b32.xlu1 %v1925_v23, %s5479_s28  ;;  %v2063_v45 = vand.u32 4294901760, %v6033_v39 }
 0x4e1   : > { %v2070_v61 = vsub.f32 %v6035_v25, %v2069_v15 }
 0x4e2   : > { %v2064_v59 = vsub.f32 %v6033_v39, %v2063_v45 }
 0x4e3   : > { %v2071_v10 = vand.u32 4294901760, %v2070_v61 }
 0x4e4   : > { %v2065_v8 = vand.u32 4294901760, %v2064_v59 }
 0x506   : > { %v3110_v24 = vpop.f32.mrb[4].mxu0 }
 0x507   : > { %v6011_v28 = vmax.f32 %v3110_v24, 0.0  ;;  %v3112_v31 = vpop.f32.mrb[5].mxu0 }
 0x508   : > { %v6013_v32 = vmax.f32 %v3112_v31, 0.0  ;;  %v3134_v31 = vld [vmem:[#allocation2 + $0x10] sm:$0xff] }
 0x509   : > { %3117 = vrot.lane.b32.xlu0 %v6011_v28, %s5473_s10  ;;  %v3143_v34 = vsel %vm291_vm0, %v3134_v31, 0 }
 0x50a   : > { %3119 = vrot.lane.b32.xlu1 %v6013_v32, %s5473_s10  ;;  %v6088_v27 = vand.u32 4294901760, %v3143_v34 }
 0x50d   : > { %3125 = vrot.lane.b32.xlu0 %v6011_v28, %s5474_s20 }
 0x50e   : > { %3127 = vrot.lane.b32.xlu1 %v6013_v32, %s5474_s20  ;;  %s5398_s20 = scalar_lea.vmem %s5397_s29, 1024 }
 0x511   : > { %3139 = vperm.xlu0 %5328, %v4957_v33  }
 0x54d   : > { %v1931_v40 = vpop.permute.xlu0 %1930 }
 0x54e   : > { %v1933_v30 = vpop.permute.xlu1 %1932 }
 0x54f   : > { %v1934_v29 = vsel %vm1926_vm1, %v1931_v40, %v1933_v30  ;;  %v1935_v41 = vsel %vm1926_vm1, %v1933_v30, %v1931_v40 }
 0x550   : > { %v1940_v43 = vsel %vm1926_vm1, 0.0, %v1935_v41  ;;  %v1967_v44 = vand.u32 4294901760, %v1934_v29 }
 0x551   : > { %v1969_v46 = vand.u32 4294901760, %v1940_v43  ;;  %v1943_v47 = vpop.permute.xlu0 %1942 }
 0x552   : > { %v2050_v17 = vsub.f32 %v1934_v29, %v1967_v44  ;;  %v1945_v49 = vpop.permute.xlu1 %1944  ;;  %v6048_v48 = vpack.c.bf16 %v1971_v36, %v1967_v44  ;;  %v3149_v36 = vand.u32 4294901760, %v6013_v32 }
 0x553   : > { %v6053_v51 = vpack.c.bf16 %v1973_v37, %v1969_v46  ;;  %v2056_v52 = vsub.f32 %v1940_v43, %v1969_v46  ;;  %v1947_v55 = vsel %vm1946_vm2, %v1943_v47, %v1945_v49  ;;  %v1948_v56 = vsel %vm1946_vm2, %v1945_v49, %v1943_v47 }
 0x554   : > { %v2051_v57 = vand.u32 4294901760, %v2050_v17  ;;  %v1954_v58 = vsel %vm1929_vm3, 0.0, %v1948_v56  ;;  %v6061_v42 = vand.u32 4294901760, %v1947_v55  ;;  %5048 = vmatprep.subr.bf16.mxu1 %v6048_v48  ;;  %v5055_v21 = vpack.c.bf16 %v6033_v39, %v2050_v17 }
 0x555   : > { %v2057_v60 = vand.u32 4294901760, %v2056_v52  ;;  %v6065_v54 = vand.u32 4294901760, %v1954_v58  ;;  %5050 = vmatpush1.bf16.msra.mxu1 %v6053_v51  ;;  %v5057_v23 = vpack.c.bf16 %v6035_v25, %v2056_v52  ;;  %v3151_v37 = vand.u32 4294901760, %v6011_v28 }
 0x556   : > { %v2080_v62 = vsub.f32 %v1947_v55, %v6061_v42  ;;  %v2052_v0 = vsub.f32 %v2050_v17, %v2051_v57  ;;  %v5063_v24 = vpack.c.bf16 %v2063_v45, %v2051_v57  ;;  %v6094_v39 = vsub.f32 %v3143_v34, %v6088_v27 }
 0x557   : > { %v2058_v1 = vsub.f32 %v2056_v52, %v2057_v60  ;;  %v2074_v4 = vsub.f32 %v1954_v58, %v6065_v54  ;;  %1976 = vmatprep.subr.mxu1 %v6065_v54  ;;  %v5065_v33 = vpack.c.bf16 %v2069_v15, %v2057_v60  ;;  %v6102_v25 = vsub.f32 %v6011_v28, %v3151_v37 }
 0x558   : > { %v2081_v53 = vand.u32 4294901760, %v2080_v62  ;;  %v2053_v6 = vand.u32 4294901760, %v2052_v0 }
 0x559   : > { %v2059_v9 = vand.u32 4294901760, %v2058_v1  ;;  %1978 = vmatpush1.msra.mxu1 %v6061_v42  ;;  %v2075_v22 = vand.u32 4294901760, %v2074_v4  ;;  %v3247_v46 = vand.u32 4294901760, %v6102_v25 }
 0x55a   : > { %2043 = vmatmul.mubr.f32.vlgmr.msra.gmra.mrb[2].mxu1 %v2042_v63  ;;  %v5051_v13 = vpack.c.bf16 %v2065_v8, %v2053_v6  ;;  %v2082_v14 = vsub.f32 %v2080_v62, %v2081_v53 }
 0x55b   : > { %v5053_v16 = vpack.c.bf16 %v2071_v10, %v2059_v9  ;;  %v2076_v18 = vsub.f32 %v2074_v4, %v2075_v22  ;;  %2143 = vmatprep.mubr.f32.mxu1 %v5472_v2  ;;  %v3248_v60 = vsub.f32 %v6102_v25, %v3247_v46 }
 0x55c   : > { %5052 = vmatprep.subr.bf16.mxu1 %v5051_v13  ;;  %v2083_v20 = vand.u32 4294901760, %v2082_v14 }
 0x55d   : > { %5054 = vmatpush1.bf16.msra.mxu1 %v5053_v16  ;;  %v2077_v19 = vand.u32 4294901760, %v2076_v18  ;;  %v3249_v6 = vand.u32 4294901760, %v3248_v60 }
 0x55f   : > { %2078 = vmatprep.subr.mxu1 %v2077_v19 }
 0x561   : > { %2084 = vmatpush1.msra.mxu1 %v2083_v20 }
 0x562   : > { %2145 = vmatmul.mubr.f32.vlgmr.msra.gmra.mrb[2].mxu1 %v6027_v35  ;;  %5056 = vmatprep.subr.bf16.mxu1 %v5055_v21 }
 0x563   : > { %5058 = vmatpush1.bf16.msra.mxu1 %v5057_v23  ;;  %2227 = vmatprep.mubr.f32.mxu1 %v5472_v2 }
 0x564   : > { %2165 = vmatprep.subr.mxu1 %v2074_v4 }
 0x567   : > { %2168 = vmatpush1.msra.mxu1 %v2080_v62 }
 0x568   : > { %5060 = vmatprep.subr.bf16.mxu1 %v6048_v48 }
 0x56a   : > { %2230 = vmatmul.mubr.f32.vlgmr.msra.gmra.mrb[2].mxu1 %v6030_v38  ;;  %v6098_v38 = vsub.f32 %v6013_v32, %v3149_v36 }
 0x56b   : > { %5062 = vmatpush1.bf16.msra.mxu1 %v6053_v51  ;;  %2306 = vmatprep.mubr.f32.mxu1 %v5472_v2 }
 0x56c   : > { %2245 = vmatprep.subr.mxu1 %v6065_v54  ;;  %v3241_v28 = vand.u32 4294901760, %v6098_v38 }
 0x56e   : > { %v3242_v58 = vsub.f32 %v6098_v38, %v3241_v28 }
 0x56f   : > { %2247 = vmatpush1.msra.mxu1 %v6061_v42 }
 0x570   : > { %5064 = vmatprep.subr.bf16.mxu1 %v5063_v24 }
 0x572   : > { %2310 = vmatmul.mubr.f32.vlgmr.msra.gmra.mrb[2].mxu1 %v2040_v26  ;;  %v3218_v26 = vand.u32 4294901760, %v6094_v39 }
 0x573   : > { %5066 = vmatpush1.bf16.msra.mxu1 %v5065_v33  ;;  %2398 = vmatprep.mubr.f32.mxu1 %v5472_v2 }
 0x574   : > { %2335 = vmatprep.subr.mxu1 %v2075_v22  ;;  %v3219_v49 = vsub.f32 %v6094_v39, %v3218_v26 }
 0x576   : > { %v3220_v61 = vand.u32 4294901760, %v3219_v49 }
 0x577   : > { %2339 = vmatpush1.msra.mxu1 %v2081_v53  ;;  %v3243_v53 = vand.u32 4294901760, %v3242_v58 }
 0x578   : > { %5068 = vmatprep.subr.bf16.mxu1 %v6048_v48 }
 0x57a   : > { %2400 = vmatmul.mubr.f32.vlgmr.msra.gmra.mrb[2].mxu1 %v6027_v35 }
 0x57b   : > { %v3118_v40 = vpop.permute.xlu0 %3117  ;;  %5070 = vmatpush1.bf16.msra.mxu1 %v6053_v51  ;;  %2476 = vmatprep.mubr.f32.mxu1 %v5472_v2 }
 0x57c   : > { %v3120_v30 = vpop.permute.xlu1 %3119  ;;  %2415 = vmatprep.subr.mxu1 %v6065_v54 }
 0x57d   : > { %v3121_v29 = vsel %vm814_vm7, %v3118_v40, %v3120_v30  ;;  %v3122_v32 = vsel %vm814_vm7, %v3120_v30, %v3118_v40 }
 0x57e   : > { %v3123_v41 = vsel %vm814_vm7, 0.0, %v3122_v32  ;;  %v3145_v43 = vand.u32 4294901760, %v3121_v29 }
 0x57f   : > { %v3147_v44 = vand.u32 4294901760, %v3123_v41  ;;  %v3126_v45 = vpop.permute.xlu0 %3125  ;;  %2417 = vmatpush1.msra.mxu1 %v6061_v42 }
 0x580   : > { %v3228_v47 = vsub.f32 %v3121_v29, %v3145_v43  ;;  %v3128_v15 = vpop.permute.xlu1 %3127  ;;  %v6116_v17 = vpack.c.bf16 %v3149_v36, %v3145_v43 }
 0x581   : > { %v6121_v48 = vpack.c.bf16 %v3151_v37, %v3147_v44  ;;  %v3234_v50 = vsub.f32 %v3123_v41, %v3147_v44  ;;  %v3129_v51 = vsel %vm834_vm8, %v3126_v45, %v3128_v15  ;;  %v3130_v52 = vsel %vm834_vm8, %v3128_v15, %v3126_v45 }
 0x582   : > { %v3229_v55 = vand.u32 4294901760, %v3228_v47  ;;  %v3132_v56 = vsel %vm817_vm9, 0.0, %v3130_v52  ;;  %v3155_v57 = vand.u32 4294901760, %v3129_v51  ;;  %5096 = vmatprep.subr.bf16.mxu1 %v6116_v17  ;;  %2478 = vmatmul.mubr.f32.vlgmr.msra.gmra.mrb[2].mxu1 %v6027_v35  ;;  %v5103_v18 = vpack.c.bf16 %v6098_v38, %v3228_v47 }
 0x583   : > { %v3235_v42 = vand.u32 4294901760, %v3234_v50  ;;  %v3153_v59 = vand.u32 4294901760, %v3132_v56  ;;  %5098 = vmatpush1.bf16.msra.mxu1 %v6121_v48  ;;  %3215 = vmatprep.mubr.f32.mxu1 %v5472_v2  ;;  %v5105_v19 = vpack.c.bf16 %v6102_v25, %v3234_v50 }
 0x584   : > { %v3258_v54 = vsub.f32 %v3129_v51, %v3155_v57  ;;  %v3230_v62 = vsub.f32 %v3228_v47, %v3229_v55  ;;  %v5111_v20 = vpack.c.bf16 %v3241_v28, %v3229_v55 }
 0x585   : > { %v3236_v63 = vsub.f32 %v3234_v50, %v3235_v42  ;;  %v3252_v0 = vsub.f32 %v3132_v56, %v3153_v59  ;;  %3154 = vmatprep.subr.mxu1 %v3153_v59  ;;  %v5113_v21 = vpack.c.bf16 %v3247_v46, %v3235_v42 }
 0x586   : > { %v3259_v1 = vand.u32 4294901760, %v3258_v54  ;;  %v3231_v4 = vand.u32 4294901760, %v3230_v62 }
 0x587   : > { %v3237_v35 = vand.u32 4294901760, %v3236_v63  ;;  %3156 = vmatpush1.msra.mxu1 %v3155_v57  ;;  %v3253_v8 = vand.u32 4294901760, %v3252_v0 }
 0x588   : > { %3221 = vmatmul.mubr.f32.vlgmr.msra.gmra.mrb[4].mxu1 %v3220_v61  ;;  %v5099_v9 = vpack.c.bf16 %v3243_v53, %v3231_v4  ;;  %v3260_v10 = vsub.f32 %v3258_v54, %v3259_v1 }
 0x589   : > { %v5101_v22 = vpack.c.bf16 %v3249_v6, %v3237_v35  ;;  %v3254_v13 = vsub.f32 %v3252_v0, %v3253_v8  ;;  %3321 = vmatprep.mubr.f32.mxu1 %v5472_v2 }
 0x58a   : > { %5100 = vmatprep.subr.bf16.mxu1 %v5099_v9  ;;  %v3261_v16 = vand.u32 4294901760, %v3260_v10 }
 0x58b   : > { %5102 = vmatpush1.bf16.msra.mxu1 %v5101_v22  ;;  %v3255_v14 = vand.u32 4294901760, %v3254_v13 }
 0x58d   : > { %3256 = vmatprep.subr.mxu1 %v3255_v14 }
 0x58f   : > { %3262 = vmatpush1.msra.mxu1 %v3261_v16 }
 0x590   : > { %3323 = vmatmul.mubr.f32.vlgmr.msra.gmra.mrb[4].mxu1 %v6088_v27  ;;  %5104 = vmatprep.subr.bf16.mxu1 %v5103_v18  ;;  %v3140_v31 = vpop.permute.xlu0 %3139 }
 0x591   : > { %5106 = vmatpush1.bf16.msra.mxu1 %v5105_v19  ;;  %3405 = vmatprep.mubr.f32.mxu1 %v5472_v2 }
 0x592   : > { %3343 = vmatprep.subr.mxu1 %v3252_v0 }
 0x595   : > { %3346 = vmatpush1.msra.mxu1 %v3258_v54 }
 0x596   : > { %5108 = vmatprep.subr.bf16.mxu1 %v6116_v17 }
 0x598   : > { %3408 = vmatmul.mubr.f32.vlgmr.msra.gmra.mrb[4].mxu1 %v6094_v39 }
 0x599   : > { %5110 = vmatpush1.bf16.msra.mxu1 %v6121_v48  ;;  %3484 = vmatprep.mubr.f32.mxu1 %v5472_v2 }
 0x59a   : > { %3423 = vmatprep.subr.mxu1 %v3153_v59 }
 0x59d   : > { %3425 = vmatpush1.msra.mxu1 %v3155_v57 }
 0x59e   : > { %5112 = vmatprep.subr.bf16.mxu1 %v5111_v20 }
 0x5a0   : > { %3488 = vmatmul.mubr.f32.vlgmr.msra.gmra.mrb[4].mxu1 %v3218_v26 }
 0x5a1   : > { %5114 = vmatpush1.bf16.msra.mxu1 %v5113_v21  ;;  %3576 = vmatprep.mubr.f32.mxu1 %v5472_v2 }
 0x5a2   : > { %3513 = vmatprep.subr.mxu1 %v3253_v8 }
 0x5a5   : > { %3517 = vmatpush1.msra.mxu1 %v3259_v1 }
 0x5a6   : > { %5116 = vmatprep.subr.bf16.mxu1 %v6116_v17 }
 0x5a8   : > { %3578 = vmatmul.mubr.f32.vlgmr.msra.gmra.mrb[4].mxu1 %v6088_v27 }
 0x5a9   : > { %5118 = vmatpush1.bf16.msra.mxu1 %v6121_v48  ;;  %3654 = vmatprep.mubr.f32.mxu1 %v5472_v2 }
 0x5aa   : > { %3593 = vmatprep.subr.mxu1 %v3153_v59 }
 0x5ad   : > { %3595 = vmatpush1.msra.mxu1 %v3155_v57 }
 0x5b0   : > { %3656 = vmatmul.mubr.f32.vlgmr.msra.gmra.mrb[4].mxu1 %v6088_v27  ;;  %v4958_v27 = vld [vmem:[%s6469_s0 + $0x18] sm:$0xff] }
 0x5b1   : > { %4302 = vmatprep.mubr.f32.mxu1 %v5472_v2  ;;  %v3683_v40 = vsel %vm291_vm0, %v4958_v27, 0 }
 0x5b2   : > { %v6165_v30 = vand.u32 4294901760, %v3683_v40 }
 0x5b4   : > { %v6170_v32 = vsub.f32 %v3683_v40, %v6165_v30 }
 0x5b6   : > { %v3758_v44 = vand.u32 4294901760, %v6170_v32 }
 0x5b8   : > { %v3759_v55 = vsub.f32 %v6170_v32, %v3758_v44 }
 0x5ba   : > { %v3760_v11 = vand.u32 4294901760, %v3759_v55 }
 0x655   : > { %v6153_v23 = vpop.f32.mrb[2].mxu1 }
 0x656   : > { %v6155_v24 = vpop.f32.mrb[3].mxu1 }
 0x683   : > { %v3657_v33 = vpop.f32.mrb[4].mxu1 }
 0x684   : > { %v5171_v34 = vadd.f32 %v3657_v33, %v3140_v31  ;;  %v3659_v36 = vpop.f32.mrb[5].mxu1 }
 0x685   : > { %v5172_v37 = vadd.f32 %v3659_v36, %v3140_v31 }
 0x686   : > { %v3662_v39 = vmax.f32 %v5171_v34, 0.0 }
 0x687   : > { %v3663_v38 = vmax.f32 %v5172_v37, 0.0 }
 0x688   : > { %3664 = vrot.lane.b32.xlu1 %v3662_v39, %s5477_s26  ;;  %v3691_v25 = vand.u32 4294901760, %v3662_v39 }
 0x689   : > { %3666 = vrot.lane.b32.xlu0 %v3663_v38, %s5477_s26  ;;  %v3689_v26 = vand.u32 4294901760, %v3663_v38 }
 0x68a   : > { %v6167_v29 = vsub.f32 %v3662_v39, %v3691_v25 }
 0x68b   : > { %v6172_v41 = vsub.f32 %v3663_v38, %v3689_v26 }
 0x68c   : > { %3672 = vrot.lane.b32.xlu1 %v3662_v39, %s5476_s7  ;;  %v3787_v45 = vand.u32 4294901760, %v6167_v29 }
 0x68d   : > { %3674 = vrot.lane.b32.xlu0 %v3663_v38, %s5476_s7  ;;  %v3781_v49 = vand.u32 4294901760, %v6172_v41 }
 0x68e   : > { %v3788_v56 = vsub.f32 %v6167_v29, %v3787_v45 }
 0x68f   : > { %v3782_v62 = vsub.f32 %v6172_v41, %v3781_v49 }
 0x690   : > { %v3789_v10 = vand.u32 4294901760, %v3788_v56 }
 0x691   : > { %v3783_v16 = vand.u32 4294901760, %v3782_v62 }
 0x6fa   : > { %v3665_v43 = vpop.permute.xlu1 %3664 }
 0x6fb   : > { %v3667_v28 = vpop.permute.xlu0 %3666 }
 0x6fc   : > { %v3668_v46 = vsel %vm1380_vm10, %v3665_v43, %v3667_v28  ;;  %v3669_v47 = vsel %vm1380_vm10, %v3667_v28, %v3665_v43 }
 0x6fd   : > { %v3670_v15 = vsel %vm1372_vm11, 0.0, %v3669_v47  ;;  %v3671_v17 = vsel %vm1373_vm12, 0.0, %v3668_v46 }
 0x6fe   : > { %v3685_v48 = vand.u32 4294901760, %v3671_v17  ;;  %v3687_v50 = vand.u32 4294901760, %v3670_v15  ;;  %v3673_v51 = vpop.permute.xlu1 %3672 }
 0x6ff   : > { %v3675_v52 = vpop.permute.xlu0 %3674 }
 0x700   : > { %v6191_v57 = vpack.c.bf16 %v3691_v25, %v3687_v50  ;;  %v3768_v58 = vsub.f32 %v3671_v17, %v3685_v48  ;;  %v3774_v42 = vsub.f32 %v3670_v15, %v3687_v50  ;;  %v3676_v59 = vsel %vm1393_vm13, %v3673_v51, %v3675_v52 }
 0x701   : > { %v3677_v60 = vsel %vm1393_vm13, %v3675_v52, %v3673_v51  ;;  %v3678_v54 = vsel %vm1374_vm14, 0.0, %v3676_v59  ;;  %v5119_v61 = vpack.c.bf16 %v3689_v26, %v3685_v48  ;;  %v4948_v26 = vld [vmem:[%s6471_s2 + $0x8] sm:$0xff] }
 0x702   : > { %v3769_v63 = vand.u32 4294901760, %v3768_v58  ;;  %v3775_v0 = vand.u32 4294901760, %v3774_v42  ;;  %v3679_v1 = vsel %vm1375_vm15, 0.0, %v3677_v60  ;;  %v3695_v4 = vand.u32 4294901760, %v3678_v54 }
 0x703   : > { %v3693_v53 = vand.u32 4294901760, %v3679_v1  ;;  %5120 = vmatprep.subr.bf16.mxu0 %v5119_v61  ;;  %v5127_v34 = vpack.c.bf16 %v6172_v41, %v3768_v58  ;;  %v5129_v36 = vpack.c.bf16 %v6167_v29, %v3774_v42  ;;  %v4221_v29 = vld [vmem:[#allocation2 + $0x18] sm:$0xff] }
 0x704   : > { %v3776_v35 = vsub.f32 %v3774_v42, %v3775_v0  ;;  %v3798_v6 = vsub.f32 %v3678_v54, %v3695_v4  ;;  %5122 = vmatpush1.bf16.msra.mxu0 %v6191_v57  ;;  %v3770_v8 = vsub.f32 %v3768_v58, %v3769_v63  ;;  %v5135_v37 = vpack.c.bf16 %v3781_v49, %v3769_v63 }
 0x705   : > { %v3792_v9 = vsub.f32 %v3679_v1, %v3693_v53  ;;  %3694 = vmatprep.subr.mxu0 %v3693_v53  ;;  %v5137_v39 = vpack.c.bf16 %v3787_v45, %v3775_v0 }
 0x706   : > { %v3777_v22 = vand.u32 4294901760, %v3776_v35  ;;  %v3799_v13 = vand.u32 4294901760, %v3798_v6  ;;  %v3771_v14 = vand.u32 4294901760, %v3770_v8 }
 0x707   : > { %v3793_v18 = vand.u32 4294901760, %v3792_v9 }
 0x708   : > { %3696 = vmatpush1.msra.mxu0 %v3695_v4  ;;  %v5123_v12 = vpack.c.bf16 %v3783_v16, %v3771_v14  ;;  %v5125_v19 = vpack.c.bf16 %v3789_v10, %v3777_v22  ;;  %v3800_v21 = vsub.f32 %v3798_v6, %v3799_v13 }
 0x709   : > { %3761 = vmatmul.mubr.f32.vlgmr.msra.gmra.mrb[6].mxu0 %v3760_v11  ;;  %v3794_v20 = vsub.f32 %v3792_v9, %v3793_v18 }
 0x70a   : > { %5124 = vmatprep.subr.bf16.mxu0 %v5123_v12  ;;  %3861 = vmatprep.mubr.f32.mxu0 %v5472_v2  ;;  %v3801_v33 = vand.u32 4294901760, %v3800_v21 }
 0x70b   : > { %5126 = vmatpush1.bf16.msra.mxu0 %v5125_v19  ;;  %v3795_v31 = vand.u32 4294901760, %v3794_v20 }
 0x70d   : > { %3796 = vmatprep.subr.mxu0 %v3795_v31 }
 0x70f   : > { %3802 = vmatpush1.msra.mxu0 %v3801_v33 }
 0x710   : > { %5128 = vmatprep.subr.bf16.mxu0 %v5127_v34  ;;  %v5480_v34 = vmov 1966171168  }
 0x711   : > { %3863 = vmatmul.mubr.f32.vlgmr.msra.gmra.mrb[6].mxu0 %v6165_v30 }
 0x712   : > { %5130 = vmatpush1.bf16.msra.mxu0 %v5129_v36  ;;  %3945 = vmatprep.mubr.f32.mxu0 %v5472_v2  ;;  %v2492_v36 = vunpack.c.l.s4 %v5480_v34 }
 0x713   : > { %3883 = vmatprep.subr.mxu0 %v3792_v9 }
 0x716   : > { %3886 = vmatpush1.msra.mxu0 %v3798_v6 }
 0x717   : > { %5132 = vmatprep.subr.bf16.mxu0 %v5119_v61 }
 0x719   : > { %3948 = vmatmul.mubr.f32.vlgmr.msra.gmra.mrb[6].mxu0 %v6170_v32  ;;  %v4230_v32 = vsel %vm291_vm0, %v4221_v29, 0  ;;  %v5330_v29 = vld [vmem:[%s5657_s9] sm:$0xff]  ;;  %vm6325_vm0 = vcmp.lt.s32.totalorder %v231_v3, 256 }
 0x71a   : > { %5134 = vmatpush1.bf16.msra.mxu0 %v6191_v57  ;;  %4024 = vmatprep.mubr.f32.mxu0 %v5472_v2  ;;  %v6231_v41 = vand.u32 4294901760, %v4230_v32 }
 0x71b   : > { %3963 = vmatprep.subr.mxu0 %v3693_v53 }
 0x71e   : > { %3965 = vmatpush1.msra.mxu0 %v3695_v4 }
 0x71f   : > { %5136 = vmatprep.subr.bf16.mxu0 %v5135_v37 }
 0x721   : > { %4028 = vmatmul.mubr.f32.vlgmr.msra.gmra.mrb[6].mxu0 %v3758_v44  ;;  %v6234_v44 = vsub.f32 %v4230_v32, %v6231_v41 }
 0x722   : > { %5138 = vmatpush1.bf16.msra.mxu0 %v5137_v39  ;;  %4116 = vmatprep.mubr.f32.mxu0 %v5472_v2 }
 0x723   : > { %4053 = vmatprep.subr.mxu0 %v3793_v18  ;;  %v4305_v17 = vand.u32 4294901760, %v6234_v44 }
 0x725   : > { %v4306_v60 = vsub.f32 %v6234_v44, %v4305_v17 }
 0x726   : > { %4057 = vmatpush1.msra.mxu0 %v3799_v13 }
 0x727   : > { %5140 = vmatprep.subr.bf16.mxu0 %v5119_v61  ;;  %v4307_v8 = vand.u32 4294901760, %v4306_v60 }
 0x729   : > { %4118 = vmatmul.mubr.f32.vlgmr.msra.gmra.mrb[6].mxu0 %v6165_v30 }
 0x72a   : > { %5142 = vmatpush1.bf16.msra.mxu0 %v6191_v57  ;;  %4194 = vmatprep.mubr.f32.mxu0 %v5472_v2 }
 0x72b   : > { %4133 = vmatprep.subr.mxu0 %v3693_v53 }
 0x72e   : > { %4135 = vmatpush1.msra.mxu0 %v3695_v4 }
 0x731   : > { %4196 = vmatmul.mubr.f32.vlgmr.msra.gmra.mrb[6].mxu0 %v6165_v30  ;;  %v4959_v30 = vld [vmem:[%s6471_s2 + $0x18] sm:$0xff] }
 0x804   : > { %v4197_v38 = vpop.f32.mrb[6].mxu0 }
 0x805   : > { %v4202_v27 = vmax.f32 %v4197_v38, 0.0  ;;  %v4199_v40 = vpop.f32.mrb[7].mxu0 }
 0x806   : > { %v4203_v25 = vmax.f32 %v4199_v40, 0.0  ;;  %v2493_v40 = vunpack.c.0.s8 %v2492_v36 }
 0x807   : > { %4204 = vrot.lane.b32.xlu1 %v4202_v27, %s5478_s23  ;;  %v4238_v28 = vand.u32 4294901760, %v4202_v27 }
 0x808   : > { %4206 = vrot.lane.b32.xlu0 %v4203_v25, %s5478_s23  ;;  %v4236_v43 = vand.u32 4294901760, %v4203_v25  ;;  %s4838_s23 = scalar_lea.sflag [#allocation4], %s5651_s12 }
 0x809   : > { %v6238_v47 = vsub.f32 %v4202_v27, %v4238_v28 }
 0x80a   : > { %v6236_v45 = vsub.f32 %v4203_v25, %v4236_v43 }
 0x80b   : > { %4212 = vrot.lane.b32.xlu1 %v4202_v27, %s5479_s28  ;;  %v4334_v57 = vand.u32 4294901760, %v6238_v47 }
 0x80c   : > { %4214 = vrot.lane.b32.xlu0 %v4203_v25, %s5479_s28  ;;  %v4328_v52 = vand.u32 4294901760, %v6236_v45  ;;  %v2495_v25 = vshrl.u32 %v231_v3, 7 }
 0x80d   : > { %v4335_v5 = vsub.f32 %v6238_v47, %v4334_v57 }
 0x80e   : > { %v4329_v53 = vsub.f32 %v6236_v45, %v4328_v52 }
 0x80f   : > { %1961 = vperm.xlu1 %5329, %v4948_v26   ;;  %v4336_v18 = vand.u32 4294901760, %v4335_v5 }
 0x810   : > { %4226 = vperm.xlu0 %5328, %v4959_v30   ;;  %v4330_v14 = vand.u32 4294901760, %v4329_v53 }
 0x879   : > { %v4205_v46 = vpop.permute.xlu1 %4204 }
 0x87a   : > { %v4207_v15 = vpop.permute.xlu0 %4206 }
 0x87b   : > { %v4208_v49 = vsel %vm1926_vm1, %v4205_v46, %v4207_v15  ;;  %v4209_v48 = vsel %vm1926_vm1, %v4207_v15, %v4205_v46  ;;  %v6315_v46 = vsub.s32 %v2493_v40, %v2495_v25 }
 0x87c   : > { %v4210_v50 = vsel %vm1926_vm1, 0.0, %v4209_v48  ;;  %v4232_v51 = vand.u32 4294901760, %v4208_v49 }
 0x87d   : > { %v4234_v55 = vand.u32 4294901760, %v4210_v50  ;;  %v4213_v56 = vpop.permute.xlu1 %4212 }
 0x87e   : > { %v6249_v58 = vsub.f32 %v4208_v49, %v4232_v51  ;;  %v4215_v42 = vpop.permute.xlu0 %4214  ;;  %v6251_v59 = vpack.c.bf16 %v4236_v43, %v4232_v51  ;;  %v5331_v43 = vld [vmem:[%s5657_s9 + $0x8] sm:$0xff] }
 0x87f   : > { %v6256_v54 = vpack.c.bf16 %v4238_v28, %v4234_v55  ;;  %v6258_v61 = vsub.f32 %v4210_v50, %v4234_v55  ;;  %v4216_v62 = vsel %vm1946_vm2, %v4213_v56, %v4215_v42  ;;  %v4217_v63 = vsel %vm1946_vm2, %v4215_v42, %v4213_v56 }
 0x880   : > { %v4316_v0 = vand.u32 4294901760, %v6249_v58  ;;  %v4219_v1 = vsel %vm1929_vm3, 0.0, %v4217_v63  ;;  %v6267_v4 = vand.u32 4294901760, %v4216_v62  ;;  %5144 = vmatprep.subr.bf16.mxu1 %v6251_v59  ;;  %v5151_v39 = vpack.c.bf16 %v6236_v45, %v6249_v58 }
 0x881   : > { %v4322_v35 = vand.u32 4294901760, %v6258_v61  ;;  %v6274_v6 = vand.u32 4294901760, %v4219_v1  ;;  %5146 = vmatpush1.bf16.msra.mxu1 %v6256_v54  ;;  %v5153_v38 = vpack.c.bf16 %v6238_v47, %v6258_v61 }
 0x882   : > { %v6281_v7 = vsub.f32 %v4216_v62, %v6267_v4  ;;  %v4317_v9 = vsub.f32 %v6249_v58, %v4316_v0  ;;  %v5159_v62 = vpack.c.bf16 %v4328_v52, %v4316_v0 }
 0x883   : > { %v4323_v11 = vsub.f32 %v6258_v61, %v4322_v35  ;;  %v6290_v10 = vsub.f32 %v4219_v1, %v6274_v6  ;;  %4241 = vmatprep.subr.mxu1 %v6274_v6  ;;  %v5161_v1 = vpack.c.bf16 %v4334_v57, %v4322_v35  ;;  %v5333_v35 = vld [vmem:[%s5657_s9 + $0x18] sm:$0xff] }
 0x884   : > { %v4346_v22 = vand.u32 4294901760, %v6281_v7  ;;  %v4318_v13 = vand.u32 4294901760, %v4317_v9 }
 0x885   : > { %v4324_v16 = vand.u32 4294901760, %v4323_v11  ;;  %4243 = vmatpush1.msra.mxu1 %v6267_v4  ;;  %v4340_v12 = vand.u32 4294901760, %v6290_v10 }
 0x886   : > { %4308 = vmatmul.mubr.f32.vlgmr.msra.gmra.mrb[6].mxu1 %v4307_v8  ;;  %v5147_v19 = vpack.c.bf16 %v4330_v14, %v4318_v13  ;;  %v4347_v20 = vsub.f32 %v6281_v7, %v4346_v22 }
 0x887   : > { %v5149_v21 = vpack.c.bf16 %v4336_v18, %v4324_v16  ;;  %v4341_v31 = vsub.f32 %v6290_v10, %v4340_v12  ;;  %4408 = vmatprep.mubr.f32.mxu1 %v5472_v2 }
 0x888   : > { %5148 = vmatprep.subr.bf16.mxu1 %v5147_v19  ;;  %v4348_v37 = vand.u32 4294901760, %v4347_v20 }
 0x889   : > { %5150 = vmatpush1.bf16.msra.mxu1 %v5149_v21  ;;  %v4342_v33 = vand.u32 4294901760, %v4341_v31 }
 0x88b   : > { %4343 = vmatprep.subr.mxu1 %v4342_v33 }
 0x88d   : > { %4349 = vmatpush1.msra.mxu1 %v4348_v37 }
 0x88e   : > { %v1962_v27 = vpop.permute.xlu1 %1961  ;;  %4410 = vmatmul.mubr.f32.vlgmr.msra.gmra.mrb[6].mxu1 %v6231_v41  ;;  %5152 = vmatprep.subr.bf16.mxu1 %v5151_v39 }
 0x88f   : > { %v5169_v26 = vadd.f32 %v6153_v23, %v1962_v27  ;;  %v5170_v30 = vadd.f32 %v6155_v24, %v1962_v27  ;;  %5154 = vmatpush1.bf16.msra.mxu1 %v5153_v38  ;;  %4492 = vmatprep.mubr.f32.mxu1 %v5472_v2 }
 0x890   : > { %4430 = vmatprep.subr.mxu1 %v6290_v10 }
 0x891   : > { %v2484_v32 = vadd.f32 %v5330_v29, %v5169_v26  ;;  %v2485_v28 = vadd.f32 %v5331_v43, %v5170_v30 }
 0x893   : > { %v2486_v15 = vmax.f32 %v2484_v32, 0.0  ;;  %v2487_v49 = vmax.f32 %v2485_v28, 0.0  ;;  %4433 = vmatpush1.msra.mxu1 %v6281_v7 }
 0x894   : > { %5156 = vmatprep.subr.bf16.mxu1 %v6251_v59 }
 0x895   : > { %v2490_v23 = vcombine.low %v2486_v15, %v2487_v49  ;;  %v2534_v24 = vcombine.high %v2486_v15, %v2487_v49 }
 0x896   : > { %4495 = vmatmul.mubr.f32.vlgmr.msra.gmra.mrb[6].mxu1 %v6234_v44  ;;  %v4227_v44 = vpop.permute.xlu0 %4226 }
 0x897   : > { %v2497_v48 = vrot.slane %v2490_v23, %v6315_v46  ;;  %v2541_v50 = vrot.slane %v2534_v24, %v6315_v46  ;;  %5158 = vmatpush1.bf16.msra.mxu1 %v6256_v54  ;;  %4571 = vmatprep.mubr.f32.mxu1 %v5472_v2 }
 0x898   : > { %4510 = vmatprep.subr.mxu1 %v6274_v6 }
 0x899   : > { %v2504_v55 = vrot.slane %v2497_v48, %v6315_v46  ;;  %v2512_v56 = vcombine.high %v2497_v48, %v2497_v48  ;;  %v2548_v42 = vrot.slane %v2541_v50, %v6315_v46  ;;  %v2553_v60 = vcombine.high %v2541_v50, %v2541_v50 }
 0x89b   : > { %2510 = vst.msk [vmem:[%s6338_s25] ss:$8 sm:$0x3] %vm6325_vm0, %v2504_v55  ;;  %v2519_v3 = vrot.slane %v2512_v56, %v6315_v46  ;;  %v2524_v58 = vcombine.high %v2504_v55, %v2504_v55  ;;  %4952 = vst.msk [vmem:[%s6338_s25 + $0x10] ss:$8 sm:$0x3] %vm6325_vm0, %v2548_v42  ;;  %v2560_v45 = vrot.slane %v2553_v60, %v6315_v46  ;;  %4512 = vmatpush1.msra.mxu1 %v6267_v4 }
 0x89c   : > { %v2565_v52 = vcombine.high %v2548_v42, %v2548_v42  ;;  %5160 = vmatprep.subr.bf16.mxu1 %v5159_v62 }
 0x89d   : > { %4949 = vst.msk [vmem:[%s6338_s25 + $0x2] ss:$8 sm:$0x3] %vm6325_vm0, %v2519_v3  ;;  %4950 = vst.msk [vmem:[%s6338_s25 + $0x4] ss:$8 sm:$0x3] %vm6325_vm0, %v2524_v58  ;;  %v2529_v63 = vcombine.high %v2519_v3, %v2519_v3  ;;  %v2570_v0 = vcombine.high %v2560_v45, %v2560_v45 }
 0x89e   : > { %4953 = vst.msk [vmem:[%s6338_s25 + $0x12] ss:$8 sm:$0x3] %vm6325_vm0, %v2560_v45  ;;  %4954 = vst.msk [vmem:[%s6338_s25 + $0x14] ss:$8 sm:$0x3] %vm6325_vm0, %v2565_v52  ;;  %4575 = vmatmul.mubr.f32.vlgmr.msra.gmra.mrb[6].mxu1 %v4305_v17 }
 0x89f   : > { %4951 = vst.msk [vmem:[%s6338_s25 + $0x6] ss:$8 sm:$0x3] %vm6325_vm0, %v2529_v63  ;;  %4955 = vst.msk [vmem:[%s6338_s25 + $0x16] ss:$8 sm:$0x3] %vm6325_vm0, %v2570_v0  ;;  %5162 = vmatpush1.bf16.msra.mxu1 %v5161_v1  ;;  %4663 = vmatprep.mubr.f32.mxu1 %v5472_v2 }
 0x8a0   : > { %4600 = vmatprep.subr.mxu1 %v4340_v12 }
 0x8a3   : > { %4604 = vmatpush1.msra.mxu1 %v4346_v22 }
 0x8a4   : > { %5164 = vmatprep.subr.bf16.mxu1 %v6251_v59  ;;  %v5332_v59 = vld [vmem:[%s5657_s9 + $0x10] sm:$0xff]  ;;  %s4851_s9 = sshll.u32 %s6338_s25, 4  ;;  %s6418_s9 = int_to_ptr.vmem [resolvable:$true] %s4851_s9 }
 0x8a5   : > { %s5392_s28 = scalar_lea.vmem %s6418_s9, 512  ;;  %p5399_p10 = scmp.lt.s32.totalorder %s6418_s9, %s5397_s29 }
 0x8a6   : > { %4665 = vmatmul.mubr.f32.vlgmr.msra.gmra.mrb[6].mxu1 %v6231_v41  ;;  %p5393_p4 = scmp.ne.s32.totalorder %s6418_s9, %s5392_s28  ;;  %p5400_p13 = scmp.lt.s32.totalorder %s5398_s20, %s5392_s28 }
 0x8a7   : > { %5166 = vmatpush1.bf16.msra.mxu1 %v6256_v54  ;;  %4741 = vmatprep.mubr.f32.mxu1 %v5472_v2 }
 0x8a8   : > { %4680 = vmatprep.subr.mxu1 %v6274_v6  ;;  %p5394_p6 = pnand %p5393_p4, %p5599_p12  ;;  %p5401_p3 = por %p5400_p13, %p5399_p10 }
 0x8aa   : > { %p5395_p8 = pneg %p5394_p6 }
 0x8ab   : > { %4682 = vmatpush1.msra.mxu1 %v6267_v4 }
 0x8ac   : > { %p5402_p7 = pnand %p5401_p3, %p5395_p8 }
 0x8ae   : > { %4743 = vmatmul.mubr.f32.vlgmr.msra.gmra.mrb[6].mxu1 %v6231_v41 }
 0x981   : > { %v4744_v47 = vpop.f32.mrb[6].mxu1 }
 0x982   : > { %v5173_v17 = vadd.f32 %v4744_v47, %v4227_v44  ;;  %v4746_v57 = vpop.f32.mrb[7].mxu1 }
 0x983   : > { %v5174_v61 = vadd.f32 %v4746_v57, %v4227_v44 }
 0x984   : > { %v4749_v53 = vadd.f32 %v5332_v59, %v5173_v17 }
 0x985   : > { %v4750_v54 = vadd.f32 %v5333_v35, %v5174_v61 }
 0x986   : > { %v4751_v2 = vmax.f32 %v4749_v53, 0.0 }
 0x987   : > { %v4752_v5 = vmax.f32 %v4750_v54, 0.0 }
 0x989   : > { %v4755_v6 = vcombine.low %v4751_v2, %v4752_v5  ;;  %v4796_v7 = vcombine.high %v4751_v2, %v4752_v5 }
 0x98b   : > { %v4762_v41 = vrot.slane %v4755_v6, %v6315_v46  ;;  %v4803_v4 = vrot.slane %v4796_v7, %v6315_v46 }
 0x98d   : > { %v4769_v8 = vrot.slane %v4762_v41, %v6315_v46  ;;  %v4774_v9 = vcombine.high %v4762_v41, %v4762_v41  ;;  %v4810_v11 = vrot.slane %v4803_v4, %v6315_v46  ;;  %v4815_v10 = vcombine.high %v4803_v4, %v4803_v4 }
 0x98f   : > { %4960 = vst.msk [vmem:[%s6338_s25 + $0x1] ss:$8 sm:$0x3] %vm6325_vm0, %v4769_v8  ;;  %v4781_v22 = vrot.slane %v4774_v9, %v6315_v46  ;;  %v4786_v13 = vcombine.high %v4769_v8, %v4769_v8  ;;  %4964 = vst.msk [vmem:[%s6338_s25 + $0x11] ss:$8 sm:$0x3] %vm6325_vm0, %v4810_v11  ;;  %v4822_v14 = vrot.slane %v4815_v10, %v6315_v46 }
 0x990   : > { %v4827_v16 = vcombine.high %v4810_v11, %v4810_v11 }
 0x991   : > { %4961 = vst.msk [vmem:[%s6338_s25 + $0x3] ss:$8 sm:$0x3] %vm6325_vm0, %v4781_v22  ;;  %4962 = vst.msk [vmem:[%s6338_s25 + $0x5] ss:$8 sm:$0x3] %vm6325_vm0, %v4786_v13  ;;  %v4791_v18 = vcombine.high %v4781_v22, %v4781_v22  ;;  %v4832_v12 = vcombine.high %v4822_v14, %v4822_v14 }
 0x992   : > { %4965 = vst.msk [vmem:[%s6338_s25 + $0x13] ss:$8 sm:$0x3] %vm6325_vm0, %v4822_v14  ;;  %4966 = vst.msk [vmem:[%s6338_s25 + $0x15] ss:$8 sm:$0x3] %vm6325_vm0, %v4827_v16 }
 0x993   : > { %4963 = vst.msk [vmem:[%s6338_s25 + $0x7] ss:$8 sm:$0x3] %vm6325_vm0, %v4791_v18  ;;  %4967 = vst.msk [vmem:[%s6338_s25 + $0x17] ss:$8 sm:$0x3] %vm6325_vm0, %v4832_v12 }
 0x994   : > { %5405 = shalt.err (!%p5402_p7)
}
 0x995   : > { %s5406_s6 = scalar_lea.hbm %s6404_s19, 512  ;;  %s5410_s26 = scalar_lea.hbm %s6473_s4, 1024 }
 0x996   : > { %p5407_p9 = scmp.ne.s32.totalorder %s6404_s19, %s5406_s6  ;;  %p5411_p5 = scmp.lt.u32.totalorder %s6404_s19, %s6473_s4 }
 0x997   : > { %p5412_p1 = scmp.lt.u32.totalorder %s5410_s26, %s5406_s6  ;;  %p5414_p4 = scmp.lt.u32.totalorder %s5406_s6, %s6404_s19 }
 0x998   : > { %p5408_p2 = pnand %p5407_p9, %p5599_p12 }
 0x999   : > { %p5413_p11 = por %p5412_p1, %p5411_p5 }
 0x99a   : > { %p5409_p0 = pneg %p5408_p2 }
 0x99b   : > { %p5415_p6 = por %p5414_p4, %p5413_p11 }
 0x99d   : > { %p5416_p8 = pnand %p5415_p6, %p5409_p0 }
 0x99f   : > { %5419 = shalt.err (!%p5416_p8)
}
 0x9a0   : > { %s5482_s13 = smov 256  }
 0x9a1   : > { %5261 = dma.vmem_to_hbm [thread:$0]  (%p5599_p12), %s6418_s9, 512, %s6404_s19, %s4838_s23, %s5482_s13, %s5482_s13, %s5473_s10  }
 0x9a2 PF: > { %s4866_s11 = sand.u32 1, %s5450_s15   ;;  %p6490_p10 = scmp.ne.s32.totalorder %s6478_s22, 0 }
 0x9a3   : > { %p6491_p13 = scmp.ge.s32.totalorder %s5462_s18, 2  ;;  %s4867_s14 = scalar_lea.sflag [#allocation4], %s4866_s11 }
 0x9a5   : > { %p5272_p3 = pnand %p6491_p13, %p6490_p10 }
 0x9a7   : > { %5445 = dma.done.wait (!%p5272_p3), %s4867_s14, 512  }
 0x9a8   : > { %5447 = vsyncadd (!%p5272_p3), %s4867_s14, 4294966784  ;;  %p18_p7 = scmp.ge.s32.totalorder %s5564_s27, 4   ;;  %s6492_s15 = smov %s5454_s16 }
 0x9a9   : > { %s6493_s16 = smov %s5458_s17  ;;  %s6494_s17 = smov %s5595_s24 }
 0x9aa   : > { %s6495_s18 = smov %s5564_s27  ;;  %20 = sbr.rel (!%p18_p7) target bundleno = 6 (0x6), region = 110 }
 0x9b1   :  { %4872 = vsyncpa [#allocation3], 1 }
 0x9b2   :  { %4874 = vsyncpa [#allocation3 + $0x1], 1 }
 0x9b3   :  { %4875 = vsyncpa [#allocation6], 1 }
 0x9b4   :  { %4877 = vsyncpa [#allocation6 + $0x1], 1 }
 0x9b5   :  { %4878 = vsyncpa [#allocation4], 1 }
 0x9b6   :  { %4880 = vsyncpa [#allocation4 + $0x1], 1 }

// kernel: tpu_custom_call.1
= control target key start
LH: loop header
LB: loop body
LE: loop exit
PB: predicated region body
PF: predicated region fallthrough
CT: control target
= control target key end

     0   :  { %9 = vsyncpa [#allocation3], 0  ;;  %s2347_s0 = inlined_call_operand.vmem [shape: f32[2,2,8,24], index: 0, kind: input, shape index: {}]   ;;  %s2348_s1 = inlined_call_operand.hbm [shape: f32[2,2,8,24], index: 1, kind: input, shape index: {}]   ;;  %s2349_s2 = inlined_call_operand.vmem [shape: f32[2,2,8,1], index: 2, kind: input, shape index: {}]   ;;  %s2350_s3 = inlined_call_operand.hbm [shape: f32[2,16,256], index: 3, kind: input, shape index: {}]   ;;  %s2351_s4 = inlined_call_operand.hbm [shape: f32[2,16,256], index: 4, kind: output, shape index: {}]  }
   0x1   :  { %10 = vsyncpa [#allocation6], 0 }
   0x2   :  { %12 = vsyncpa [#allocation6 + $0x1], 0 }
   0x3   :  { %13 = vsyncpa [#allocation4], 0 }
   0x4   :  { %15 = vsyncpa [#allocation4 + $0x1], 0  ;;  %s1808_s15 = smov 0   ;;  %s1810_s16 = smov 0  }
   0x5   :  { %s1812_s17 = smov 0   ;;  %s1814_s18 = smov 0  }
   0x6 LB: > { %s1829_s19 = sadd.s32 4294967295, %s1761_s18   ;;  %s1368_s20 = sadd.s32 4294967294, %s1761_s18   ;;  %s1761_s18 = sphi %s1814_s18, %s2393_s18   ;;  %s1757_s17 = sphi %s1812_s17, %s2392_s17   ;;  %s1753_s16 = sphi %s1810_s16, %s2391_s16   ;;  %s1749_s15 = sphi %s1808_s15, %s2390_s15  }
   0x7   : > { %p104_p0 = scmp.ne.s32.totalorder %s1753_s16, %s1749_s15  ;;  %p2352_p1 = scmp.eq.s32.totalorder %s1829_s19, 0 }
   0x8   : > { %p134_p3 = scmp.eq.s32.totalorder %s1368_s20, 1  ;;  %p1369_p5 = scmp.ge.s32.totalorder %s1761_s18, 1 }
   0x9   : > { %p1838_p4 = por %p2352_p1, %p104_p0  ;;  %p141_p7 = scmp.lt.s32.totalorder %s1761_s18, 3 }
   0xa   : > { %p1843_p6 = por %p134_p3, %p104_p0  ;;  %s1763_s24 = smov [#allocation2]  }
   0xb   : > { %s2358_s21 = scalar_select %p1838_p4, 1, 0 }
   0xc   : > { %s2359_s22 = scalar_select %p1843_p6, 1, 0 }
   0xd   : > { %p1848_p8 = pnand %p1369_p5, %p141_p7  ;;  %s156_s25 = sshll.u32 %s1763_s24, 4  ;;  %s1852_s25 = int_to_ptr.vmem [resolvable:$true] %s156_s25 }
   0xe   : > { %s1864_s27 = sadd.s32 1, %s1761_s18   ;;  %s91_s28 = sadd.s32 1, %s1757_s17 }
   0xf   : > { %s2360_s23 = scalar_select %p1848_p8, 1, 0 }
  0x10   : > { %p1525_p9 = pneg %p1848_p8  ;;  %s88_s29 = ssub.s32 %s1761_s18, %s1864_s27 }
  0x11   : > { %s1633_s6 = scalar_lea.hbm %s2348_s1, 512 }
  0x12   : > { %p1859_p11 = pnand %p1525_p9, %p2352_p1  ;;  %p1634_p12 = scmp.ne.s32.totalorder %s2348_s1, %s1633_s6 }
  0x13   : > { %p1640_p5 = scmp.lt.u32.totalorder %s1633_s6, %s2348_s1 }
  0x14   : > { %p1635_p13 = pneg %p1859_p11 }
  0x16   : > { %p1636_p0 = pnand %p1635_p13, %p1634_p12 }
  0x18   : > { %p1637_p3 = pneg %p1636_p0 }
  0x1a   : > { %p1642_p7 = pnand %p1640_p5, %p1637_p3 }
  0x1c   : > { %1645 = shalt.err (!%p1642_p7)
}
  0x1d   : > { %s1646_s11 = scalar_lea.vmem %s1852_s25, 512  ;;  %p1654_p2 = scmp.lt.s32.totalorder %s1852_s25, %s1852_s25 }
  0x1e   : > { %p1647_p9 = scmp.ne.s32.totalorder %s1852_s25, %s1646_s11  ;;  %p1655_p6 = scmp.lt.s32.totalorder %s1646_s11, %s1646_s11 }
  0x20   : > { %p1649_p10 = pnand %p1647_p9, %p1635_p13  ;;  %p1656_p4 = por %p1655_p6, %p1654_p2 }
  0x22   : > { %p1650_p1 = pneg %p1649_p10 }
  0x24   : > { %p1657_p8 = pnand %p1656_p4, %p1650_p1 }
  0x26   : > { %1660 = shalt.err (!%p1657_p8)
}
  0x27   : > { %s1764_s12 = smov 128   ;;  %s1765_s13 = smov 8  }
  0x28   : > { %1528 = dma.hbm_to_vmem [thread:$0]  (!%p1859_p11), %s2348_s1, 512, %s1852_s25, [#allocation3], %s1764_s12, %s1764_s12, %s1765_s13  }
  0x29   : > { %p89_p2 = scmp.eq.s32.totalorder %s88_s29, 0  ;;  %p98_p1 = scmp.ne.s32.totalorder %s1757_s17, %s1753_s16 }
  0x2a   : > { %p99_p4 = scmp.eq.s32.totalorder %s1761_s18, 0  ;;  %p1538_p6 = scmp.lt.s32.totalorder %s1761_s18, 2 }
  0x2b   : > { %s1895_s24 = scalar_select %p89_p2, %s1757_s17, %s91_s28  }
  0x2c   : > { %p100_p8 = por %p99_p4, %p98_p1  ;;  %p2362_p10 = scmp.eq.s32.totalorder %s1829_s19, 1 }
  0x2d   : > { %s173_s5 = sand.u32 1, %s1757_s17   ;;  %s1461_s6 = sshll.u32 %s1761_s18, 9 }
  0x2e   : > { %p1899_p12 = por %p2362_p10, %p98_p1  ;;  %s1372_s7 = sshll.u32 %s173_s5, 5 }
  0x2f   : > { %s1908_s9 = scalar_lea.hbm %s2350_s3, %s1461_s6  ;;  %s177_s25 = scalar_lea.vmem [#allocation5], %s1372_s7 }
  0x30   : > { %s184_s28 = sshll.u32 %s177_s25, 4  ;;  %p1910_p11 = pnand %p1538_p6, %p100_p8  ;;  %s1914_s28 = int_to_ptr.vmem [resolvable:$true] %s184_s28 }
  0x31   : > { %s1916_s10 = scalar_lea.sflag [#allocation6], %s173_s5  ;;  %s1661_s11 = scalar_lea.hbm %s1908_s9, 512 }
  0x32   : > { %p1662_p13 = scmp.ne.s32.totalorder %s1908_s9, %s1661_s11  ;;  %p1663_p0 = pneg %p1910_p11 }
  0x33   : > { %s1666_s14 = scalar_lea.hbm %s2350_s3, 1024  ;;  %p1667_p7 = scmp.lt.u32.totalorder %s1908_s9, %s2350_s3 }
  0x34   : > { %p1664_p3 = pnand %p1663_p0, %p1662_p13  ;;  %p1668_p9 = scmp.lt.u32.totalorder %s1666_s14, %s1661_s11 }
  0x35   : > { %p1670_p1 = scmp.lt.u32.totalorder %s1661_s11, %s1908_s9 }
  0x36   : > { %p1665_p5 = pneg %p1664_p3  ;;  %p1669_p2 = por %p1668_p9, %p1667_p7 }
  0x38   : > { %p1671_p4 = por %p1670_p1, %p1669_p2 }
  0x3a   : > { %p1672_p6 = pnand %p1671_p4, %p1665_p5 }
  0x3c   : > { %1675 = shalt.err (!%p1672_p6)
}
  0x3d   : > { %s1676_s5 = scalar_lea.vmem %s1914_s28, 512  ;;  %s1766_s7 = smov [#allocation5]  }
  0x3e   : > { %p1677_p8 = scmp.ne.s32.totalorder %s1914_s28, %s1676_s5  ;;  %s1681_s26 = sshll.u32 %s1766_s7, 4  ;;  %s1682_s26 = int_to_ptr.vmem [resolvable:$false] %s1681_s26 }
  0x3f   : > { %s1683_s8 = scalar_lea.vmem %s1682_s26, 1024  ;;  %p1684_p3 = scmp.lt.s32.totalorder %s1914_s28, %s1682_s26 }
  0x40   : > { %p1679_p10 = pnand %p1677_p8, %p1663_p0  ;;  %p1685_p7 = scmp.lt.s32.totalorder %s1683_s8, %s1676_s5 }
  0x42   : > { %p1680_p13 = pneg %p1679_p10  ;;  %p1686_p9 = por %p1685_p7, %p1684_p3 }
  0x44   : > { %p1687_p2 = pnand %p1686_p9, %p1680_p13 }
  0x46   : > { %1690 = shalt.err (!%p1687_p2)
}
  0x47   : > { %s1767_s25 = smov 256   ;;  %s1768_s11 = smov 16  }
  0x48   : > { %1532 = dma.hbm_to_vmem [thread:$0]  (!%p1910_p11), %s1908_s9, 512, %s1914_s28, %s1916_s10, %s1767_s25, %s1767_s25, %s1768_s11  }
  0x49   : > { %p2365_p0 = scmp.ne.s32.totalorder %s2360_s23, 0 }
  0x4a   : > { %p2366_p5 = scmp.eq.s32.totalorder (!%p2365_p0), %s1829_s19, 0 }
  0x4b   : > { %196 = sbr.rel (%p2365_p0) target bundleno = 2187 (0x88b), region = 36 }
  0x52   : > { %1736 = dma.done.wait (%p2366_p5), [#allocation3], 512   ;;  %p2367_p1 = pmov %p2366_p5 }
  0x53   : > { %s1951_s12 = sand.u32 1, %s1753_s16   ;;  %p2368_p11 = scmp.ne.s32.totalorder %s2358_s21, 0 }
  0x54   : > { %1738 = vsyncadd (%p2367_p1), [#allocation3], 4294966784  ;;  %s1377_s13 = sshll.u32 %s1951_s12, 5  ;;  %s203_s14 = scalar_lea.sflag [#allocation6], %s1951_s12 }
  0x55   : > { %s1957_s9 = scalar_lea.vmem [#allocation5], %s1377_s13 }
  0x56   : > { %1740 = dma.done.wait (%p2368_p11), %s203_s14, 512  }
  0x57   : > { %1742 = vsyncadd (%p2368_p11), %s203_s14, 4294966784  ;;  %v1964_v0 = vld [vmem:[%s1957_s9] sm:$0xff]  ;;  %v1967_v1 = vld [vmem:[%s1957_s9 + $0x8] sm:$0xff]  ;;  %v1769_v2 = vmov 0.0   ;;  %s1770_s23 = smov 127   ;;  %s1771_s21 = smov 1   ;;  %v231_v4 = vlaneseq }
  0x58   : > { %359 = vmatprep.mubr.f32.mxu0 %v1769_v2  ;;  %471 = vmatprep.mubr.f32.mxu1 %v1769_v2  ;;  %v1591_v3 = vpack.i.bf16 %v1967_v1, %v1964_v0  ;;  %vm1772_vm4 = vmmov 1   ;;  %v290_v22 = vld [vmem:[%s2347_s0] sm:$0xff]  ;;  %vm291_vm9 = vcmask 195584   ;;  %s1773_s10 = smov 112   ;;  %v1774_v29 = vmov 0   ;;  %s1775_s5 = smov 16  }
  0x59   : > { %279 = vrot.lane.b32.xlu1 %v1967_v1, %s1770_s23  ;;  %v1979_v5 = vand.u32 127, %v231_v4  ;;  %v398_v28 = vld [vmem:[%s2349_s2] sm:$0xff]  ;;  %1601 = vset.pattern.permute.xlu0 %v1774_v29  ;;  %s1776_s7 = smov 126   ;;  %s1777_s26 = smov 2   ;;  %v2062_v51 = vld [vmem:[%s1957_s9 + $0x10] sm:$0xff]  ;;  %v2065_v52 = vld [vmem:[%s1957_s9 + $0x18] sm:$0xff] }
  0x5a   : > { %1592 = vrot.lane.b32.xlu0 %v1591_v3, %s1771_s21  ;;  %1632 = vset.pattern.permute.xlu1 %v1774_v29  ;;  %v397_v41 = vld [vmem:[#allocation2] sm:$0xff]  ;;  %v1607_v53 = vpack.i.bf16 %v2065_v52, %v2062_v51  ;;  %s1778_s9 = smov 96   ;;  %s2243_s8 = scalar_lea.vmem [#allocation7], %s1377_s13 }
  0x5b   : > { %v1982_v6 = vadd.s32 128, %v1979_v5  ;;  %v1988_v8 = vand.u32 15, %v1979_v5  ;;  %vm268_vm0 = vcmp.lt.s32.totalorder %v1979_v5, 1  ;;  %vm281_vm3 = vcmp.lt.s32.totalorder %v1979_v5, 127  ;;  %s1462_s13 = sshll.u32 %s1829_s19, 9  ;;  %s1283_s25 = sshll.u32 %s2243_s8, 4  ;;  %s2296_s25 = int_to_ptr.vmem [resolvable:$true] %s1283_s25 }
  0x5c   : > { %vm2357_vm10 = vcmp.lt.s32.totalorder %v1979_v5, 16  ;;  %vm2356_vm12 = vcmp.lt.s32.totalorder %v1979_v5, 112  ;;  %vm488_vm15 = vcmp.lt.s32.totalorder %v1979_v5, 2  ;;  %s1270_s19 = scalar_lea.sflag [#allocation4], %s1951_s12 }
  0x5d   : > { %v1985_v7 = vand.u32 15, %v1982_v6  ;;  %vm1464_vm2 = vcmp.ge.s32.totalorder %v1988_v8, 1  ;;  %vm1466_vm8 = vcmp.lt.s32.totalorder %v1988_v8, 15  ;;  %vm1388_vm11 = vmneg %vm2357_vm10  ;;  %vm2355_vm14 = vcmp.lt.s32.totalorder %v1982_v6, 240 }
  0x5e   : > { %277 = vrot.lane.b32.xlu0 %v1964_v0, %s1770_s23  ;;  %vm2006_vm6 = vmpackc.low %vm1772_vm4, %vm1464_vm2  ;;  %vm1469_vm2 = vcmp.ge.s32.totalorder %v1988_v8, 2 }
  0x5f   : > { %vm1463_vm1 = vcmp.ge.s32.totalorder %v1985_v7, 1  ;;  %vm1465_vm7 = vcmp.lt.s32.totalorder %v1985_v7, 15  ;;  %vm2044_vm13 = vmpackc.low %vm1772_vm4, %vm1388_vm11 }
  0x60   : > { %vm1997_vm5 = vmpackc.low %vm1772_vm4, %vm1463_vm1  ;;  %vm1468_vm1 = vcmp.ge.s32.totalorder %v1985_v7, 2 }
  0x61   : > { %vm2083_vm11 = vmpackc.low %vm1772_vm4, %vm1468_vm1  ;;  %vm1471_vm1 = vcmp.lt.s32.totalorder %v1988_v8, 14  ;;  %v1442_v8 = vld [vmem:[%s2349_s2 + $0x18] sm:$0xff] }
  0xcb   : > { %v280_v12 = vpop.permute.xlu1 %279 }
  0xcc   : > { %v1593_v9 = vpop.permute.xlu0 %1592 }
  0xcd   : > { %v1595_v10 = vunpack.i.h.bf16 %v1593_v9  ;;  %v1594_v11 = vunpack.i.l.bf16 %v1593_v9 }
  0xcf   : > { %v269_v13 = vsel %vm268_vm0, %v1594_v11, %v1595_v10  ;;  %v270_v15 = vsel %vm268_vm0, %v1595_v10, %v1594_v11 }
  0xd0   : > { %v1473_v16 = vpack.c.bf16 %v1967_v1, %v269_v13  ;;  %v1476_v17 = vpack.c.bf16 %v1964_v0, %v270_v15  ;;  %v278_v19 = vpop.permute.xlu0 %277  ;;  %v1393_v13 = vld [vmem:[%s2347_s0 + $0x8] sm:$0xff] }
  0xd1   : > { %v283_v20 = vsel %vm281_vm3, %v280_v12, %v278_v19  ;;  %v282_v21 = vsel %vm281_vm3, %v278_v19, %v280_v12 }
  0xd2   : > { %1475 = vmatprep.subr.msk.bf16.mxu0 %vm1997_vm5, %v1473_v16 }
  0xd3   : > { %1478 = vmatpush1.bf16.msk.msra.mxu0 %vm2006_vm6, %v1476_v17 }
  0xd4   : > { %1384 = vmatprep.subr.msk.mxu0 %vm1465_vm7, %v283_v20 }
  0xd7   : > { %1386 = vmatpush1.msk.msra.mxu0 %vm1466_vm8, %v282_v21 }
  0xd8   : > { %1387 = vmatmul.mubr.msk.f32.vlgmr.msra.gmra.mrb[0].mxu0 %vm291_vm9, %v290_v22 }
  0xd9   : > { %579 = vmatprep.mubr.f32.mxu0 %v1769_v2 }
 0x1ab   : > { %v361_v23 = vpop.f32.mrb[0].mxu0 }
 0x1ac   : > { %v366_v24 = vmax.f32 %v361_v23, 0.0  ;;  %v363_v25 = vpop.f32.mrb[1].mxu0 }
 0x1ad   : > { %v367_v26 = vmax.f32 %v363_v25, 0.0  ;;  %v1416_v25 = vld [vmem:[%s2347_s0 + $0x10] sm:$0xff] }
 0x1ae   : > { %384 = vrot.lane.b32.xlu0 %v366_v24, %s1773_s10 }
 0x1af   : > { %v1596_v27 = vpack.i.bf16 %v367_v26, %v366_v24 }
 0x1b1   : > { %1597 = vrot.lane.b32.xlu1 %v1596_v27, %s1775_s5 }
 0x1b2   : > { %401 = vperm.xlu0 %1601, %v398_v28  }
 0x1b5   : > { %386 = vrot.lane.b32.xlu1 %v367_v26, %s1773_s10 }
 0x220   : > { %v385_v39 = vpop.permute.xlu0 %384 }
 0x223   : > { %v1598_v30 = vpop.permute.xlu1 %1597 }
 0x224   : > { %v1600_v31 = vunpack.i.h.bf16 %v1598_v30  ;;  %v1599_v32 = vunpack.i.l.bf16 %v1598_v30 }
 0x226   : > { %v376_v33 = vsel %vm2357_vm10, %v1599_v32, %v1600_v31  ;;  %v377_v34 = vsel %vm2357_vm10, %v1600_v31, %v1599_v32  ;;  %vm1470_vm10 = vcmp.lt.s32.totalorder %v1985_v7, 14 }
 0x227   : > { %v387_v35 = vpop.permute.xlu1 %386  ;;  %v1479_v36 = vpack.c.bf16 %v367_v26, %v376_v33  ;;  %v1481_v37 = vpack.c.bf16 %v366_v24, %v377_v34  ;;  %v1426_v34 = vld [vmem:[%s2349_s2 + $0x10] sm:$0xff] }
 0x228   : > { %v390_v40 = vsel %vm2356_vm12, %v387_v35, %v385_v39  ;;  %v389_v42 = vsel %vm2356_vm12, %v385_v39, %v387_v35  ;;  %vm2089_vm12 = vmpackc.low %vm1772_vm4, %vm1469_vm2  ;;  %vm2383_vm2 = vcmp.lt.s32.totalorder %v1979_v5, 112 }
 0x229   : > { %1480 = vmatprep.subr.bf16.mxu1 %v1479_v36 }
 0x22a   : > { %1483 = vmatpush1.bf16.msk.msra.mxu1 %vm2044_vm13, %v1481_v37 }
 0x22b   : > { %1391 = vmatprep.subr.msk.mxu1 %vm2355_vm14, %v390_v40  ;;  %vm501_vm14 = vcmp.lt.s32.totalorder %v1979_v5, 126 }
 0x22e   : > { %412 = vmatpush1.msra.mxu1 %v389_v42 }
 0x22f   : > { %1392 = vmatmul.mubr.msk.f32.vlgmr.msra.gmra.mrb[0].mxu1 %vm291_vm9, %v397_v41 }
 0x230   : > { %693 = vmatprep.mubr.f32.mxu1 %v1769_v2 }
 0x231   : > { %v402_v43 = vpop.permute.xlu0 %401 }
 0x302   : > { %v473_v44 = vpop.f32.mrb[0].mxu1 }
 0x303   : > { %v474_v45 = vadd.f32 %v473_v44, %v402_v43  ;;  %v475_v46 = vpop.f32.mrb[1].mxu1 }
 0x304   : > { %v476_v47 = vadd.f32 %v475_v46, %v402_v43 }
 0x305   : > { %v478_v48 = vmax.f32 %v474_v45, 0.0 }
 0x306   : > { %v479_v49 = vmax.f32 %v476_v47, 0.0 }
 0x308   : > { %499 = vrot.lane.b32.xlu0 %v479_v49, %s1776_s7  ;;  %v1602_v50 = vpack.i.bf16 %v479_v49, %v478_v48 }
 0x30a   : > { %1603 = vrot.lane.b32.xlu1 %v1602_v50, %s1777_s26  ;;  %v618_v50 = vld [vmem:[#allocation2 + $0x8] sm:$0xff] }
 0x30c   : > { %801 = vrot.lane.b32.xlu0 %v2062_v51, %s1770_s23 }
 0x30e   : > { %497 = vrot.lane.b32.xlu1 %v478_v48, %s1776_s7 }
 0x312   : > { %1608 = vrot.lane.b32.xlu1 %v1607_v53, %s1771_s21  ;;  %s1781_s21 = smov [#allocation7]  }
 0x313   : > { %s1695_s28 = sshll.u32 %s1781_s21, 4  ;;  %s1696_s28 = int_to_ptr.vmem [resolvable:$false] %s1695_s28 }
 0x314   : > { %s1697_s29 = scalar_lea.vmem %s1696_s28, 1024  ;;  %p1698_p10 = scmp.lt.s32.totalorder %s2296_s25, %s1696_s28 }
 0x316   : > { %803 = vrot.lane.b32.xlu1 %v2065_v52, %s1770_s23  ;;  %s1779_s23 = smov 32  }
 0x37a   : > { %v500_v3 = vpop.permute.xlu0 %499 }
 0x37c   : > { %v1604_v54 = vpop.permute.xlu1 %1603 }
 0x37d   : > { %v1606_v55 = vunpack.i.h.bf16 %v1604_v54  ;;  %v1605_v56 = vunpack.i.l.bf16 %v1604_v54 }
 0x37e   : > { %v802_v16 = vpop.permute.xlu0 %801 }
 0x37f   : > { %v489_v57 = vsel %vm488_vm15, %v1605_v56, %v1606_v55  ;;  %v490_v58 = vsel %vm488_vm15, %v1606_v55, %v1605_v56 }
 0x380   : > { %v1484_v60 = vpack.c.bf16 %v479_v49, %v489_v57  ;;  %v1487_v61 = vpack.c.bf16 %v478_v48, %v490_v58  ;;  %v498_v62 = vpop.permute.xlu1 %497 }
 0x381   : > { %v503_v9 = vsel %vm501_vm14, %v500_v3, %v498_v62  ;;  %v502_v15 = vsel %vm501_vm14, %v498_v62, %v500_v3  ;;  %v904_v62 = vld [vmem:[#allocation2 + $0x10] sm:$0xff] }
 0x382   : > { %1486 = vmatprep.subr.msk.bf16.mxu0 %vm2083_vm11, %v1484_v60 }
 0x383   : > { %1489 = vmatpush1.bf16.msk.msra.mxu0 %vm2089_vm12, %v1487_v61 }
 0x384   : > { %v1609_v10 = vpop.permute.xlu1 %1608  ;;  %1399 = vmatprep.subr.msk.mxu0 %vm1470_vm10, %v503_v9 }
 0x385   : > { %v1611_v11 = vunpack.i.h.bf16 %v1609_v10  ;;  %v1610_v12 = vunpack.i.l.bf16 %v1609_v10 }
 0x387   : > { %v797_v17 = vsel %vm268_vm0, %v1610_v12, %v1611_v11  ;;  %v798_v19 = vsel %vm268_vm0, %v1611_v11, %v1610_v12  ;;  %1401 = vmatpush1.msk.msra.mxu0 %vm1471_vm1, %v502_v15  ;;  %vm588_vm0 = vcmp.lt.s32.totalorder %v1979_v5, 32 }
 0x388   : > { %v1495_v20 = vpack.c.bf16 %v2065_v52, %v797_v17  ;;  %v1498_v21 = vpack.c.bf16 %v2062_v51, %v798_v19  ;;  %1402 = vmatmul.mubr.msk.f32.vlgmr.msra.gmra.mrb[2].mxu0 %vm291_vm9, %v1393_v13  ;;  %v804_v22 = vpop.permute.xlu1 %803 }
 0x389   : > { %v806_v23 = vsel %vm281_vm3, %v804_v22, %v802_v16  ;;  %878 = vmatprep.mubr.f32.mxu0 %v1769_v2  ;;  %v805_v24 = vsel %vm281_vm3, %v802_v16, %v804_v22  ;;  %vm1404_vm3 = vmneg %vm588_vm0 }
 0x38a   : > { %1497 = vmatprep.subr.msk.bf16.mxu0 %vm1997_vm5, %v1495_v20  ;;  %vm608_vm5 = vcmp.lt.s32.totalorder %v1979_v5, 96 }
 0x38b   : > { %1500 = vmatpush1.bf16.msk.msra.mxu0 %vm2006_vm6, %v1498_v21  ;;  %vm2153_vm6 = vmpackc.low %vm1772_vm4, %vm1404_vm3  ;;  %vm2381_vm4 = vcmp.lt.s32.totalorder %v1979_v5, 16  ;;  %vm2384_vm3 = vcmp.lt.s32.totalorder %v1982_v6, 240 }
 0x38c   : > { %1422 = vmatprep.subr.msk.mxu0 %vm1465_vm7, %v806_v23  ;;  %vm1472_vm7 = vcmp.lt.s32.totalorder %v1982_v6, 224 }
 0x38f   : > { %1424 = vmatpush1.msk.msra.mxu0 %vm1466_vm8, %v805_v24  ;;  %vm2382_vm8 = vmmov %vm2381_vm4 }
 0x390   : > { %1425 = vmatmul.mubr.msk.f32.vlgmr.msra.gmra.mrb[4].mxu0 %vm291_vm9, %v1416_v25 }
 0x391   : > { %1073 = vmatprep.mubr.f32.mxu0 %v1769_v2 }
 0x45b   : > { %v581_v14 = vpop.f32.mrb[2].mxu0 }
 0x45c   : > { %v586_v18 = vmax.f32 %v581_v14, 0.0  ;;  %v583_v26 = vpop.f32.mrb[3].mxu0 }
 0x45d   : > { %v587_v27 = vmax.f32 %v583_v26, 0.0 }
 0x45e   : > { %604 = vrot.lane.b32.xlu1 %v586_v18, %s1778_s9 }
 0x45f   : > { %v1612_v28 = vpack.i.bf16 %v587_v27, %v586_v18 }
 0x461   : > { %1613 = vrot.lane.b32.xlu0 %v1612_v28, %s1779_s23 }
 0x463   : > { %v880_v29 = vpop.f32.mrb[4].mxu0 }
 0x464   : > { %v885_v30 = vmax.f32 %v880_v29, 0.0  ;;  %v882_v31 = vpop.f32.mrb[5].mxu0 }
 0x465   : > { %v886_v32 = vmax.f32 %v882_v31, 0.0  ;;  %606 = vrot.lane.b32.xlu0 %v587_v27, %s1778_s9  ;;  %v1403_v31 = vld [vmem:[%s2349_s2 + $0x8] sm:$0xff] }
 0x467   : > { %v1617_v33 = vpack.i.bf16 %v886_v32, %v885_v30 }
 0x469   : > { %1618 = vrot.lane.b32.xlu1 %v1617_v33, %s1775_s5  ;;  %895 = vrot.lane.b32.xlu0 %v885_v30, %s1773_s10 }
 0x46d   : > { %897 = vrot.lane.b32.xlu1 %v886_v32, %s1773_s10  ;;  %909 = vperm.xlu0 %1601, %v1426_v34  }
 0x4d0   : > { %v605_v41 = vpop.permute.xlu1 %604 }
 0x4d3   : > { %v1614_v35 = vpop.permute.xlu0 %1613 }
 0x4d4   : > { %v1616_v36 = vunpack.i.h.bf16 %v1614_v35  ;;  %v1615_v37 = vunpack.i.l.bf16 %v1614_v35 }
 0x4d6   : > { %v597_v39 = vsel %vm588_vm0, %v1616_v36, %v1615_v37  ;;  %v596_v40 = vsel %vm588_vm0, %v1615_v37, %v1616_v36 }
 0x4d7   : > { %v1492_v42 = vpack.c.bf16 %v586_v18, %v597_v39  ;;  %v607_v43 = vpop.permute.xlu0 %606  ;;  %v1490_v44 = vpack.c.bf16 %v587_v27, %v596_v40  ;;  %v1432_v27 = vld [vmem:[%s2347_s0 + $0x18] sm:$0xff] }
 0x4d8   : > { %v610_v46 = vsel %vm608_vm5, %v607_v43, %v605_v41  ;;  %v609_v53 = vsel %vm608_vm5, %v605_v41, %v607_v43  ;;  %v1099_v43 = vld [vmem:[#allocation2 + $0x18] sm:$0xff] }
 0x4d9   : > { %1491 = vmatprep.subr.bf16.mxu1 %v1490_v44 }
 0x4da   : > { %1494 = vmatpush1.bf16.msk.msra.mxu1 %vm2153_vm6, %v1492_v42 }
 0x4db   : > { %v1619_v47 = vpop.permute.xlu1 %1618  ;;  %1407 = vmatprep.subr.msk.mxu1 %vm1472_vm7, %v610_v46  ;;  %v896_v60 = vpop.permute.xlu0 %895  ;;  %v1780_v46 = vmov 1966171168  }
 0x4dc   : > { %v1621_v48 = vunpack.i.h.bf16 %v1619_v47  ;;  %v1620_v49 = vunpack.i.l.bf16 %v1619_v47  ;;  %v708_v47 = vunpack.c.l.s4 %v1780_v46 }
 0x4de   : > { %v892_v54 = vsel %vm2381_vm4, %v1621_v48, %v1620_v49  ;;  %634 = vmatpush1.msra.mxu1 %v609_v53  ;;  %v891_v55 = vsel %vm2382_vm8, %v1620_v49, %v1621_v48  ;;  %vm2385_vm4 = vmmov %vm2383_vm2  ;;  %v709_v49 = vunpack.c.0.s8 %v708_v47 }
 0x4df   : > { %v1503_v56 = vpack.c.bf16 %v885_v30, %v892_v54  ;;  %v898_v57 = vpop.permute.xlu1 %897  ;;  %1408 = vmatmul.mubr.msk.f32.vlgmr.msra.gmra.mrb[2].mxu1 %vm291_vm9, %v618_v50  ;;  %v1501_v58 = vpack.c.bf16 %v886_v32, %v891_v55  ;;  %v711_v50 = vshrl.u32 %v231_v4, 7 }
 0x4e0   : > { %979 = vmatprep.mubr.f32.mxu1 %v1769_v2  ;;  %v900_v61 = vsel %vm2383_vm2, %v898_v57, %v896_v60  ;;  %v899_v3 = vsel %vm2385_vm4, %v896_v60, %v898_v57 }
 0x4e1   : > { %1502 = vmatprep.subr.bf16.mxu1 %v1501_v58  ;;  %v712_v5 = vsub.s32 %v709_v49, %v711_v50 }
 0x4e2   : > { %1505 = vmatpush1.bf16.msk.msra.mxu1 %vm2044_vm13, %v1503_v56 }
 0x4e3   : > { %1430 = vmatprep.subr.msk.mxu1 %vm2384_vm3, %v900_v61 }
 0x4e6   : > { %920 = vmatpush1.msra.mxu1 %v899_v3 }
 0x4e7   : > { %1431 = vmatmul.mubr.msk.f32.vlgmr.msra.gmra.mrb[4].mxu1 %vm291_vm9, %v904_v62 }
 0x4e8   : > { %1174 = vmatprep.mubr.f32.mxu1 %v1769_v2 }
 0x4ec   : > { %v910_v11 = vpop.permute.xlu0 %909 }
 0x5b2   : > { %v2182_v9 = vpop.f32.mrb[2].mxu1 }
 0x5b3   : > { %v2184_v10 = vpop.f32.mrb[3].mxu1 }
 0x5ba   : > { %v981_v12 = vpop.f32.mrb[4].mxu1 }
 0x5bb   : > { %v982_v38 = vadd.f32 %v981_v12, %v910_v11  ;;  %v983_v13 = vpop.f32.mrb[5].mxu1 }
 0x5bc   : > { %v984_v15 = vadd.f32 %v983_v13, %v910_v11 }
 0x5bd   : > { %v986_v16 = vmax.f32 %v982_v38, 0.0 }
 0x5be   : > { %v987_v17 = vmax.f32 %v984_v15, 0.0 }
 0x5bf   : > { %996 = vrot.lane.b32.xlu0 %v986_v16, %s1776_s7 }
 0x5c0   : > { %v1622_v19 = vpack.i.bf16 %v987_v17, %v986_v16 }
 0x5c2   : > { %1623 = vrot.lane.b32.xlu1 %v1622_v19, %s1777_s26 }
 0x5c6   : > { %998 = vrot.lane.b32.xlu1 %v987_v17, %s1776_s7 }
 0x631   : > { %v997_v18 = vpop.permute.xlu0 %996 }
 0x634   : > { %v1624_v20 = vpop.permute.xlu1 %1623 }
 0x635   : > { %v1626_v2 = vunpack.i.h.bf16 %v1624_v20  ;;  %v1625_v21 = vunpack.i.l.bf16 %v1624_v20 }
 0x637   : > { %v992_v22 = vsel %vm488_vm15, %v1625_v21, %v1626_v2  ;;  %v993_v23 = vsel %vm488_vm15, %v1626_v2, %v1625_v21 }
 0x638   : > { %v1506_v24 = vpack.c.bf16 %v987_v17, %v992_v22  ;;  %v1509_v25 = vpack.c.bf16 %v986_v16, %v993_v23  ;;  %v999_v14 = vpop.permute.xlu1 %998 }
 0x639   : > { %v1001_v26 = vsel %vm501_vm14, %v999_v14, %v997_v18  ;;  %v1000_v28 = vsel %vm501_vm14, %v997_v18, %v999_v14 }
 0x63a   : > { %1508 = vmatprep.subr.msk.bf16.mxu0 %vm2083_vm11, %v1506_v24 }
 0x63b   : > { %1511 = vmatpush1.bf16.msk.msra.mxu0 %vm2089_vm12, %v1509_v25 }
 0x63c   : > { %1438 = vmatprep.subr.msk.mxu0 %vm1470_vm10, %v1001_v26 }
 0x63f   : > { %1440 = vmatpush1.msk.msra.mxu0 %vm1471_vm1, %v1000_v28 }
 0x640   : > { %1441 = vmatmul.mubr.msk.f32.vlgmr.msra.gmra.mrb[6].mxu0 %vm291_vm9, %v1432_v27 }
 0x713   : > { %v1075_v59 = vpop.f32.mrb[6].mxu0 }
 0x714   : > { %v1080_v29 = vmax.f32 %v1075_v59, 0.0  ;;  %v1077_v30 = vpop.f32.mrb[7].mxu0 }
 0x715   : > { %v1081_v63 = vmax.f32 %v1077_v30, 0.0 }
 0x716   : > { %1090 = vrot.lane.b32.xlu1 %v1080_v29, %s1778_s9 }
 0x717   : > { %v1627_v7 = vpack.i.bf16 %v1081_v63, %v1080_v29 }
 0x719   : > { %1628 = vrot.lane.b32.xlu0 %v1627_v7, %s1779_s23  ;;  %s1691_s23 = scalar_lea.vmem %s2296_s25, 512 }
 0x71a   : > { %623 = vperm.xlu1 %1632, %v1403_v31   ;;  %p1692_p4 = scmp.ne.s32.totalorder %s2296_s25, %s1691_s23  ;;  %p1699_p13 = scmp.lt.s32.totalorder %s1697_s29, %s1691_s23 }
 0x71c   : > { %p1693_p6 = pnand %p1692_p4, %p1899_p12  ;;  %p1700_p3 = por %p1699_p13, %p1698_p10 }
 0x71d   : > { %1092 = vrot.lane.b32.xlu0 %v1081_v63, %s1778_s9  ;;  %s2282_s9 = scalar_lea.hbm %s2351_s4, %s1462_s13 }
 0x71e   : > { %p1694_p8 = pneg %p1693_p6 }
 0x720   : > { %p1701_p7 = pnand %p1700_p3, %p1694_p8 }
 0x721   : > { %1104 = vperm.xlu0 %1601, %v1442_v8  }
 0x788   : > { %v1091_v41 = vpop.permute.xlu1 %1090 }
 0x78b   : > { %v1629_v32 = vpop.permute.xlu0 %1628 }
 0x78c   : > { %v1631_v33 = vunpack.i.h.bf16 %v1629_v32  ;;  %v1630_v34 = vunpack.i.l.bf16 %v1629_v32 }
 0x78e   : > { %v1087_v35 = vsel %vm588_vm0, %v1631_v33, %v1630_v34  ;;  %v1086_v36 = vsel %vm588_vm0, %v1630_v34, %v1631_v33 }
 0x78f   : > { %v1514_v37 = vpack.c.bf16 %v1080_v29, %v1087_v35  ;;  %v1093_v39 = vpop.permute.xlu0 %1092  ;;  %v1512_v40 = vpack.c.bf16 %v1081_v63, %v1086_v36 }
 0x790   : > { %v1095_v42 = vsel %vm608_vm5, %v1093_v39, %v1091_v41  ;;  %v1094_v44 = vsel %vm608_vm5, %v1091_v41, %v1093_v39 }
 0x791   : > { %1513 = vmatprep.subr.bf16.mxu1 %v1512_v40 }
 0x792   : > { %1516 = vmatpush1.bf16.msk.msra.mxu1 %vm2153_vm6, %v1514_v37 }
 0x793   : > { %1446 = vmatprep.subr.msk.mxu1 %vm1472_vm7, %v1095_v42 }
 0x796   : > { %1115 = vmatpush1.msra.mxu1 %v1094_v44 }
 0x797   : > { %1447 = vmatmul.mubr.msk.f32.vlgmr.msra.gmra.mrb[6].mxu1 %vm291_vm9, %v1099_v43  ;;  %vm2237_vm9 = vcmp.lt.s32.totalorder %v231_v4, 256 }
 0x799   : > { %v624_v48 = vpop.permute.xlu1 %623 }
 0x79a   : > { %v696_v53 = vadd.f32 %v2182_v9, %v624_v48  ;;  %v698_v45 = vadd.f32 %v2184_v10, %v624_v48 }
 0x79c   : > { %v700_v6 = vadd.f32 %v696_v53, %v1964_v0  ;;  %v701_v54 = vadd.f32 %v698_v45, %v1967_v1 }
 0x79e   : > { %v702_v55 = vmax.f32 %v700_v6, 0.0  ;;  %v703_v56 = vmax.f32 %v701_v54, 0.0 }
 0x7a0   : > { %v706_v57 = vcombine.low %v702_v55, %v703_v56  ;;  %v750_v58 = vcombine.high %v702_v55, %v703_v56  ;;  %v1105_v15 = vpop.permute.xlu0 %1104 }
 0x7a2   : > { %v713_v60 = vrot.slane %v706_v57, %v712_v5  ;;  %v757_v61 = vrot.slane %v750_v58, %v712_v5 }
 0x7a4   : > { %v720_v3 = vrot.slane %v713_v60, %v712_v5  ;;  %v728_v9 = vcombine.high %v713_v60, %v713_v60  ;;  %v764_v11 = vrot.slane %v757_v61, %v712_v5  ;;  %v769_v10 = vcombine.high %v757_v61, %v757_v61 }
 0x7a6   : > { %726 = vst.msk [vmem:[%s2243_s8] ss:$8 sm:$0x3] %vm2237_vm9, %v720_v3  ;;  %v735_v0 = vrot.slane %v728_v9, %v712_v5  ;;  %v740_v1 = vcombine.high %v720_v3, %v720_v3  ;;  %1412 = vst.msk [vmem:[%s2243_s8 + $0x10] ss:$8 sm:$0x3] %vm2237_vm9, %v764_v11  ;;  %v776_v4 = vrot.slane %v769_v10, %v712_v5 }
 0x7a7   : > { %v781_v12 = vcombine.high %v764_v11, %v764_v11 }
 0x7a8   : > { %1409 = vst.msk [vmem:[%s2243_s8 + $0x2] ss:$8 sm:$0x3] %vm2237_vm9, %v735_v0  ;;  %1410 = vst.msk [vmem:[%s2243_s8 + $0x4] ss:$8 sm:$0x3] %vm2237_vm9, %v740_v1  ;;  %v745_v38 = vcombine.high %v735_v0, %v735_v0  ;;  %v786_v13 = vcombine.high %v776_v4, %v776_v4 }
 0x7a9   : > { %1413 = vst.msk [vmem:[%s2243_s8 + $0x12] ss:$8 sm:$0x3] %vm2237_vm9, %v776_v4  ;;  %1414 = vst.msk [vmem:[%s2243_s8 + $0x14] ss:$8 sm:$0x3] %vm2237_vm9, %v781_v12 }
 0x7aa   : > { %1411 = vst.msk [vmem:[%s2243_s8 + $0x6] ss:$8 sm:$0x3] %vm2237_vm9, %v745_v38  ;;  %1415 = vst.msk [vmem:[%s2243_s8 + $0x16] ss:$8 sm:$0x3] %vm2237_vm9, %v786_v13 }
 0x86a   : > { %v1176_v16 = vpop.f32.mrb[6].mxu1 }
 0x86b   : > { %v1177_v17 = vadd.f32 %v1176_v16, %v1105_v15  ;;  %v1178_v19 = vpop.f32.mrb[7].mxu1 }
 0x86c   : > { %v1179_v20 = vadd.f32 %v1178_v19, %v1105_v15 }
 0x86d   : > { %v1181_v2 = vadd.f32 %v1177_v17, %v2062_v51 }
 0x86e   : > { %v1182_v21 = vadd.f32 %v1179_v20, %v2065_v52 }
 0x86f   : > { %v1183_v22 = vmax.f32 %v1181_v2, 0.0 }
 0x870   : > { %v1184_v23 = vmax.f32 %v1182_v21, 0.0 }
 0x872   : > { %v1187_v24 = vcombine.low %v1183_v22, %v1184_v23  ;;  %v1228_v25 = vcombine.high %v1183_v22, %v1184_v23 }
 0x874   : > { %v1194_v14 = vrot.slane %v1187_v24, %v712_v5  ;;  %v1235_v18 = vrot.slane %v1228_v25, %v712_v5 }
 0x876   : > { %v1201_v26 = vrot.slane %v1194_v14, %v712_v5  ;;  %v1206_v27 = vcombine.high %v1194_v14, %v1194_v14  ;;  %v1242_v28 = vrot.slane %v1235_v18, %v712_v5  ;;  %v1247_v59 = vcombine.high %v1235_v18, %v1235_v18 }
 0x878   : > { %1448 = vst.msk [vmem:[%s2243_s8 + $0x1] ss:$8 sm:$0x3] %vm2237_vm9, %v1201_v26  ;;  %v1213_v51 = vrot.slane %v1206_v27, %v712_v5  ;;  %v1218_v52 = vcombine.high %v1201_v26, %v1201_v26  ;;  %1452 = vst.msk [vmem:[%s2243_s8 + $0x11] ss:$8 sm:$0x3] %vm2237_vm9, %v1242_v28  ;;  %v1254_v29 = vrot.slane %v1247_v59, %v712_v5 }
 0x879   : > { %v1259_v30 = vcombine.high %v1242_v28, %v1242_v28 }
 0x87a   : > { %1449 = vst.msk [vmem:[%s2243_s8 + $0x3] ss:$8 sm:$0x3] %vm2237_vm9, %v1213_v51  ;;  %1450 = vst.msk [vmem:[%s2243_s8 + $0x5] ss:$8 sm:$0x3] %vm2237_vm9, %v1218_v52  ;;  %v1223_v63 = vcombine.high %v1213_v51, %v1213_v51  ;;  %v1264_v7 = vcombine.high %v1254_v29, %v1254_v29 }
 0x87b   : > { %1453 = vst.msk [vmem:[%s2243_s8 + $0x13] ss:$8 sm:$0x3] %vm2237_vm9, %v1254_v29  ;;  %1454 = vst.msk [vmem:[%s2243_s8 + $0x15] ss:$8 sm:$0x3] %vm2237_vm9, %v1259_v30 }
 0x87c   : > { %1451 = vst.msk [vmem:[%s2243_s8 + $0x7] ss:$8 sm:$0x3] %vm2237_vm9, %v1223_v63  ;;  %1455 = vst.msk [vmem:[%s2243_s8 + $0x17] ss:$8 sm:$0x3] %vm2237_vm9, %v1264_v7 }
 0x87d   : > { %1704 = shalt.err (!%p1701_p7)
}
 0x87e   : > { %s1705_s10 = scalar_lea.hbm %s2282_s9, 512  ;;  %s1709_s7 = scalar_lea.hbm %s2351_s4, 1024 }
 0x87f   : > { %p1706_p9 = scmp.ne.s32.totalorder %s2282_s9, %s1705_s10  ;;  %p1710_p5 = scmp.lt.u32.totalorder %s2282_s9, %s2351_s4 }
 0x880   : > { %p1711_p1 = scmp.lt.u32.totalorder %s1709_s7, %s1705_s10  ;;  %p1713_p4 = scmp.lt.u32.totalorder %s1705_s10, %s2282_s9 }
 0x881   : > { %p1707_p2 = pnand %p1706_p9, %p1899_p12 }
 0x882   : > { %p1712_p11 = por %p1711_p1, %p1710_p5 }
 0x883   : > { %p1708_p0 = pneg %p1707_p2 }
 0x884   : > { %p1714_p6 = por %p1713_p4, %p1712_p11 }
 0x886   : > { %p1715_p8 = pnand %p1714_p6, %p1708_p0 }
 0x888   : > { %1718 = shalt.err (!%p1715_p8)
}
 0x889   : > { %s1782_s13 = smov 256  }
 0x88a   : > { %1523 = dma.vmem_to_hbm [thread:$0]  (%p1899_p12), %s2296_s25, 512, %s2282_s9, %s1270_s19, %s1782_s13, %s1782_s13, %s1775_s5  }
 0x88b PF: > { %s1298_s11 = sand.u32 1, %s1749_s15   ;;  %p2388_p10 = scmp.ne.s32.totalorder %s2359_s22, 0 }
 0x88c   : > { %p2389_p13 = scmp.ge.s32.totalorder %s1761_s18, 2  ;;  %s1299_s14 = scalar_lea.sflag [#allocation4], %s1298_s11 }
 0x88e   : > { %p1534_p3 = pnand %p2389_p13, %p2388_p10 }
 0x890   : > { %1744 = dma.done.wait (!%p1534_p3), %s1299_s14, 512  }
 0x891   : > { %1746 = vsyncadd (!%p1534_p3), %s1299_s14, 4294966784  ;;  %p18_p7 = scmp.ge.s32.totalorder %s1864_s27, 4   ;;  %s2390_s15 = smov %s1753_s16 }
 0x892   : > { %s2391_s16 = smov %s1757_s17  ;;  %s2392_s17 = smov %s1895_s24 }
 0x893   : > { %s2393_s18 = smov %s1864_s27  ;;  %20 = sbr.rel (!%p18_p7) target bundleno = 6 (0x6), region = 110 }
 0x89a   :  { %1304 = vsyncpa [#allocation3], 1 }
 0x89b   :  { %1306 = vsyncpa [#allocation3 + $0x1], 1 }
 0x89c   :  { %1307 = vsyncpa [#allocation6], 1 }
 0x89d   :  { %1309 = vsyncpa [#allocation6 + $0x1], 1 }
 0x89e   :  { %1310 = vsyncpa [#allocation4], 1 }
 0x89f   :  { %1312 = vsyncpa [#allocation4 + $0x1], 1 }

</bundles_post_ra>
